<compile_context>
chip_gen: v6e
topology: v6e:2x2x1
jax: 0.10.0
libtpu: 0.0.40
codegen_flags: <defaults>
</compile_context>

<pallas_src>
import functools

import jax
import jax.numpy as jnp
from jax.experimental import pallas as pl
from jax.experimental.pallas import tpu as pltpu


# ----------------------------------------------------------------------------
# Fused Pallas kernel: one batch element per grid step.
# ----------------------------------------------------------------------------
def fused_forward_kernel(patches1_ref, w1_ref, b1_ref, w2_ref, b2_ref,
                         fcw_ref, fcb_ref, maskT_ref, o_ref,
                         pad_ref, slab_ref, *, H, W):
    """conv1+ReLU -> conv2+ReLU -> masked head, all in VMEM.

    patches1_ref: (H*W, 9*Cin)  im2col patches of the padded input (one batch)
    w1_ref:       (9*Cin, C)    conv1 weights (HWIO flattened)
    b1_ref:       (1, C)        conv1 bias
    w2_ref:       (9*C, C)      conv2 weights (HWIO flattened)
    b2_ref:       (1, C)        conv2 bias
    fcw_ref:      (C, O)        stacked fc weights, pre-transposed
    fcb_ref:      (1, O)        stacked fc biases
    maskT_ref:    (H*W, O)      normalized mask, pre-transposed
    o_ref:        (1, 1, O)     output row for this batch element
    pad_ref:      (H+2, W+2, C) VMEM scratch: zero-padded conv1 activation
    slab_ref:     (H*W, 9*C)    VMEM scratch: conv2 im2col slab
    """
    C = w1_ref.shape[-1]

    # ---- conv1 (3x3, SAME) as a single im2col matmul + bias + ReLU ---------
    a1 = jnp.dot(patches1_ref[...], w1_ref[...],
                 preferred_element_type=jnp.float32)
    a1 = jnp.maximum(a1 + b1_ref[...], 0.0)                     # (H*W, C)

    # ---- conv2: zero-pad a1 in VMEM, build im2col slab, one matmul ---------
    pad_ref[...] = jnp.zeros(pad_ref.shape, jnp.float32)
    pad_ref[1:H + 1, 1:W + 1, :] = a1.reshape(H, W, C)
    for t in range(9):
        dh, dw = t // 3, t % 3
        slab_ref[:, t * C:(t + 1) * C] = (
            pad_ref[dh:dh + H, dw:dw + W, :].reshape(H * W, C))
    a2 = jnp.dot(slab_ref[...], w2_ref[...],
                 preferred_element_type=jnp.float32)
    a2 = jnp.maximum(a2 + b2_ref[...], 0.0)                     # (H*W, C)

    # ---- head: per-neuron linear, then normalized-mask spatial reduction ---
    # out[o] = sum_{s,c} a2[s,c] * mask_norm[o,s] * fc_w[o,c] + fc_b[o]
    y = jnp.dot(a2, fcw_ref[...], preferred_element_type=jnp.float32)  # (H*W, O)
    out = jnp.sum(y * maskT_ref[...], axis=0, keepdims=True) + fcb_ref[...]
    o_ref[...] = out.reshape(o_ref.shape)


# ----------------------------------------------------------------------------
# Wrapper
# ----------------------------------------------------------------------------
def base_model_forward(x_nchw, params):
    B, Cin, H, W = x_nchw.shape
    C = params["conv1_w"].shape[-1]
    O = params["raw_mask"].shape[0]
    HW = H * W

    # NCHW -> NHWC and conv1 im2col patches (tiny input; pure layout plumbing
    # fused by XLA into the feed of the single pallas_call).
    x = jnp.transpose(x_nchw, (0, 2, 3, 1))                     # (B, H, W, Cin)
    xp = jnp.pad(x, ((0, 0), (1, 1), (1, 1), (0, 0)))
    patches1 = jnp.concatenate(
        [xp[:, dh:dh + H, dw:dw + W, :] for dh in range(3) for dw in range(3)],
        axis=-1).reshape(B * HW, 9 * Cin)

    # Weight / mask preprocessing (wrapper-side, free): flatten conv weights
    # to im2col layout, pre-transpose fc weights and the normalized mask.
    w1 = params["conv1_w"].reshape(9 * Cin, C)
    b1 = params["conv1_b"].reshape(1, C)
    w2 = params["conv2_w"].reshape(9 * C, C)
    b2 = params["conv2_b"].reshape(1, C)
    fcw_t = jnp.transpose(params["fc_w"])                       # (C, O)
    fcb = params["fc_b"].reshape(1, O)
    mask_norm = params["raw_mask"] / jnp.sum(params["raw_mask"])
    mask_t = mask_norm.reshape(O, HW).T                         # (HW, O)

    kernel = functools.partial(fused_forward_kernel, H=H, W=W)
    out = pl.pallas_call(
        kernel,
        out_shape=jax.ShapeDtypeStruct((B, 1, O), jnp.float32),
        grid_spec=pltpu.PrefetchScalarGridSpec(
            num_scalar_prefetch=0,
            grid=(B,),
            in_specs=[
                pl.BlockSpec((HW, 9 * Cin), lambda b: (b, 0)),   # patches1
                pl.BlockSpec((9 * Cin, C), lambda b: (0, 0)),    # w1
                pl.BlockSpec((1, C), lambda b: (0, 0)),          # b1
                pl.BlockSpec((9 * C, C), lambda b: (0, 0)),      # w2
                pl.BlockSpec((1, C), lambda b: (0, 0)),          # b2
                pl.BlockSpec((C, O), lambda b: (0, 0)),          # fc_w^T
                pl.BlockSpec((1, O), lambda b: (0, 0)),          # fc_b
                pl.BlockSpec((HW, O), lambda b: (0, 0)),         # mask^T
            ],
            out_specs=pl.BlockSpec((1, 1, O), lambda b: (b, 0, 0)),
            scratch_shapes=[
                pltpu.VMEM((H + 2, W + 2, C), jnp.float32),      # padded a1
                pltpu.VMEM((HW, 9 * C), jnp.float32),            # conv2 im2col
            ],
        ),
        compiler_params=pltpu.CompilerParams(
            dimension_semantics=("parallel",)),                  # megacore/v7x
    )(patches1, w1, b1, w2, b2, fcw_t, fcb, mask_t)
    return out.reshape(B, O)


# ----------------------------------------------------------------------------
# Pure-JAX reference (correctness check only)
# ----------------------------------------------------------------------------
def reference_forward(x_nchw, params):
    x = jnp.transpose(x_nchw, (0, 2, 3, 1))
    for w, b in ((params["conv1_w"], params["conv1_b"]),
                 (params["conv2_w"], params["conv2_b"])):
        x = jax.lax.conv_general_dilated(
            x, w, (1, 1), "SAME",
            dimension_numbers=("NHWC", "HWIO", "NHWC")) + b
        x = jnp.maximum(x, 0.0)
    feat = jnp.transpose(x, (0, 3, 1, 2))                        # (B, C, S, S)
    mask = params["raw_mask"] / params["raw_mask"].sum()
    z = jnp.einsum("bchw,ohw->bco", feat, mask)
    out = jnp.einsum("bco,oc->bo", z, params["fc_w"]) + params["fc_b"]
    return out


# ----------------------------------------------------------------------------
# Main
# ----------------------------------------------------------------------------
if __name__ == "__main__":
    # Small shapes: batch=2, input channels=3, spatial=16, VGG-style C=64,
    # output_dim=4.  layer=4 => no pooling, so feature spatial S = 16.
    B, CIN, HW = 2, 3, 16
    C, O = 64, 4

    key = jax.random.PRNGKey(0)
    k1, k2, k3, k4, kx = jax.random.split(key, 5)

    params = {
        # vgg16.features[:4] stand-in (deterministic synthetic weights, HWIO)
        "conv1_w": 0.05 * jax.random.normal(k1, (3, 3, CIN, C), jnp.float32),
        "conv1_b": jnp.zeros((C,), jnp.float32),
        "conv2_w": 0.05 * jax.random.normal(k2, (3, 3, C, C), jnp.float32),
        "conv2_b": jnp.zeros((C,), jnp.float32),
        # raw_mask initialized to ones, exactly as in the PyTorch module
        "raw_mask": jnp.ones((O, HW, HW), jnp.float32),
        # output_dim Linear(C, 1) layers stacked: weights (O, C), biases (O,)
        "fc_w": 0.1 * jax.random.normal(k3, (O, C), jnp.float32),
        "fc_b": 0.1 * jax.random.normal(k4, (O,), jnp.float32),
    }

    x = jax.random.normal(kx, (B, CIN, HW, HW), jnp.float32)     # NCHW input

    fwd = jax.jit(base_model_forward)
    out = jax.block_until_ready(fwd(x, params))
    assert out.shape == (B, O) and out.dtype == jnp.float32

    ref = jax.block_until_ready(reference_forward(x, params))
    assert jnp.allclose(out, ref, atol=1e-3, rtol=1e-3), (out, ref)

    print("KERNEL_OK")
</pallas_src>

<mosaic_0001>
module attributes {stable_mosaic.version = 11 : i64} {
  func.func @fused_forward_kernel(%arg0: i32, %arg1: memref<256x27xf32, #tpu.memory_space<vmem>>, %arg2: memref<27x64xf32, #tpu.memory_space<vmem>>, %arg3: memref<1x64xf32, #tpu.memory_space<vmem>>, %arg4: memref<576x64xf32, #tpu.memory_space<vmem>>, %arg5: memref<1x64xf32, #tpu.memory_space<vmem>>, %arg6: memref<64x4xf32, #tpu.memory_space<vmem>>, %arg7: memref<1x4xf32, #tpu.memory_space<vmem>>, %arg8: memref<256x4xf32, #tpu.memory_space<vmem>>, %arg9: memref<1x1x4xf32, #tpu.memory_space<vmem>>, %arg10: memref<18x18x64xf32, #tpu.memory_space<vmem>>, %arg11: memref<256x576xf32, #tpu.memory_space<vmem>>) attributes {dimension_semantics = [#tpu.dimension_semantics<parallel>], iteration_bounds = array<i64: 2>, scalar_prefetch = 0 : i64, scratch_operands = 2 : i64, tpu.core_type = #tpu.core_type<tc>, window_params = [{transform_indices = @transform_0, window_bounds = array<i64: 256, 27>}, {pipeline_mode = #tpu.pipeline_mode<synchronous>, transform_indices = @transform_1, window_bounds = array<i64: 27, 64>}, {pipeline_mode = #tpu.pipeline_mode<synchronous>, transform_indices = @transform_2, window_bounds = array<i64: 1, 64>}, {pipeline_mode = #tpu.pipeline_mode<synchronous>, transform_indices = @transform_3, window_bounds = array<i64: 576, 64>}, {pipeline_mode = #tpu.pipeline_mode<synchronous>, transform_indices = @transform_4, window_bounds = array<i64: 1, 64>}, {pipeline_mode = #tpu.pipeline_mode<synchronous>, transform_indices = @transform_5, window_bounds = array<i64: 64, 4>}, {pipeline_mode = #tpu.pipeline_mode<synchronous>, transform_indices = @transform_6, window_bounds = array<i64: 1, 4>}, {pipeline_mode = #tpu.pipeline_mode<synchronous>, transform_indices = @transform_7, window_bounds = array<i64: 256, 4>}, {transform_indices = @transform_8, window_bounds = array<i64: 1, 1, 4>}]} {
    %c0 = arith.constant 0 : index
    %c0_0 = arith.constant 0 : index
    %0 = vector.load %arg1[%c0, %c0_0] : memref<256x27xf32, #tpu.memory_space<vmem>>, vector<256x27xf32>
    %c0_1 = arith.constant 0 : index
    %c0_2 = arith.constant 0 : index
    %1 = vector.load %arg2[%c0_1, %c0_2] : memref<27x64xf32, #tpu.memory_space<vmem>>, vector<27x64xf32>
    %cst = arith.constant dense<0.000000e+00> : vector<256x64xf32>
    %2 = tpu.matmul %0, %1, %cst {dimension_numbers = #tpu.dot_dimension_numbers<[1], [0], [0], [1], [0, 0, 1, 1], [], []>} : vector<256x27xf32>, vector<27x64xf32>, vector<256x64xf32> -> vector<256x64xf32>
    %c0_3 = arith.constant 0 : index
    %c0_4 = arith.constant 0 : index
    %3 = vector.load %arg3[%c0_3, %c0_4] : memref<1x64xf32, #tpu.memory_space<vmem>>, vector<1x64xf32>
    %4 = vector.broadcast %3 : vector<1x64xf32> to vector<256x64xf32>
    %5 = arith.addf %2, %4 : vector<256x64xf32>
    %cst_5 = arith.constant 0.000000e+00 : f32
    %6 = vector.broadcast %cst_5 : f32 to vector<256x64xf32>
    %7 = arith.maximumf %5, %6 : vector<256x64xf32>
    %cst_6 = arith.constant 0.000000e+00 : f32
    %8 = vector.broadcast %cst_6 : f32 to vector<18x18x64xf32>
    %c0_7 = arith.constant 0 : index
    %c0_8 = arith.constant 0 : index
    %c0_9 = arith.constant 0 : index
    %9 = vector.load %arg10[%c0_7, %c0_8, %c0_9] : memref<18x18x64xf32, #tpu.memory_space<vmem>>, vector<18x18x64xf32>
    tpu.vector_store %arg10[%c0_7, %c0_8, %c0_9], %8 {strides = array<i32>} : memref<18x18x64xf32, #tpu.memory_space<vmem>>, vector<18x18x64xf32>,
    %10 = vector.shape_cast %7 : vector<256x64xf32> to vector<16x16x64xf32>
    %c1 = arith.constant 1 : index
    %c1_10 = arith.constant 1 : index
    %c0_11 = arith.constant 0 : index
    %11 = vector.load %arg10[%c1, %c1_10, %c0_11] : memref<18x18x64xf32, #tpu.memory_space<vmem>>, vector<16x16x64xf32>
    tpu.vector_store %arg10[%c1, %c1_10, %c0_11], %10 {strides = array<i32>} : memref<18x18x64xf32, #tpu.memory_space<vmem>>, vector<16x16x64xf32>,
    %c0_12 = arith.constant 0 : index
    %c0_13 = arith.constant 0 : index
    %c0_14 = arith.constant 0 : index
    %12 = vector.load %arg10[%c0_12, %c0_13, %c0_14] : memref<18x18x64xf32, #tpu.memory_space<vmem>>, vector<16x16x64xf32>
    %13 = vector.shape_cast %12 : vector<16x16x64xf32> to vector<256x64xf32>
    %c0_15 = arith.constant 0 : index
    %c0_16 = arith.constant 0 : index
    %14 = vector.load %arg11[%c0_15, %c0_16] : memref<256x576xf32, #tpu.memory_space<vmem>>, vector<256x64xf32>
    tpu.vector_store %arg11[%c0_15, %c0_16], %13 {strides = array<i32>} : memref<256x576xf32, #tpu.memory_space<vmem>>, vector<256x64xf32>,
    %c0_17 = arith.constant 0 : index
    %c1_18 = arith.constant 1 : index
    %c0_19 = arith.constant 0 : index
    %15 = vector.load %arg10[%c0_17, %c1_18, %c0_19] : memref<18x18x64xf32, #tpu.memory_space<vmem>>, vector<16x16x64xf32>
    %16 = vector.shape_cast %15 : vector<16x16x64xf32> to vector<256x64xf32>
    %c0_20 = arith.constant 0 : index
    %c64 = arith.constant 64 : index
    %17 = vector.load %arg11[%c0_20, %c64] : memref<256x576xf32, #tpu.memory_space<vmem>>, vector<256x64xf32>
    tpu.vector_store %arg11[%c0_20, %c64], %16 {strides = array<i32>} : memref<256x576xf32, #tpu.memory_space<vmem>>, vector<256x64xf32>,
    %c0_21 = arith.constant 0 : index
    %c2 = arith.constant 2 : index
    %c0_22 = arith.constant 0 : index
    %18 = vector.load %arg10[%c0_21, %c2, %c0_22] : memref<18x18x64xf32, #tpu.memory_space<vmem>>, vector<16x16x64xf32>
    %19 = vector.shape_cast %18 : vector<16x16x64xf32> to vector<256x64xf32>
    %c0_23 = arith.constant 0 : index
    %c128 = arith.constant 128 : index
    %20 = vector.load %arg11[%c0_23, %c128] : memref<256x576xf32, #tpu.memory_space<vmem>>, vector<256x64xf32>
    tpu.vector_store %arg11[%c0_23, %c128], %19 {strides = array<i32>} : memref<256x576xf32, #tpu.memory_space<vmem>>, vector<256x64xf32>,
    %c1_24 = arith.constant 1 : index
    %c0_25 = arith.constant 0 : index
    %c0_26 = arith.constant 0 : index
    %21 = vector.load %arg10[%c1_24, %c0_25, %c0_26] : memref<18x18x64xf32, #tpu.memory_space<vmem>>, vector<16x16x64xf32>
    %22 = vector.shape_cast %21 : vector<16x16x64xf32> to vector<256x64xf32>
    %c0_27 = arith.constant 0 : index
    %c192 = arith.constant 192 : index
    %23 = vector.load %arg11[%c0_27, %c192] : memref<256x576xf32, #tpu.memory_space<vmem>>, vector<256x64xf32>
    tpu.vector_store %arg11[%c0_27, %c192], %22 {strides = array<i32>} : memref<256x576xf32, #tpu.memory_space<vmem>>, vector<256x64xf32>,
    %c1_28 = arith.constant 1 : index
    %c1_29 = arith.constant 1 : index
    %c0_30 = arith.constant 0 : index
    %24 = vector.load %arg10[%c1_28, %c1_29, %c0_30] : memref<18x18x64xf32, #tpu.memory_space<vmem>>, vector<16x16x64xf32>
    %25 = vector.shape_cast %24 : vector<16x16x64xf32> to vector<256x64xf32>
    %c0_31 = arith.constant 0 : index
    %c256 = arith.constant 256 : index
    %26 = vector.load %arg11[%c0_31, %c256] : memref<256x576xf32, #tpu.memory_space<vmem>>, vector<256x64xf32>
    tpu.vector_store %arg11[%c0_31, %c256], %25 {strides = array<i32>} : memref<256x576xf32, #tpu.memory_space<vmem>>, vector<256x64xf32>,
    %c1_32 = arith.constant 1 : index
    %c2_33 = arith.constant 2 : index
    %c0_34 = arith.constant 0 : index
    %27 = vector.load %arg10[%c1_32, %c2_33, %c0_34] : memref<18x18x64xf32, #tpu.memory_space<vmem>>, vector<16x16x64xf32>
    %28 = vector.shape_cast %27 : vector<16x16x64xf32> to vector<256x64xf32>
    %c0_35 = arith.constant 0 : index
    %c320 = arith.constant 320 : index
    %29 = vector.load %arg11[%c0_35, %c320] : memref<256x576xf32, #tpu.memory_space<vmem>>, vector<256x64xf32>
    tpu.vector_store %arg11[%c0_35, %c320], %28 {strides = array<i32>} : memref<256x576xf32, #tpu.memory_space<vmem>>, vector<256x64xf32>,
    %c2_36 = arith.constant 2 : index
    %c0_37 = arith.constant 0 : index
    %c0_38 = arith.constant 0 : index
    %30 = vector.load %arg10[%c2_36, %c0_37, %c0_38] : memref<18x18x64xf32, #tpu.memory_space<vmem>>, vector<16x16x64xf32>
    %31 = vector.shape_cast %30 : vector<16x16x64xf32> to vector<256x64xf32>
    %c0_39 = arith.constant 0 : index
    %c384 = arith.constant 384 : index
    %32 = vector.load %arg11[%c0_39, %c384] : memref<256x576xf32, #tpu.memory_space<vmem>>, vector<256x64xf32>
    tpu.vector_store %arg11[%c0_39, %c384], %31 {strides = array<i32>} : memref<256x576xf32, #tpu.memory_space<vmem>>, vector<256x64xf32>,
    %c2_40 = arith.constant 2 : index
    %c1_41 = arith.constant 1 : index
    %c0_42 = arith.constant 0 : index
    %33 = vector.load %arg10[%c2_40, %c1_41, %c0_42] : memref<18x18x64xf32, #tpu.memory_space<vmem>>, vector<16x16x64xf32>
    %34 = vector.shape_cast %33 : vector<16x16x64xf32> to vector<256x64xf32>
    %c0_43 = arith.constant 0 : index
    %c448 = arith.constant 448 : index
    %35 = vector.load %arg11[%c0_43, %c448] : memref<256x576xf32, #tpu.memory_space<vmem>>, vector<256x64xf32>
    tpu.vector_store %arg11[%c0_43, %c448], %34 {strides = array<i32>} : memref<256x576xf32, #tpu.memory_space<vmem>>, vector<256x64xf32>,
    %c2_44 = arith.constant 2 : index
    %c2_45 = arith.constant 2 : index
    %c0_46 = arith.constant 0 : index
    %36 = vector.load %arg10[%c2_44, %c2_45, %c0_46] : memref<18x18x64xf32, #tpu.memory_space<vmem>>, vector<16x16x64xf32>
    %37 = vector.shape_cast %36 : vector<16x16x64xf32> to vector<256x64xf32>
    %c0_47 = arith.constant 0 : index
    %c512 = arith.constant 512 : index
    %38 = vector.load %arg11[%c0_47, %c512] : memref<256x576xf32, #tpu.memory_space<vmem>>, vector<256x64xf32>
    tpu.vector_store %arg11[%c0_47, %c512], %37 {strides = array<i32>} : memref<256x576xf32, #tpu.memory_space<vmem>>, vector<256x64xf32>,
    %c0_48 = arith.constant 0 : index
    %c0_49 = arith.constant 0 : index
    %39 = vector.load %arg11[%c0_48, %c0_49] : memref<256x576xf32, #tpu.memory_space<vmem>>, vector<256x576xf32>
    %c0_50 = arith.constant 0 : index
    %c0_51 = arith.constant 0 : index
    %40 = vector.load %arg4[%c0_50, %c0_51] : memref<576x64xf32, #tpu.memory_space<vmem>>, vector<576x64xf32>
    %cst_52 = arith.constant dense<0.000000e+00> : vector<256x64xf32>
    %41 = tpu.matmul %39, %40, %cst_52 {dimension_numbers = #tpu.dot_dimension_numbers<[1], [0], [0], [1], [0, 0, 1, 1], [], []>} : vector<256x576xf32>, vector<576x64xf32>, vector<256x64xf32> -> vector<256x64xf32>
    %c0_53 = arith.constant 0 : index
    %c0_54 = arith.constant 0 : index
    %42 = vector.load %arg5[%c0_53, %c0_54] : memref<1x64xf32, #tpu.memory_space<vmem>>, vector<1x64xf32>
    %43 = vector.broadcast %42 : vector<1x64xf32> to vector<256x64xf32>
    %44 = arith.addf %41, %43 : vector<256x64xf32>
    %cst_55 = arith.constant 0.000000e+00 : f32
    %45 = vector.broadcast %cst_55 : f32 to vector<256x64xf32>
    %46 = arith.maximumf %44, %45 : vector<256x64xf32>
    %c0_56 = arith.constant 0 : index
    %c0_57 = arith.constant 0 : index
    %47 = vector.load %arg6[%c0_56, %c0_57] : memref<64x4xf32, #tpu.memory_space<vmem>>, vector<64x4xf32>
    %cst_58 = arith.constant dense<0.000000e+00> : vector<256x4xf32>
    %48 = tpu.matmul %46, %47, %cst_58 {dimension_numbers = #tpu.dot_dimension_numbers<[1], [0], [0], [1], [0, 0, 1, 1], [], []>} : vector<256x64xf32>, vector<64x4xf32>, vector<256x4xf32> -> vector<256x4xf32>
    %c0_59 = arith.constant 0 : index
    %c0_60 = arith.constant 0 : index
    %49 = vector.load %arg8[%c0_59, %c0_60] : memref<256x4xf32, #tpu.memory_space<vmem>>, vector<256x4xf32>
    %50 = arith.mulf %48, %49 : vector<256x4xf32>
    %cst_61 = arith.constant dense<0.000000e+00> : vector<4xf32>
    %51 = vector.multi_reduction <add>, %50, %cst_61 [0] : vector<256x4xf32> to vector<4xf32>
    %52 = vector.shape_cast %51 : vector<4xf32> to vector<1x4xf32>
    %c0_62 = arith.constant 0 : index
    %c0_63 = arith.constant 0 : index
    %53 = vector.load %arg7[%c0_62, %c0_63] : memref<1x4xf32, #tpu.memory_space<vmem>>, vector<1x4xf32>
    %54 = arith.addf %52, %53 : vector<1x4xf32>
    %55 = vector.shape_cast %54 : vector<1x4xf32> to vector<1x1x4xf32>
    %c0_64 = arith.constant 0 : index
    %c0_65 = arith.constant 0 : index
    %c0_66 = arith.constant 0 : index
    %56 = vector.load %arg9[%c0_64, %c0_65, %c0_66] : memref<1x1x4xf32, #tpu.memory_space<vmem>>, vector<1x1x4xf32>
    tpu.vector_store %arg9[%c0_64, %c0_65, %c0_66], %55 {strides = array<i32>} : memref<1x1x4xf32, #tpu.memory_space<vmem>>, vector<1x1x4xf32>,
    return
  }
  func.func @transform_0(%arg0: i32) -> (i32, i32) {
    %c0_i32 = arith.constant 0 : i32
    %c0_i32_0 = arith.constant 0 : i32
    return %arg0, %c0_i32 : i32, i32
  }
  func.func @transform_1(%arg0: i32) -> (i32, i32) {
    %c0_i32 = arith.constant 0 : i32
    %c0_i32_0 = arith.constant 0 : i32
    %c0_i32_1 = arith.constant 0 : i32
    return %c0_i32, %c0_i32_0 : i32, i32
  }
  func.func @transform_2(%arg0: i32) -> (i32, i32) {
    %c0_i32 = arith.constant 0 : i32
    %c0_i32_0 = arith.constant 0 : i32
    %c0_i32_1 = arith.constant 0 : i32
    return %c0_i32, %c0_i32_0 : i32, i32
  }
  func.func @transform_3(%arg0: i32) -> (i32, i32) {
    %c0_i32 = arith.constant 0 : i32
    %c0_i32_0 = arith.constant 0 : i32
    %c0_i32_1 = arith.constant 0 : i32
    return %c0_i32, %c0_i32_0 : i32, i32
  }
  func.func @transform_4(%arg0: i32) -> (i32, i32) {
    %c0_i32 = arith.constant 0 : i32
    %c0_i32_0 = arith.constant 0 : i32
    %c0_i32_1 = arith.constant 0 : i32
    return %c0_i32, %c0_i32_0 : i32, i32
  }
  func.func @transform_5(%arg0: i32) -> (i32, i32) {
    %c0_i32 = arith.constant 0 : i32
    %c0_i32_0 = arith.constant 0 : i32
    %c0_i32_1 = arith.constant 0 : i32
    return %c0_i32, %c0_i32_0 : i32, i32
  }
  func.func @transform_6(%arg0: i32) -> (i32, i32) {
    %c0_i32 = arith.constant 0 : i32
    %c0_i32_0 = arith.constant 0 : i32
    %c0_i32_1 = arith.constant 0 : i32
    return %c0_i32, %c0_i32_0 : i32, i32
  }
  func.func @transform_7(%arg0: i32) -> (i32, i32) {
    %c0_i32 = arith.constant 0 : i32
    %c0_i32_0 = arith.constant 0 : i32
    %c0_i32_1 = arith.constant 0 : i32
    return %c0_i32, %c0_i32_0 : i32, i32
  }
  func.func @transform_8(%arg0: i32) -> (i32, i32, i32) {
    %c0_i32 = arith.constant 0 : i32
    %c0_i32_0 = arith.constant 0 : i32
    %c0_i32_1 = arith.constant 0 : i32
    return %arg0, %c0_i32, %c0_i32_0 : i32, i32, i32
  }
}

</mosaic_0001>

<bundles_post_ra>
// kernel: base_model_forward.1
= control target key start
LH: loop header
LB: loop body
LE: loop exit
PB: predicated region body
PF: predicated region fallthrough
CT: control target
= control target key end

     0   :  { %13 = vsyncpa [#allocation5], 0  ;;  %s5698_s0 = inlined_call_operand.vmem [shape: f32[512,27], index: 0, kind: input, shape index: {}]   ;;  %s5699_s1 = inlined_call_operand.vmem [shape: f32[27,64], index: 1, kind: input, shape index: {}]   ;;  %s5700_s2 = inlined_call_operand.vmem [shape: f32[1,64], index: 2, kind: input, shape index: {}]   ;;  %s5701_s3 = inlined_call_operand.vmem [shape: f32[576,64], index: 3, kind: input, shape index: {}]   ;;  %s5702_s4 = inlined_call_operand.vmem [shape: f32[1,64], index: 4, kind: input, shape index: {}]   ;;  %s5703_s5 = inlined_call_operand.vmem [shape: f32[64,4], index: 5, kind: input, shape index: {}]   ;;  %s5704_s6 = inlined_call_operand.vmem [shape: f32[1,4], index: 6, kind: input, shape index: {}]   ;;  %s5705_s7 = inlined_call_operand.vmem [shape: f32[256,4], index: 7, kind: input, shape index: {}]   ;;  %s5706_s8 = inlined_call_operand.hbm [shape: f32[2,1,4], index: 8, kind: output, shape index: {}]  }
   0x1   :  { %15 = vsyncpa [#allocation5 + $0x1], 0  ;;  %s4037_s27 = smov 0   ;;  %s4039_s28 = smov 0  }
   0x2   :  { %s4041_s29 = smov 0   ;;  %s4043_s30 = smov 0  }
   0x3 LB: > { %s4058_s9 = sadd.s32 4294967295, %s3987_s30   ;;  %s3462_s10 = sadd.s32 4294967294, %s3987_s30   ;;  %s3987_s30 = sphi %s4043_s30, %s5712_s30   ;;  %s3983_s29 = sphi %s4041_s29, %s5711_s29   ;;  %s3979_s28 = sphi %s4039_s28, %s5710_s28   ;;  %s3975_s27 = sphi %s4037_s27, %s5709_s27  }
   0x4   : > { %s4062_s11 = sadd.s32 1, %s3987_s30   ;;  %s201_s12 = sadd.s32 1, %s3983_s29 }
   0x5   : > { %s198_s13 = ssub.s32 %s3987_s30, %s4062_s11  ;;  %p211_p0 = scmp.ne.s32.totalorder %s3983_s29, %s3979_s28 }
   0x6   : > { %p199_p1 = scmp.eq.s32.totalorder %s198_s13, 0  ;;  %p212_p2 = scmp.eq.s32.totalorder %s4058_s9, 1 }
   0x7   : > { %p217_p3 = scmp.ne.s32.totalorder %s3979_s28, %s3975_s27  ;;  %p218_p4 = scmp.eq.s32.totalorder %s3462_s10, 1 }
   0x8   : > { %s4073_s14 = scalar_select %p199_p1, %s3983_s29, %s201_s12  }
   0x9   : > { %p4075_p5 = por %p212_p2, %p211_p0  ;;  %p4079_p6 = por %p218_p4, %p217_p3 }
   0xa   : > { %p3465_p7 = scmp.ge.s32.totalorder %s3987_s30, 1  ;;  %p266_p8 = scmp.lt.s32.totalorder %s3987_s30, 3 }
   0xc   : > { %p267_p9 = pnand %p3465_p7, %p266_p8 }
   0xd   : > { %s3466_s21 = sshll.u32 (!%p267_p9), %s4058_s9, 5  ;;  %s3990_s17 = smov (!%p267_p9), 64  }
   0xe   : > { %270 = sbr.rel (%p267_p9) target bundleno = 1046 (0x416), region = 52  ;;  %p300_p10 = scmp.lt.s32.totalorder (!%p267_p9), %s3466_s21, 63 }
   0xf   : > { %s297_s23 = sand.u32 (!%p267_p9), 1, %s3979_s28  }
  0x10   : > { %s298_s10 = scalar_lea.vmem (!%p267_p9), [#allocation4], %s297_s23  ;;  %s3395_s20 = scalar_lea.sflag (!%p267_p9), [#allocation5], %s297_s23 }
  0x11   : > { %s3407_s12 = sshll.u32 (!%p267_p9), %s298_s10, 4  ;;  %s3408_s12 = int_to_ptr.vmem [resolvable:$true] %s3407_s12 }
  0x13   : > { %v340_v0 = vld [vmem:[%s5699_s1 + $0x18] sm:$0x7]  ;;  %vm445_vm0 = vcmask 1042432   ;;  %v339_v1 = vld [vmem:[%s5699_s1 + $0x10] sm:$0xff]  ;;  %v338_v2 = vld [vmem:[%s5699_s1 + $0x8] sm:$0xff]  ;;  %s5714_s21 = smov (!%p300_p10, %s3466_s21), 63 }
  0x14   : > { %3686 = vmatprep.subr.msk.mxu0 %vm445_vm0, %v340_v0  ;;  %v337_v3 = vld [vmem:[%s5699_s1] sm:$0xff]  ;;  %s3467_s26 = sshll.u32 %s5714_s21, 3  ;;  %vm348_vm1 = vcmask 220160   ;;  %vm706_vm2 = vcmask 523264   ;;  %vm709_vm3 = vcmask 517120   ;;  %v3989_v36 = vmov 0.0  }
  0x15   : > { %3687 = vmatpush3.msk.msra.mxu0 %vm445_vm0, %v340_v0  ;;  %s4101_s13 = scalar_lea.vmem %s5698_s0, %s3467_s26  ;;  %712 = vst.msk [vmem:[#allocation2 + $0x20] sm:$0xff] %vm706_vm2, %v3989_v36  ;;  %707 = vst.msk [vmem:[#allocation2] sm:$0xff] %vm706_vm2, %v3989_v36  ;;  %2220 = vmatprep.subr.mxu1 %v3989_v36  ;;  %v2060_v39 = vld [vmem:[%s5701_s3 + $0x78] sm:$0xff]  ;;  %v2059_v40 = vld [vmem:[%s5701_s3 + $0x70] sm:$0xff]  ;;  %vm1019_vm4 = vcmask 1048064   ;;  %vm3320_vm5 = vcmask 31744  }
  0x16   : > { %3688 = vmatprep.subr.mxu0 %v339_v1  ;;  %v305_v4 = vld [vmem:[%s4101_s13] sm:$0xff]  ;;  %v306_v5 = vld [vmem:[%s4101_s13 + $0x8] sm:$0xff]  ;;  %v307_v6 = vld [vmem:[%s4101_s13 + $0x10] sm:$0xff]  ;;  %713 = vst.msk [vmem:[#allocation2 + $0x28] sm:$0x3] %vm709_vm3, %v3989_v36  ;;  %2221 = vmatpush1.msra.mxu1 %v2060_v39  ;;  %s3567_s26 = sshll.u32 %s4058_s9, 4 }
  0x17   : > { %3689 = vmatpush3.msra.mxu0 %v339_v1  ;;  %3694 = vmatprep.mubr.msk.f32.mxu0 %vm348_vm1, %v305_v4  ;;  %v308_v7 = vld [vmem:[%s4101_s13 + $0x18] sm:$0xff]  ;;  %v309_v8 = vld [vmem:[%s4101_s13 + $0x20] sm:$0xff]  ;;  %v310_v9 = vld [vmem:[%s4101_s13 + $0x28] sm:$0xff]  ;;  %708 = vst.msk [vmem:[#allocation2 + $0x8] sm:$0xff] %vm706_vm2, %v3989_v36  ;;  %vm3392_vm6 = vcmask 24576   ;;  %s3405_s19 = scalar_lea.hbm %s5706_s8, %s3567_s26  ;;  %s3927_s21 = scalar_lea.vmem %s3408_s12, 16 }
  0x18   : > { %3690 = vmatprep.subr.mxu0 %v338_v2  ;;  %v311_v10 = vld [vmem:[%s4101_s13 + $0x30] sm:$0xff]  ;;  %v312_v11 = vld [vmem:[%s4101_s13 + $0x38] sm:$0xff]  ;;  %v313_v12 = vld [vmem:[%s4101_s13 + $0x40] sm:$0xff]  ;;  %710 = vst.msk [vmem:[#allocation2 + $0x10] sm:$0x3] %vm709_vm3, %v3989_v36  ;;  %2222 = vmatprep.subr.mxu1 %v3989_v36  ;;  %p3928_p11 = scmp.ne.s32.totalorder %s3408_s12, %s3927_s21 }
  0x19   : > { %3691 = vmatpush3.msra.mxu0 %v338_v2  ;;  %v314_v13 = vld [vmem:[%s4101_s13 + $0x48] sm:$0xff]  ;;  %v315_v14 = vld [vmem:[%s4101_s13 + $0x50] sm:$0xff]  ;;  %v316_v15 = vld [vmem:[%s4101_s13 + $0x58] sm:$0xff]  ;;  %711 = vst.msk [vmem:[#allocation2 + $0x18] sm:$0xff] %vm706_vm2, %v3989_v36  ;;  %2223 = vmatpush1.msra.mxu1 %v2059_v40 }
  0x1a   : > { %3692 = vmatprep.subr.mxu0 %v337_v3  ;;  %v317_v16 = vld [vmem:[%s4101_s13 + $0x60] sm:$0xff]  ;;  %v318_v17 = vld [vmem:[%s4101_s13 + $0x68] sm:$0xff]  ;;  %v319_v18 = vld [vmem:[%s4101_s13 + $0x70] sm:$0xff]  ;;  %714 = vst.msk [vmem:[#allocation2 + $0x30] sm:$0xff] %vm706_vm2, %v3989_v36  ;;  %2224 = vmatprep.subr.mxu1 %v3989_v36  ;;  %p3929_p12 = pnand %p3928_p11, %p4075_p5 }
  0x1b   : > { %3693 = vmatpush3.msra.mxu0 %v337_v3  ;;  %v320_v19 = vld [vmem:[%s4101_s13 + $0x78] sm:$0xff]  ;;  %v321_v20 = vld [vmem:[%s4101_s13 + $0x80] sm:$0xff]  ;;  %v322_v21 = vld [vmem:[%s4101_s13 + $0x88] sm:$0xff]  ;;  %715 = vst.msk [vmem:[#allocation2 + $0x38] sm:$0xff] %vm706_vm2, %v3989_v36 }
  0x1c   : > { %3695 = vmatmul.mubr.msk.f32.vlgmr.msra.gmra.mxu0 %vm348_vm1, %v306_v5  ;;  %v323_v22 = vld [vmem:[%s4101_s13 + $0x90] sm:$0xff]  ;;  %v324_v23 = vld [vmem:[%s4101_s13 + $0x98] sm:$0xff]  ;;  %v325_v24 = vld [vmem:[%s4101_s13 + $0xa0] sm:$0xff]  ;;  %716 = vst.msk [vmem:[#allocation2 + $0x40] sm:$0x3] %vm709_vm3, %v3989_v36  ;;  %2445 = vmatprep.subr.mxu0 %v3989_v36  ;;  %p3930_p13 = pneg %p3929_p12 }
  0x1d   : > { %3697 = vmatprep.mubr.msk.f32.mxu0 %vm348_vm1, %v307_v6  ;;  %v326_v25 = vld [vmem:[%s4101_s13 + $0xa8] sm:$0xff]  ;;  %v327_v26 = vld [vmem:[%s4101_s13 + $0xb0] sm:$0xff]  ;;  %v328_v27 = vld [vmem:[%s4101_s13 + $0xb8] sm:$0xff]  ;;  %717 = vst.msk [vmem:[#allocation2 + $0x48] sm:$0xff] %vm706_vm2, %v3989_v36 }
  0x1e   : > { %v329_v28 = vld [vmem:[%s4101_s13 + $0xc0] sm:$0xff]  ;;  %v330_v29 = vld [vmem:[%s4101_s13 + $0xc8] sm:$0xff]  ;;  %v331_v30 = vld [vmem:[%s4101_s13 + $0xd0] sm:$0xff]  ;;  %718 = vst.msk [vmem:[#allocation2 + $0x50] sm:$0xff] %vm706_vm2, %v3989_v36 }
  0x1f   : > { %v332_v31 = vld [vmem:[%s4101_s13 + $0xd8] sm:$0xff]  ;;  %v333_v32 = vld [vmem:[%s4101_s13 + $0xe0] sm:$0xff]  ;;  %v334_v33 = vld [vmem:[%s4101_s13 + $0xe8] sm:$0xff]  ;;  %719 = vst.msk [vmem:[#allocation2 + $0x58] sm:$0x3] %vm709_vm3, %v3989_v36 }
  0x20   : > { %3698 = vmatmul.mubr.msk.f32.gmra.mxu0 %vm348_vm1, %v308_v7  ;;  %v335_v34 = vld [vmem:[%s4101_s13 + $0xf0] sm:$0xff]  ;;  %v336_v35 = vld [vmem:[%s4101_s13 + $0xf8] sm:$0xff]  ;;  %720 = vst.msk [vmem:[#allocation2 + $0x60] sm:$0xff] %vm706_vm2, %v3989_v36  ;;  %721 = vst.msk [vmem:[#allocation2 + $0x68] sm:$0xff] %vm706_vm2, %v3989_v36 }
  0x21   : > { %3700 = vmatprep.mubr.msk.f32.mxu0 %vm348_vm1, %v309_v8  ;;  %722 = vst.msk [vmem:[#allocation2 + $0x70] sm:$0x3] %vm709_vm3, %v3989_v36  ;;  %725 = vst.msk [vmem:[#allocation2 + $0x88] sm:$0x3] %vm709_vm3, %v3989_v36  ;;  %v860_v37 = vld [vmem:[#allocation2 + $0x9] sm:$0xff]  ;;  %v859_v38 = vld [vmem:[#allocation2 + $0x1] sm:$0xff] }
  0x22   : > { %723 = vst.msk [vmem:[#allocation2 + $0x78] sm:$0xff] %vm706_vm2, %v3989_v36  ;;  %724 = vst.msk [vmem:[#allocation2 + $0x80] sm:$0xff] %vm706_vm2, %v3989_v36  ;;  %925 = vrot.lane.b32.xlu1 %v860_v37, %s3990_s17  ;;  %923 = vrot.lane.b32.xlu0 %v859_v38, %s3990_s17  ;;  %v2058_v41 = vld [vmem:[%s5701_s3 + $0x68] sm:$0xff]  ;;  %v2057_v42 = vld [vmem:[%s5701_s3 + $0x60] sm:$0xff] }
  0x23   : > { %726 = vst.msk [vmem:[#allocation2 + $0x90] sm:$0xff] %vm706_vm2, %v3989_v36  ;;  %727 = vst.msk [vmem:[#allocation2 + $0x98] sm:$0xff] %vm706_vm2, %v3989_v36  ;;  %2225 = vmatpush1.msra.mxu1 %v2058_v41  ;;  %v2056_v43 = vld [vmem:[%s5701_s3 + $0x58] sm:$0xff]  ;;  %v2055_v44 = vld [vmem:[%s5701_s3 + $0x50] sm:$0xff] }
  0x24   : > { %3701 = vmatmul.mubr.msk.f32.gmra.mxu0 %vm348_vm1, %v310_v9  ;;  %728 = vst.msk [vmem:[#allocation2 + $0xa0] sm:$0x3] %vm709_vm3, %v3989_v36  ;;  %731 = vst.msk [vmem:[#allocation2 + $0xb8] sm:$0x3] %vm709_vm3, %v3989_v36  ;;  %2226 = vmatprep.subr.mxu1 %v3989_v36  ;;  %v2054_v45 = vld [vmem:[%s5701_s3 + $0x48] sm:$0xff]  ;;  %v2053_v46 = vld [vmem:[%s5701_s3 + $0x40] sm:$0xff] }
  0x25   : > { %3703 = vmatprep.mubr.msk.f32.mxu0 %vm348_vm1, %v311_v10  ;;  %729 = vst.msk [vmem:[#allocation2 + $0xa8] sm:$0xff] %vm706_vm2, %v3989_v36  ;;  %730 = vst.msk [vmem:[#allocation2 + $0xb0] sm:$0xff] %vm706_vm2, %v3989_v36  ;;  %2227 = vmatpush1.msra.mxu1 %v2057_v42  ;;  %v2052_v47 = vld [vmem:[%s5701_s3 + $0x38] sm:$0xff]  ;;  %v2051_v49 = vld [vmem:[%s5701_s3 + $0x30] sm:$0xff] }
  0x26   : > { %732 = vst.msk [vmem:[#allocation2 + $0xc0] sm:$0xff] %vm706_vm2, %v3989_v36  ;;  %733 = vst.msk [vmem:[#allocation2 + $0xc8] sm:$0xff] %vm706_vm2, %v3989_v36  ;;  %2228 = vmatprep.subr.mxu1 %v3989_v36  ;;  %v2092_v48 = vld [vmem:[%s5701_s3 + $0x178] sm:$0xff]  ;;  %v2091_v50 = vld [vmem:[%s5701_s3 + $0x170] sm:$0xff] }
  0x27   : > { %734 = vst.msk [vmem:[#allocation2 + $0xd0] sm:$0x3] %vm709_vm3, %v3989_v36  ;;  %737 = vst.msk [vmem:[#allocation2 + $0xe8] sm:$0x3] %vm709_vm3, %v3989_v36  ;;  %2229 = vmatpush1.msra.mxu1 %v2056_v43  ;;  %2446 = vmatpush1.msra.mxu0 %v2092_v48  ;;  %v2050_v51 = vld [vmem:[%s5701_s3 + $0x28] sm:$0xff]  ;;  %v2049_v53 = vld [vmem:[%s5701_s3 + $0x20] sm:$0xff] }
  0x28   : > { %3704 = vmatmul.mubr.msk.f32.gmra.mxu0 %vm348_vm1, %v312_v11  ;;  %735 = vst.msk [vmem:[#allocation2 + $0xd8] sm:$0xff] %vm706_vm2, %v3989_v36  ;;  %736 = vst.msk [vmem:[#allocation2 + $0xe0] sm:$0xff] %vm706_vm2, %v3989_v36  ;;  %2230 = vmatprep.subr.mxu1 %v3989_v36  ;;  %v2090_v52 = vld [vmem:[%s5701_s3 + $0x168] sm:$0xff]  ;;  %v2089_v54 = vld [vmem:[%s5701_s3 + $0x160] sm:$0xff] }
  0x29   : > { %3706 = vmatprep.mubr.msk.f32.mxu0 %vm348_vm1, %v313_v12  ;;  %738 = vst.msk [vmem:[#allocation2 + $0xf0] sm:$0xff] %vm706_vm2, %v3989_v36  ;;  %739 = vst.msk [vmem:[#allocation2 + $0xf8] sm:$0xff] %vm706_vm2, %v3989_v36  ;;  %2231 = vmatpush1.msra.mxu1 %v2055_v44  ;;  %v2048_v55 = vld [vmem:[%s5701_s3 + $0x18] sm:$0xff]  ;;  %v2047_v57 = vld [vmem:[%s5701_s3 + $0x10] sm:$0xff] }
  0x2a   : > { %740 = vst.msk [vmem:[#allocation2 + $0x100] sm:$0x3] %vm709_vm3, %v3989_v36  ;;  %743 = vst.msk [vmem:[#allocation2 + $0x118] sm:$0x3] %vm709_vm3, %v3989_v36  ;;  %2232 = vmatprep.subr.mxu1 %v3989_v36  ;;  %2447 = vmatprep.subr.mxu0 %v3989_v36  ;;  %v2088_v56 = vld [vmem:[%s5701_s3 + $0x158] sm:$0xff]  ;;  %v2087_v58 = vld [vmem:[%s5701_s3 + $0x150] sm:$0xff] }
  0x2b   : > { %741 = vst.msk [vmem:[#allocation2 + $0x108] sm:$0xff] %vm706_vm2, %v3989_v36  ;;  %742 = vst.msk [vmem:[#allocation2 + $0x110] sm:$0xff] %vm706_vm2, %v3989_v36  ;;  %2233 = vmatpush1.msra.mxu1 %v2054_v45  ;;  %2448 = vmatpush1.msra.mxu0 %v2091_v50  ;;  %v2046_v59 = vld [vmem:[%s5701_s3 + $0x8] sm:$0xff]  ;;  %v2045_v61 = vld [vmem:[%s5701_s3] sm:$0xff] }
  0x2c   : > { %3707 = vmatmul.mubr.msk.f32.gmra.mxu0 %vm348_vm1, %v314_v13  ;;  %744 = vst.msk [vmem:[#allocation2 + $0x120] sm:$0xff] %vm706_vm2, %v3989_v36  ;;  %745 = vst.msk [vmem:[#allocation2 + $0x128] sm:$0xff] %vm706_vm2, %v3989_v36  ;;  %2234 = vmatprep.subr.mxu1 %v3989_v36  ;;  %v2086_v60 = vld [vmem:[%s5701_s3 + $0x148] sm:$0xff]  ;;  %v2085_v62 = vld [vmem:[%s5701_s3 + $0x140] sm:$0xff] }
  0x2d   : > { %3709 = vmatprep.mubr.msk.f32.mxu0 %vm348_vm1, %v315_v14  ;;  %746 = vst.msk [vmem:[#allocation2 + $0x130] sm:$0x3] %vm709_vm3, %v3989_v36  ;;  %749 = vst.msk [vmem:[#allocation2 + $0x148] sm:$0x3] %vm709_vm3, %v3989_v36  ;;  %2235 = vmatpush1.msra.mxu1 %v2053_v46  ;;  %v2076_v63 = vld [vmem:[%s5701_s3 + $0xf8] sm:$0xff]  ;;  %v2075_v1 = vld [vmem:[%s5701_s3 + $0xf0] sm:$0xff] }
  0x2e   : > { %747 = vst.msk [vmem:[#allocation2 + $0x138] sm:$0xff] %vm706_vm2, %v3989_v36  ;;  %748 = vst.msk [vmem:[#allocation2 + $0x140] sm:$0xff] %vm706_vm2, %v3989_v36  ;;  %2236 = vmatprep.subr.mxu1 %v3989_v36  ;;  %2449 = vmatprep.subr.mxu0 %v3989_v36  ;;  %v2084_v0 = vld [vmem:[%s5701_s3 + $0x138] sm:$0xff]  ;;  %v2083_v2 = vld [vmem:[%s5701_s3 + $0x130] sm:$0xff] }
  0x2f   : > { %750 = vst.msk [vmem:[#allocation2 + $0x150] sm:$0xff] %vm706_vm2, %v3989_v36  ;;  %751 = vst.msk [vmem:[#allocation2 + $0x158] sm:$0xff] %vm706_vm2, %v3989_v36  ;;  %2237 = vmatpush1.msra.mxu1 %v2052_v47  ;;  %2450 = vmatpush1.msra.mxu0 %v2090_v52  ;;  %v2074_v3 = vld [vmem:[%s5701_s3 + $0xe8] sm:$0xff]  ;;  %v2073_v5 = vld [vmem:[%s5701_s3 + $0xe0] sm:$0xff] }
  0x30   : > { %3710 = vmatmul.mubr.msk.f32.gmra.mxu0 %vm348_vm1, %v316_v15  ;;  %752 = vst.msk [vmem:[#allocation2 + $0x160] sm:$0x3] %vm709_vm3, %v3989_v36  ;;  %755 = vst.msk [vmem:[#allocation2 + $0x178] sm:$0x3] %vm709_vm3, %v3989_v36  ;;  %2238 = vmatprep.subr.mxu1 %v3989_v36  ;;  %v2082_v4 = vld [vmem:[%s5701_s3 + $0x128] sm:$0xff]  ;;  %v2081_v6 = vld [vmem:[%s5701_s3 + $0x120] sm:$0xff] }
  0x31   : > { %3712 = vmatprep.mubr.msk.f32.mxu0 %vm348_vm1, %v317_v16  ;;  %753 = vst.msk [vmem:[#allocation2 + $0x168] sm:$0xff] %vm706_vm2, %v3989_v36  ;;  %754 = vst.msk [vmem:[#allocation2 + $0x170] sm:$0xff] %vm706_vm2, %v3989_v36  ;;  %2239 = vmatpush1.msra.mxu1 %v2051_v49  ;;  %v2072_v7 = vld [vmem:[%s5701_s3 + $0xd8] sm:$0xff]  ;;  %v2071_v9 = vld [vmem:[%s5701_s3 + $0xd0] sm:$0xff] }
  0x32   : > { %756 = vst.msk [vmem:[#allocation2 + $0x180] sm:$0xff] %vm706_vm2, %v3989_v36  ;;  %757 = vst.msk [vmem:[#allocation2 + $0x188] sm:$0xff] %vm706_vm2, %v3989_v36  ;;  %2240 = vmatprep.subr.mxu1 %v3989_v36  ;;  %2451 = vmatprep.subr.mxu0 %v3989_v36  ;;  %v2080_v8 = vld [vmem:[%s5701_s3 + $0x118] sm:$0xff]  ;;  %v2079_v10 = vld [vmem:[%s5701_s3 + $0x110] sm:$0xff] }
  0x33   : > { %758 = vst.msk [vmem:[#allocation2 + $0x190] sm:$0x3] %vm709_vm3, %v3989_v36  ;;  %761 = vst.msk [vmem:[#allocation2 + $0x1a8] sm:$0x3] %vm709_vm3, %v3989_v36  ;;  %2241 = vmatpush1.msra.mxu1 %v2050_v51  ;;  %2452 = vmatpush1.msra.mxu0 %v2089_v54  ;;  %v2070_v11 = vld [vmem:[%s5701_s3 + $0xc8] sm:$0xff]  ;;  %v2069_v13 = vld [vmem:[%s5701_s3 + $0xc0] sm:$0xff] }
  0x34   : > { %3713 = vmatmul.mubr.msk.f32.gmra.mxu0 %vm348_vm1, %v318_v17  ;;  %759 = vst.msk [vmem:[#allocation2 + $0x198] sm:$0xff] %vm706_vm2, %v3989_v36  ;;  %760 = vst.msk [vmem:[#allocation2 + $0x1a0] sm:$0xff] %vm706_vm2, %v3989_v36  ;;  %2242 = vmatprep.subr.mxu1 %v3989_v36  ;;  %v2078_v12 = vld [vmem:[%s5701_s3 + $0x108] sm:$0xff]  ;;  %v2077_v14 = vld [vmem:[%s5701_s3 + $0x100] sm:$0xff] }
  0x35   : > { %3715 = vmatprep.mubr.msk.f32.mxu0 %vm348_vm1, %v319_v18  ;;  %2243 = vmatpush1.msra.mxu1 %v2049_v53  ;;  %v796_v15 = vld [vmem:[#allocation2 + $0x8] sm:$0xff]  ;;  %v2068_v17 = vld [vmem:[%s5701_s3 + $0xb8] sm:$0xff]  ;;  %v2063_v41 = vld [vmem:[%s5701_s3 + $0x90] sm:$0xff] }
  0x36   : > { %2244 = vmatprep.subr.mxu1 %v3989_v36  ;;  %2453 = vmatprep.subr.mxu0 %v3989_v36  ;;  %828 = vst.msk [vmem:[#allocation3 + $0x28] sm:$0xff] %vm706_vm2, %v796_v15  ;;  %v2108_v18 = vld [vmem:[%s5701_s3 + $0x1f8] sm:$0xff]  ;;  %v2103_v42 = vld [vmem:[%s5701_s3 + $0x1d0] sm:$0xff]  ;;  %v2062_v47 = vld [vmem:[%s5701_s3 + $0x88] sm:$0xff] }
  0x37   : > { %2245 = vmatpush1.msra.mxu1 %v2048_v55  ;;  %2454 = vmatpush1.msra.mxu0 %v2088_v56  ;;  %v2104_v37 = vld [vmem:[%s5701_s3 + $0x1d8] sm:$0xff]  ;;  %v1053_v43 = vld [vmem:[#allocation2 + $0xa] sm:$0xff]  ;;  %v2061_v52 = vld [vmem:[%s5701_s3 + $0x80] sm:$0xff] }
  0x38   : > { %3716 = vmatmul.mubr.msk.f32.gmra.mxu0 %vm348_vm1, %v320_v19  ;;  %2246 = vmatprep.subr.mxu1 %v3989_v36  ;;  %v795_v19 = vld [vmem:[#allocation2] sm:$0xff]  ;;  %1085 = vst.msk [vmem:[#allocation3 + $0x30] sm:$0xff] %vm706_vm2, %v1053_v43  ;;  %v2102_v48 = vld [vmem:[%s5701_s3 + $0x1c8] sm:$0xff] }
  0x39   : > { %3718 = vmatprep.mubr.msk.f32.mxu0 %vm348_vm1, %v321_v20  ;;  %2455 = vmatprep.subr.mxu0 %v3989_v36  ;;  %827 = vst.msk [vmem:[#allocation3] sm:$0xff] %vm706_vm2, %v795_v19  ;;  %v2101_v53 = vld [vmem:[%s5701_s3 + $0x1c0] sm:$0xff] }
  0x3a   : > { %2247 = vmatpush1.msra.mxu1 %v2047_v57  ;;  %2456 = vmatpush1.msra.mxu0 %v2087_v58 }
  0x3b   : > { %2248 = vmatprep.subr.mxu1 %v3989_v36  ;;  %2457 = vmatprep.subr.mxu0 %v3989_v36 }
  0x3c   : > { %3719 = vmatmul.mubr.msk.f32.gmra.mxu0 %vm348_vm1, %v322_v21  ;;  %2249 = vmatpush1.msra.mxu1 %v2046_v59  ;;  %v2067_v21 = vld [vmem:[%s5701_s3 + $0xb0] sm:$0xff]  ;;  %v2100_v59 = vld [vmem:[%s5701_s3 + $0x1b8] sm:$0xff] }
  0x3d   : > { %3721 = vmatprep.mubr.msk.f32.mxu0 %vm348_vm1, %v323_v22  ;;  %2458 = vmatpush1.msra.mxu0 %v2086_v60  ;;  %v2107_v22 = vld [vmem:[%s5701_s3 + $0x1f0] sm:$0xff] }
  0x3e   : > { %2250 = vmatprep.subr.mxu1 %v3989_v36  ;;  %2459 = vmatprep.subr.mxu0 %v3989_v36 }
  0x3f   : > { %2251 = vmatpush1.msra.mxu1 %v2045_v61  ;;  %2460 = vmatpush1.msra.mxu0 %v2085_v62 }
  0x40   : > { %3722 = vmatmul.mubr.msk.f32.gmra.mxu0 %vm348_vm1, %v324_v23  ;;  %2252 = vmatprep.subr.mxu1 %v3989_v36  ;;  %v4459_v23 = vld [vmem:[%s5700_s2] ss:$0 sm:$0xff] }
  0x41   : > { %3724 = vmatprep.mubr.msk.f32.mxu0 %vm348_vm1, %v325_v24  ;;  %2461 = vmatprep.subr.mxu0 %v3989_v36 }
  0x42   : > { %2253 = vmatpush2.msra.mxu1 %v2076_v63  ;;  %2462 = vmatpush1.msra.mxu0 %v2084_v0 }
  0x43   : > { %2254 = vmatprep.subr.mxu1 %v3989_v36  ;;  %2463 = vmatprep.subr.mxu0 %v3989_v36 }
  0x44   : > { %3725 = vmatmul.mubr.msk.f32.gmra.mxu0 %vm348_vm1, %v326_v25  ;;  %2255 = vmatpush2.msra.mxu1 %v2075_v1  ;;  %v2066_v25 = vld [vmem:[%s5701_s3 + $0xa8] sm:$0xff] }
  0x45   : > { %3727 = vmatprep.mubr.msk.f32.mxu0 %vm348_vm1, %v327_v26  ;;  %2464 = vmatpush1.msra.mxu0 %v2083_v2  ;;  %v2106_v26 = vld [vmem:[%s5701_s3 + $0x1e8] sm:$0xff] }
  0x46   : > { %2256 = vmatprep.subr.mxu1 %v3989_v36  ;;  %2465 = vmatprep.subr.mxu0 %v3989_v36 }
  0x47   : > { %2257 = vmatpush2.msra.mxu1 %v2074_v3  ;;  %2466 = vmatpush1.msra.mxu0 %v2082_v4 }
  0x48   : > { %3728 = vmatmul.mubr.msk.f32.gmra.mxu0 %vm348_vm1, %v328_v27  ;;  %2258 = vmatprep.subr.mxu1 %v3989_v36  ;;  %v1052_v27 = vld [vmem:[#allocation2 + $0x2] sm:$0xff] }
  0x49   : > { %3730 = vmatprep.mubr.msk.f32.mxu0 %vm348_vm1, %v329_v28  ;;  %2467 = vmatprep.subr.mxu0 %v3989_v36  ;;  %1084 = vst.msk [vmem:[#allocation3 + $0x8] sm:$0xff] %vm706_vm2, %v1052_v27 }
  0x4a   : > { %2259 = vmatpush2.msra.mxu1 %v2073_v5  ;;  %2468 = vmatpush1.msra.mxu0 %v2081_v6  ;;  %v2099_v5 = vld [vmem:[%s5701_s3 + $0x1b0] sm:$0xff] }
  0x4b   : > { %2260 = vmatprep.subr.mxu1 %v3989_v36  ;;  %2469 = vmatprep.subr.mxu0 %v3989_v36 }
  0x4c   : > { %3731 = vmatmul.mubr.msk.f32.gmra.mxu0 %vm348_vm1, %v330_v29  ;;  %2261 = vmatpush2.msra.mxu1 %v2072_v7 }
  0x4d   : > { %3733 = vmatprep.mubr.msk.f32.mxu0 %vm348_vm1, %v331_v30  ;;  %2470 = vmatpush1.msra.mxu0 %v2080_v8  ;;  %v2065_v30 = vld [vmem:[%s5701_s3 + $0xa0] sm:$0xff] }
  0x4e   : > { %2262 = vmatprep.subr.mxu1 %v3989_v36  ;;  %2471 = vmatprep.subr.mxu0 %v3989_v36 }
  0x4f   : > { %2263 = vmatpush2.msra.mxu1 %v2071_v9  ;;  %2472 = vmatpush1.msra.mxu0 %v2079_v10  ;;  %v2098_v9 = vld [vmem:[%s5701_s3 + $0x1a8] sm:$0xff] }
  0x50   : > { %3734 = vmatmul.mubr.msk.f32.gmra.mxu0 %vm348_vm1, %v332_v31  ;;  %2264 = vmatprep.subr.mxu1 %v3989_v36  ;;  %v2105_v31 = vld [vmem:[%s5701_s3 + $0x1e0] sm:$0xff] }
  0x51   : > { %3736 = vmatprep.mubr.msk.f32.mxu0 %vm348_vm1, %v333_v32  ;;  %2473 = vmatprep.subr.mxu0 %v3989_v36 }
  0x52   : > { %2265 = vmatpush2.msra.mxu1 %v2070_v11  ;;  %2474 = vmatpush1.msra.mxu0 %v2078_v12 }
  0x53   : > { %2266 = vmatprep.subr.mxu1 %v3989_v36  ;;  %2475 = vmatprep.subr.mxu0 %v3989_v36 }
  0x54   : > { %3737 = vmatmul.mubr.msk.f32.gmra.mxu0 %vm348_vm1, %v334_v33  ;;  %2267 = vmatpush2.msra.mxu1 %v2069_v13 }
  0x55   : > { %3739 = vmatprep.mubr.msk.f32.mxu0 %vm348_vm1, %v335_v34  ;;  %2476 = vmatpush1.msra.mxu0 %v2077_v14 }
  0x56   : > { %2268 = vmatprep.subr.mxu1 %v3989_v36  ;;  %2477 = vmatprep.subr.mxu0 %v3989_v36 }
  0x57   : > { %2269 = vmatpush2.msra.mxu1 %v2068_v17  ;;  %2478 = vmatpush2.msra.mxu0 %v2108_v18 }
  0x58   : > { %3740 = vmatmul.mubr.msk.f32.gmra.mxu0 %vm348_vm1, %v336_v35  ;;  %2270 = vmatprep.subr.mxu1 %v3989_v36  ;;  %v2064_v35 = vld [vmem:[%s5701_s3 + $0x98] sm:$0xff] }
  0x59   : > { %2479 = vmatprep.subr.mxu0 %v3989_v36  ;;  %2271 = vmatpush2.msra.mxu1 %v2067_v21 }
  0x5a   : > { %2480 = vmatpush2.msra.mxu0 %v2107_v22  ;;  %2272 = vmatprep.subr.mxu1 %v3989_v36 }
  0x5b   : > { %2481 = vmatprep.subr.mxu0 %v3989_v36  ;;  %2273 = vmatpush2.msra.mxu1 %v2066_v25 }
  0x5c   : > { %2482 = vmatpush2.msra.mxu0 %v2106_v26  ;;  %2274 = vmatprep.subr.mxu1 %v3989_v36 }
  0x5d   : > { %2483 = vmatprep.subr.mxu0 %v3989_v36  ;;  %2275 = vmatpush2.msra.mxu1 %v2065_v30 }
  0x5e   : > { %2484 = vmatpush2.msra.mxu0 %v2105_v31  ;;  %2276 = vmatprep.subr.mxu1 %v3989_v36 }
  0x5f   : > { %2485 = vmatprep.subr.mxu0 %v3989_v36  ;;  %2277 = vmatpush2.msra.mxu1 %v2064_v35 }
  0x60   : > { %2486 = vmatpush2.msra.mxu0 %v2104_v37  ;;  %2278 = vmatprep.subr.mxu1 %v3989_v36  ;;  %v2095_v37 = vld [vmem:[%s5701_s3 + $0x190] sm:$0xff] }
  0x61   : > { %2487 = vmatprep.subr.mxu0 %v3989_v36  ;;  %2279 = vmatpush2.msra.mxu1 %v2063_v41 }
  0x62   : > { %2488 = vmatpush2.msra.mxu0 %v2103_v42  ;;  %2280 = vmatprep.subr.mxu1 %v3989_v36 }
  0x63   : > { %2489 = vmatprep.subr.mxu0 %v3989_v36  ;;  %2281 = vmatpush2.msra.mxu1 %v2062_v47 }
  0x64   : > { %2490 = vmatpush2.msra.mxu0 %v2102_v48  ;;  %2282 = vmatprep.subr.mxu1 %v3989_v36 }
  0x65   : > { %2491 = vmatprep.subr.mxu0 %v3989_v36  ;;  %2283 = vmatpush2.msra.mxu1 %v2061_v52 }
  0x66   : > { %2492 = vmatpush2.msra.mxu0 %v2101_v53 }
  0x67   : > { %2493 = vmatprep.subr.mxu0 %v3989_v36 }
  0x68   : > { %2494 = vmatpush2.msra.mxu0 %v2100_v59 }
  0x69   : > { %2495 = vmatprep.subr.mxu0 %v3989_v36 }
  0x6a   : > { %2496 = vmatpush2.msra.mxu0 %v2099_v5 }
  0x6b   : > { %2497 = vmatprep.subr.mxu0 %v3989_v36 }
  0x6c   : > { %2498 = vmatpush2.msra.mxu0 %v2098_v9 }
  0x6d   : > { %2499 = vmatprep.subr.mxu0 %v3989_v36 }
  0x94   : > { %v926_v16 = vpop.permute.xlu1 %925  ;;  %v924_v20 = vpop.permute.xlu0 %923 }
  0x95   : > { %1021 = vst.msk [vmem:[#allocation3 + $0x28] sm:$0xff] %vm1019_vm4, %v926_v16  ;;  %1020 = vst.msk [vmem:[#allocation3] sm:$0xff] %vm1019_vm4, %v924_v20  ;;  %v2097_v20 = vld [vmem:[%s5701_s3 + $0x1a0] sm:$0xff] }
  0x96   : > { %2500 = vmatpush2.msra.mxu0 %v2097_v20 }
  0x97   : > { %2501 = vmatprep.subr.mxu0 %v3989_v36 }
  0xdc   : > { %v3696_v24 = vpop.f32.mrf.mxu0 }
  0xdd   : > { %v521_v28 = vadd.f32 %v3696_v24, %v4459_v23  ;;  %v2096_v24 = vld [vmem:[%s5701_s3 + $0x198] sm:$0xff] }
  0xde   : > { %v515_v29 = vpop.f32.mrf.mxu0  ;;  %2502 = vmatpush2.msra.mxu0 %v2096_v24 }
  0xdf   : > { %v675_v32 = vmax.f32 %v521_v28, 0.0  ;;  %v516_v33 = vadd.f32 %v4459_v23, %v515_v29  ;;  %2503 = vmatprep.subr.mxu0 %v3989_v36 }
  0xe0   : > { %v3699_v34 = vpop.f32.mrf.mxu0  ;;  %2504 = vmatpush2.msra.mxu0 %v2095_v37 }
  0xe1   : > { %764 = vst.msk [vmem:[#allocation2 + $0x21] sm:$0xff] %vm706_vm2, %v675_v32  ;;  %v674_v38 = vmax.f32 %v516_v33, 0.0  ;;  %v531_v39 = vadd.f32 %v3699_v34, %v4459_v23  ;;  %2505 = vmatprep.subr.mxu0 %v3989_v36 }
  0xe2   : > { %v525_v40 = vpop.f32.mrf.mxu0 }
  0xe3   : > { %763 = vst.msk [vmem:[#allocation2 + $0x19] sm:$0xff] %vm706_vm2, %v674_v38  ;;  %v677_v44 = vmax.f32 %v531_v39, 0.0  ;;  %v526_v45 = vadd.f32 %v4459_v23, %v525_v40  ;;  %v2094_v40 = vld [vmem:[%s5701_s3 + $0x188] sm:$0xff] }
  0xe4   : > { %v3702_v46 = vpop.f32.mrf.mxu0  ;;  %2506 = vmatpush2.msra.mxu0 %v2094_v40 }
  0xe5   : > { %766 = vst.msk [vmem:[#allocation2 + $0x39] sm:$0xff] %vm706_vm2, %v677_v44  ;;  %v676_v49 = vmax.f32 %v526_v45, 0.0  ;;  %v541_v50 = vadd.f32 %v3702_v46, %v4459_v23  ;;  %2507 = vmatprep.subr.mxu0 %v3989_v36 }
  0xe6   : > { %v535_v51 = vpop.f32.mrf.mxu0 }
  0xe7   : > { %765 = vst.msk [vmem:[#allocation2 + $0x31] sm:$0xff] %vm706_vm2, %v676_v49  ;;  %v679_v54 = vmax.f32 %v541_v50, 0.0  ;;  %v536_v55 = vadd.f32 %v4459_v23, %v535_v51  ;;  %v2093_v50 = vld [vmem:[%s5701_s3 + $0x180] sm:$0xff] }
  0xe8   : > { %v862_v56 = vld [vmem:[#allocation2 + $0x21] sm:$0xff]  ;;  %v3705_v58 = vpop.f32.mrf.mxu0  ;;  %2508 = vmatpush2.msra.mxu0 %v2093_v50 }
  0xe9   : > { %v1373_v57 = vld [vmem:[#allocation2 + $0x22] sm:$0xff]  ;;  %929 = vrot.lane.b32.xlu1 %v862_v56, %s3990_s17  ;;  %768 = vst.msk [vmem:[#allocation2 + $0x51] sm:$0xff] %vm706_vm2, %v679_v54  ;;  %v678_v60 = vmax.f32 %v536_v55, 0.0  ;;  %v551_v61 = vadd.f32 %v3705_v58, %v4459_v23  ;;  %1341 = vst.msk [vmem:[#allocation3 + $0x38] sm:$0xff] %vm706_vm2, %v862_v56 }
  0xea   : > { %1087 = vst.msk [vmem:[#allocation3 + $0x80] sm:$0xff] %vm706_vm2, %v1373_v57  ;;  %v1116_v62 = vld [vmem:[#allocation2 + $0x18] sm:$0xff]  ;;  %v1117_v63 = vld [vmem:[#allocation2 + $0x20] sm:$0xff]  ;;  %v545_v1 = vpop.f32.mrf.mxu0 }
  0xeb   : > { %v4531_v0 = vld [vmem:[#allocation2 + $0x19] sm:$0xff]  ;;  %1180 = vrot.lane.b32.xlu0 %v1116_v62, %s3990_s17  ;;  %767 = vst.msk [vmem:[#allocation2 + $0x49] sm:$0xff] %vm706_vm2, %v678_v60  ;;  %v681_v3 = vmax.f32 %v551_v61, 0.0  ;;  %v546_v4 = vadd.f32 %v4459_v23, %v545_v1  ;;  %830 = vst.msk [vmem:[#allocation3 + $0x78] sm:$0xff] %vm706_vm2, %v1117_v63 }
  0xec   : > { %v4536_v2 = vld [vmem:[#allocation2 + $0x1a] sm:$0xff]  ;;  %829 = vst.msk [vmem:[#allocation3 + $0x50] sm:$0xff] %vm706_vm2, %v1116_v62  ;;  %1340 = vst.msk [vmem:[#allocation3 + $0x10] sm:$0xff] %vm706_vm2, %v4531_v0  ;;  %v3708_v8 = vpop.f32.mrf.mxu0 }
  0xed   : > { %v4546_v6 = vld [vmem:[#allocation2 + $0x3a] sm:$0xff]  ;;  %1086 = vst.msk [vmem:[#allocation3 + $0x58] sm:$0xff] %vm706_vm2, %v4536_v2  ;;  %1438 = vrot.lane.b32.xlu1 %v1373_v57, %s3990_s17  ;;  %770 = vst.msk [vmem:[#allocation2 + $0x69] sm:$0xff] %vm706_vm2, %v681_v3  ;;  %v680_v10 = vmax.f32 %v546_v4, 0.0  ;;  %v561_v11 = vadd.f32 %v3708_v8, %v4459_v23 }
  0xee   : > { %v4548_v7 = vld [vmem:[#allocation2 + $0x39] sm:$0xff]  ;;  %1854 = vst.msk [vmem:[#allocation3 + $0x48] sm:$0xff] %vm706_vm2, %v4546_v6  ;;  %v1118_v13 = vld [vmem:[#allocation2 + $0x30] sm:$0xff]  ;;  %v555_v16 = vpop.f32.mrf.mxu0 }
  0xef   : > { %1343 = vst.msk [vmem:[#allocation3 + $0x88] sm:$0xff] %vm706_vm2, %v4548_v7  ;;  %v1057_v12 = vld [vmem:[#allocation2 + $0x3a] sm:$0xff]  ;;  %v4565_v15 = vld [vmem:[#allocation2 + $0x31] sm:$0xff]  ;;  %1695 = vrot.lane.b32.xlu0 %v4548_v7, %s3990_s17  ;;  %769 = vst.msk [vmem:[#allocation2 + $0x61] sm:$0xff] %vm706_vm2, %v680_v10  ;;  %v683_v18 = vmax.f32 %v561_v11, 0.0  ;;  %v556_v19 = vadd.f32 %v4459_v23, %v555_v16 }
  0xf0   : > { %v4563_v14 = vld [vmem:[#allocation2 + $0x38] sm:$0xff]  ;;  %1089 = vst.msk [vmem:[#allocation3 + $0xd0] sm:$0xff] %vm706_vm2, %v1057_v12  ;;  %1597 = vst.msk [vmem:[#allocation3 + $0x18] sm:$0xff] %vm706_vm2, %v1118_v13  ;;  %v3711_v22 = vpop.f32.mrf.mxu0 }
  0xf1   : > { %v4571_v17 = vld [vmem:[#allocation2 + $0x32] sm:$0xff]  ;;  %1598 = vst.msk [vmem:[#allocation3 + $0x40] sm:$0xff] %vm706_vm2, %v4563_v14  ;;  %832 = vst.msk [vmem:[#allocation3 + $0xc8] sm:$0xff] %vm706_vm2, %v4563_v14  ;;  %1182 = vrot.lane.b32.xlu1 %v1117_v63, %s3990_s17  ;;  %v682_v25 = vmax.f32 %v556_v19, 0.0  ;;  %v571_v26 = vadd.f32 %v3711_v22, %v4459_v23 }
  0xf2   : > { %831 = vst.msk [vmem:[#allocation3 + $0xa0] sm:$0xff] %vm706_vm2, %v1118_v13  ;;  %1342 = vst.msk [vmem:[#allocation3 + $0x60] sm:$0xff] %vm706_vm2, %v4565_v15  ;;  %v1821_v21 = vld [vmem:[#allocation2 + $0x32] sm:$0xff]  ;;  %v4596_v30 = vld [vmem:[#allocation2 + $0x48] sm:$0xff]  ;;  %v565_v32 = vpop.f32.mrf.mxu0 }
  0xf3   : > { %1088 = vst.msk [vmem:[#allocation3 + $0xa8] sm:$0xff] %vm706_vm2, %v4571_v17  ;;  %1853 = vst.msk [vmem:[#allocation3 + $0x20] sm:$0xff] %vm706_vm2, %v1821_v21  ;;  %v1313_v27 = vld [vmem:[#allocation2 + $0x51] sm:$0xff]  ;;  %1184 = vrot.lane.b32.xlu0 %v1118_v13, %s3990_s17  ;;  %v685_v34 = vmax.f32 %v571_v26, 0.0  ;;  %v566_v35 = vadd.f32 %v4459_v23, %v565_v32  ;;  %v801_v38 = vld [vmem:[#allocation2 + $0x48] sm:$0xff] }
  0xf4   : > { %772 = vst.msk [vmem:[#allocation2 + $0x81] sm:$0xff] %vm706_vm2, %v683_v18  ;;  %v1059_v28 = vld [vmem:[#allocation2 + $0x52] sm:$0xff]  ;;  %1345 = vst.msk [vmem:[#allocation3 + $0xd8] sm:$0xff] %vm706_vm2, %v1313_v27  ;;  %v4605_v33 = vld [vmem:[#allocation2 + $0x4a] sm:$0xff]  ;;  %v3714_v39 = vpop.f32.mrf.mxu0 }
  0xf5   : > { %v1824_v29 = vld [vmem:[#allocation2 + $0x52] sm:$0xff]  ;;  %1091 = vst.msk [vmem:[#allocation3 + $0x120] sm:$0xff] %vm706_vm2, %v1059_v28  ;;  %771 = vst.msk [vmem:[#allocation2 + $0x79] sm:$0xff] %vm706_vm2, %v682_v25  ;;  %927 = vrot.lane.b32.xlu1 %v4531_v0, %s3990_s17  ;;  %v684_v41 = vmax.f32 %v566_v35, 0.0  ;;  %v581_v42 = vadd.f32 %v3714_v39, %v4459_v23  ;;  %v1312_v43 = vld [vmem:[#allocation2 + $0x49] sm:$0xff] }
  0xf6   : > { %v4598_v31 = vld [vmem:[#allocation2 + $0x50] sm:$0xff]  ;;  %1856 = vst.msk [vmem:[#allocation3 + $0x98] sm:$0xff] %vm706_vm2, %v1824_v29  ;;  %1599 = vst.msk [vmem:[#allocation3 + $0x68] sm:$0xff] %vm706_vm2, %v4596_v30  ;;  %v4629_v46 = vld [vmem:[#allocation2 + $0x68] sm:$0xff]  ;;  %v575_v47 = vpop.f32.mrf.mxu0 }
  0xf7   : > { %1600 = vst.msk [vmem:[#allocation3 + $0x90] sm:$0xff] %vm706_vm2, %v4598_v31  ;;  %834 = vst.msk [vmem:[#allocation3 + $0x118] sm:$0xff] %vm706_vm2, %v4598_v31  ;;  %v1315_v44 = vld [vmem:[#allocation2 + $0x69] sm:$0xff]  ;;  %1186 = vrot.lane.b32.xlu0 %v4563_v14, %s3990_s17  ;;  %v687_v48 = vmax.f32 %v581_v42, 0.0  ;;  %v576_v49 = vadd.f32 %v4459_v23, %v575_v47  ;;  %v1569_v51 = vld [vmem:[#allocation2 + $0x60] sm:$0xff] }
  0xf8   : > { %1090 = vst.msk [vmem:[#allocation3 + $0xf8] sm:$0xff] %vm706_vm2, %v4605_v33  ;;  %833 = vst.msk [vmem:[#allocation3 + $0xf0] sm:$0xff] %vm706_vm2, %v801_v38  ;;  %v1061_v45 = vld [vmem:[#allocation2 + $0x6a] sm:$0xff]  ;;  %v3717_v52 = vpop.f32.mrf.mxu0  ;;  %v1060_v55 = vld [vmem:[#allocation2 + $0x62] sm:$0xff] }
  0xf9   : > { %774 = vst.msk [vmem:[#allocation2 + $0x99] sm:$0xff] %vm706_vm2, %v685_v34  ;;  %1344 = vst.msk [vmem:[#allocation3 + $0xb0] sm:$0xff] %vm706_vm2, %v1312_v43  ;;  %v804_v53 = vld [vmem:[#allocation2 + $0x68] sm:$0xff]  ;;  %1436 = vrot.lane.b32.xlu1 %v4536_v2, %s3990_s17  ;;  %v686_v36 = vmax.f32 %v576_v49, 0.0  ;;  %v591_v54 = vadd.f32 %v3717_v52, %v4459_v23  ;;  %v4658_v63 = vld [vmem:[#allocation2 + $0x51] sm:$0xff] }
  0xfa   : > { %1347 = vst.msk [vmem:[#allocation3 + $0x128] sm:$0xff] %vm706_vm2, %v1315_v44  ;;  %1093 = vst.msk [vmem:[#allocation3 + $0x170] sm:$0xff] %vm706_vm2, %v1061_v45  ;;  %v1314_v56 = vld [vmem:[#allocation2 + $0x61] sm:$0xff]  ;;  %v585_v58 = vpop.f32.mrf.mxu0  ;;  %v4735_v49 = vld [vmem:[#allocation2 + $0x49] sm:$0xff] }
  0xfb   : > { %773 = vst.msk [vmem:[#allocation2 + $0x91] sm:$0xff] %vm706_vm2, %v684_v41  ;;  %1602 = vst.msk [vmem:[#allocation3 + $0xe0] sm:$0xff] %vm706_vm2, %v4629_v46  ;;  %v1317_v57 = vld [vmem:[#allocation2 + $0x81] sm:$0xff]  ;;  %1693 = vrot.lane.b32.xlu0 %v4565_v15, %s3990_s17  ;;  %v689_v59 = vmax.f32 %v591_v54, 0.0  ;;  %v586_v60 = vadd.f32 %v4459_v23, %v585_v58  ;;  %v4744_v54 = vld [vmem:[#allocation2 + $0x69] sm:$0xff] }
  0xfc   : > { %1601 = vst.msk [vmem:[#allocation3 + $0xb8] sm:$0xff] %vm706_vm2, %v1569_v51  ;;  %835 = vst.msk [vmem:[#allocation3 + $0x140] sm:$0xff] %vm706_vm2, %v1569_v51  ;;  %v1572_v61 = vld [vmem:[#allocation2 + $0x80] sm:$0xff]  ;;  %v1571_v62 = vld [vmem:[#allocation2 + $0x78] sm:$0xff]  ;;  %v3720_v0 = vpop.f32.mrf.mxu0 }
  0xfd   : > { %776 = vst.msk [vmem:[#allocation2 + $0xb1] sm:$0xff] %vm706_vm2, %v687_v48  ;;  %836 = vst.msk [vmem:[#allocation3 + $0x168] sm:$0xff] %vm706_vm2, %v804_v53  ;;  %v1062_v1 = vld [vmem:[#allocation2 + $0x7a] sm:$0xff]  ;;  %933 = vrot.lane.b32.xlu1 %v4548_v7, %s3990_s17  ;;  %v688_v2 = vmax.f32 %v586_v60, 0.0  ;;  %v601_v3 = vadd.f32 %v3720_v0, %v4459_v23  ;;  %v1063_v4 = vld [vmem:[#allocation2 + $0x82] sm:$0xff] }
  0xfe   : > { %1092 = vst.msk [vmem:[#allocation3 + $0x148] sm:$0xff] %vm706_vm2, %v1060_v55  ;;  %1346 = vst.msk [vmem:[#allocation3 + $0x100] sm:$0xff] %vm706_vm2, %v1314_v56  ;;  %v1316_v5 = vld [vmem:[#allocation2 + $0x79] sm:$0xff]  ;;  %v595_v9 = vpop.f32.mrf.mxu0  ;;  %v1823_v60 = vld [vmem:[#allocation2 + $0x4a] sm:$0xff] }
  0xff   : > { %1349 = vst.msk [vmem:[#allocation3 + $0x178] sm:$0xff] %vm706_vm2, %v1317_v57  ;;  %775 = vst.msk [vmem:[#allocation2 + $0xa9] sm:$0xff] %vm706_vm2, %v686_v36  ;;  %1699 = vrot.lane.b32.xlu0 %v4658_v63, %s3990_s17  ;;  %v691_v7 = vmax.f32 %v601_v3, 0.0  ;;  %v596_v10 = vadd.f32 %v4459_v23, %v595_v9 }
 0x100   : > { %1604 = vst.msk [vmem:[#allocation3 + $0x130] sm:$0xff] %vm706_vm2, %v1572_v61  ;;  %1603 = vst.msk [vmem:[#allocation3 + $0x108] sm:$0xff] %vm706_vm2, %v1571_v62  ;;  %v1319_v8 = vld [vmem:[#allocation2 + $0x99] sm:$0xff]  ;;  %v3723_v13 = vpop.f32.mrf.mxu0 }
 0x101   : > { %838 = vst.msk [vmem:[#allocation3 + $0x1b8] sm:$0xff] %vm706_vm2, %v1572_v61  ;;  %837 = vst.msk [vmem:[#allocation3 + $0x190] sm:$0xff] %vm706_vm2, %v1571_v62  ;;  %1442 = vrot.lane.b32.xlu1 %v4546_v6, %s3990_s17  ;;  %v690_v16 = vmax.f32 %v596_v10, 0.0  ;;  %v611_v18 = vadd.f32 %v3723_v13, %v4459_v23  ;;  %v1065_v19 = vld [vmem:[#allocation2 + $0x9a] sm:$0xff]  ;;  %v1826_v13 = vld [vmem:[#allocation2 + $0x6a] sm:$0xff] }
 0x102   : > { %778 = vst.msk [vmem:[#allocation2 + $0xc9] sm:$0xff] %vm706_vm2, %v689_v59  ;;  %1094 = vst.msk [vmem:[#allocation3 + $0x198] sm:$0xff] %vm706_vm2, %v1062_v1  ;;  %v1574_v11 = vld [vmem:[#allocation2 + $0x98] sm:$0xff]  ;;  %v1573_v12 = vld [vmem:[#allocation2 + $0x90] sm:$0xff]  ;;  %v605_v22 = vpop.f32.mrf.mxu0 }
 0x103   : > { %1859 = vst.msk [vmem:[#allocation3 + $0x110] sm:$0xff] %vm706_vm2, %v1062_v1  ;;  %1095 = vst.msk [vmem:[#allocation3 + $0x1c0] sm:$0xff] %vm706_vm2, %v1063_v4  ;;  %v1064_v14 = vld [vmem:[#allocation2 + $0x92] sm:$0xff]  ;;  %1188 = vrot.lane.b32.xlu0 %v4596_v30, %s3990_s17  ;;  %v693_v6 = vmax.f32 %v611_v18, 0.0  ;;  %v606_v24 = vadd.f32 %v4459_v23, %v605_v22 }
 0x104   : > { %1348 = vst.msk [vmem:[#allocation3 + $0x150] sm:$0xff] %vm706_vm2, %v1316_v5  ;;  %1351 = vst.msk [vmem:[#allocation3 + $0x1c8] sm:$0xff] %vm706_vm2, %v1319_v8  ;;  %v1318_v20 = vld [vmem:[#allocation2 + $0x91] sm:$0xff]  ;;  %v3726_v27 = vpop.f32.mrf.mxu0 }
 0x105   : > { %1860 = vst.msk [vmem:[#allocation3 + $0x138] sm:$0xff] %vm706_vm2, %v1063_v4  ;;  %777 = vst.msk [vmem:[#allocation2 + $0xc1] sm:$0xff] %vm706_vm2, %v688_v2  ;;  %v1321_v21 = vld [vmem:[#allocation2 + $0xb1] sm:$0xff]  ;;  %931 = vrot.lane.b32.xlu1 %v4565_v15, %s3990_s17  ;;  %v692_v30 = vmax.f32 %v606_v24, 0.0  ;;  %v621_v32 = vadd.f32 %v3726_v27, %v4459_v23 }
 0x106   : > { %1606 = vst.msk [vmem:[#allocation3 + $0x180] sm:$0xff] %vm706_vm2, %v1574_v11  ;;  %1605 = vst.msk [vmem:[#allocation3 + $0x158] sm:$0xff] %vm706_vm2, %v1573_v12  ;;  %v1576_v25 = vld [vmem:[#allocation2 + $0xb0] sm:$0xff]  ;;  %v1575_v26 = vld [vmem:[#allocation2 + $0xa8] sm:$0xff]  ;;  %v615_v38 = vpop.f32.mrf.mxu0 }
 0x107   : > { %840 = vst.msk [vmem:[#allocation3 + $0x208] sm:$0xff] %vm706_vm2, %v1574_v11  ;;  %839 = vst.msk [vmem:[#allocation3 + $0x1e0] sm:$0xff] %vm706_vm2, %v1573_v12  ;;  %v1066_v29 = vld [vmem:[#allocation2 + $0xaa] sm:$0xff]  ;;  %v1067_v34 = vld [vmem:[#allocation2 + $0xb2] sm:$0xff]  ;;  %1190 = vrot.lane.b32.xlu0 %v4598_v31, %s3990_s17  ;;  %v695_v15 = vmax.f32 %v621_v32, 0.0  ;;  %v616_v39 = vadd.f32 %v4459_v23, %v615_v38 }
 0x108   : > { %780 = vst.msk [vmem:[#allocation2 + $0xe1] sm:$0xff] %vm706_vm2, %v691_v7  ;;  %1096 = vst.msk [vmem:[#allocation3 + $0x1e8] sm:$0xff] %vm706_vm2, %v1064_v14  ;;  %v1320_v35 = vld [vmem:[#allocation2 + $0xa9] sm:$0xff]  ;;  %v3729_v43 = vpop.f32.mrf.mxu0  ;;  %v1377_v5 = vld [vmem:[#allocation2 + $0x52] sm:$0xff] }
 0x109   : > { %1861 = vst.msk [vmem:[#allocation3 + $0x160] sm:$0xff] %vm706_vm2, %v1064_v14  ;;  %1097 = vst.msk [vmem:[#allocation3 + $0x210] sm:$0xff] %vm706_vm2, %v1065_v19  ;;  %v4696_v28 = vld [vmem:[#allocation2 + $0xca] sm:$0xff]  ;;  %1440 = vrot.lane.b32.xlu1 %v4571_v17, %s3990_s17  ;;  %v694_v45 = vmax.f32 %v616_v39, 0.0  ;;  %v631_v47 = vadd.f32 %v3729_v43, %v4459_v23  ;;  %v1825_v12 = vld [vmem:[#allocation2 + $0x62] sm:$0xff] }
 0x10a   : > { %1350 = vst.msk [vmem:[#allocation3 + $0x1a0] sm:$0xff] %vm706_vm2, %v1318_v20  ;;  %1353 = vst.msk [vmem:[#allocation3 + $0x218] sm:$0xff] %vm706_vm2, %v1321_v21  ;;  %v1323_v37 = vld [vmem:[#allocation2 + $0xc9] sm:$0xff]  ;;  %v625_v50 = vpop.f32.mrf.mxu0  ;;  %v1122_v14 = vld [vmem:[#allocation2 + $0x60] sm:$0xff] }
 0x10b   : > { %1862 = vst.msk [vmem:[#allocation3 + $0x188] sm:$0xff] %vm706_vm2, %v1065_v19  ;;  %779 = vst.msk [vmem:[#allocation2 + $0xd9] sm:$0xff] %vm706_vm2, %v690_v16  ;;  %1697 = vrot.lane.b32.xlu0 %v4735_v49, %s3990_s17  ;;  %v697_v17 = vmax.f32 %v631_v47, 0.0  ;;  %v626_v51 = vadd.f32 %v4459_v23, %v625_v50  ;;  %v1633_v47 = vld [vmem:[#allocation2 + $0x61] sm:$0xff] }
 0x10c   : > { %1608 = vst.msk [vmem:[#allocation3 + $0x1d0] sm:$0xff] %vm706_vm2, %v1576_v25  ;;  %1607 = vst.msk [vmem:[#allocation3 + $0x1a8] sm:$0xff] %vm706_vm2, %v1575_v26  ;;  %v4718_v40 = vld [vmem:[#allocation2 + $0xc2] sm:$0xff]  ;;  %v3732_v55 = vpop.f32.mrf.mxu0 }
 0x10d   : > { %842 = vst.msk [vmem:[#allocation3 + $0x258] sm:$0xff] %vm706_vm2, %v1576_v25  ;;  %841 = vst.msk [vmem:[#allocation3 + $0x230] sm:$0xff] %vm706_vm2, %v1575_v26  ;;  %v1578_v41 = vld [vmem:[#allocation2 + $0xc8] sm:$0xff]  ;;  %v1577_v42 = vld [vmem:[#allocation2 + $0xc0] sm:$0xff]  ;;  %937 = vrot.lane.b32.xlu1 %v4658_v63, %s3990_s17  ;;  %v696_v58 = vmax.f32 %v626_v51, 0.0  ;;  %v641_v59 = vadd.f32 %v3732_v55, %v4459_v23 }
 0x10e   : > { %782 = vst.msk [vmem:[#allocation2 + $0xf9] sm:$0xff] %vm706_vm2, %v693_v6  ;;  %1098 = vst.msk [vmem:[#allocation3 + $0x238] sm:$0xff] %vm706_vm2, %v1066_v29  ;;  %v1322_v31 = vld [vmem:[#allocation2 + $0xc1] sm:$0xff]  ;;  %v635_v0 = vpop.f32.mrf.mxu0 }
 0x10f   : > { %1101 = vst.msk [vmem:[#allocation3 + $0x2b0] sm:$0xff] %vm706_vm2, %v4696_v28  ;;  %1863 = vst.msk [vmem:[#allocation3 + $0x1b0] sm:$0xff] %vm706_vm2, %v1066_v29  ;;  %v4720_v44 = vld [vmem:[#allocation2 + $0xe2] sm:$0xff]  ;;  %1703 = vrot.lane.b32.xlu0 %v4744_v54, %s3990_s17  ;;  %v699_v63 = vmax.f32 %v641_v59, 0.0  ;;  %v636_v1 = vadd.f32 %v4459_v23, %v635_v0 }
 0x110   : > { %1099 = vst.msk [vmem:[#allocation3 + $0x260] sm:$0xff] %vm706_vm2, %v1067_v34  ;;  %1352 = vst.msk [vmem:[#allocation3 + $0x1f0] sm:$0xff] %vm706_vm2, %v1320_v35  ;;  %v1325_v48 = vld [vmem:[#allocation2 + $0xe1] sm:$0xff]  ;;  %v3735_v8 = vpop.f32.mrf.mxu0 }
 0x111   : > { %1355 = vst.msk [vmem:[#allocation3 + $0x268] sm:$0xff] %vm706_vm2, %v1323_v37  ;;  %1864 = vst.msk [vmem:[#allocation3 + $0x1d8] sm:$0xff] %vm706_vm2, %v1067_v34  ;;  %1446 = vrot.lane.b32.xlu1 %v1377_v5, %s3990_s17  ;;  %v698_v10 = vmax.f32 %v636_v1, 0.0  ;;  %v651_v11 = vadd.f32 %v3735_v8, %v4459_v23  ;;  %v4882_v1 = vld [vmem:[%s5701_s3 + $0x238] sm:$0xff] }
 0x112   : > { %781 = vst.msk [vmem:[#allocation2 + $0xf1] sm:$0xff] %vm706_vm2, %v692_v30  ;;  %1610 = vst.msk [vmem:[#allocation3 + $0x220] sm:$0xff] %vm706_vm2, %v1578_v41  ;;  %v4742_v52 = vld [vmem:[#allocation2 + $0xda] sm:$0xff]  ;;  %v645_v18 = vpop.f32.mrf.mxu0  ;;  %3742 = vmatprep.subr.mxu1 %v4882_v1 }
 0x113   : > { %1609 = vst.msk [vmem:[#allocation3 + $0x1f8] sm:$0xff] %vm706_vm2, %v1577_v42  ;;  %844 = vst.msk [vmem:[#allocation3 + $0x2a8] sm:$0xff] %vm706_vm2, %v1578_v41  ;;  %v814_v53 = vld [vmem:[#allocation2 + $0xe0] sm:$0xff]  ;;  %v1579_v36 = vld [vmem:[#allocation2 + $0xd8] sm:$0xff]  ;;  %1192 = vrot.lane.b32.xlu0 %v1122_v14, %s3990_s17  ;;  %v701_v19 = vmax.f32 %v651_v11, 0.0  ;;  %v646_v20 = vadd.f32 %v4459_v23, %v645_v18 }
 0x114   : > { %1100 = vst.msk [vmem:[#allocation3 + $0x288] sm:$0xff] %vm706_vm2, %v4718_v40  ;;  %843 = vst.msk [vmem:[#allocation3 + $0x280] sm:$0xff] %vm706_vm2, %v1577_v42  ;;  %v1324_v57 = vld [vmem:[#allocation2 + $0xd9] sm:$0xff]  ;;  %v3738_v24 = vpop.f32.mrf.mxu0  ;;  %v1836_v14 = vld [vmem:[#allocation2 + $0xe2] sm:$0xff] }
 0x115   : > { %784 = vst.msk [vmem:[#allocation2 + $0x111] sm:$0xff] %vm706_vm2, %v695_v15  ;;  %1103 = vst.msk [vmem:[#allocation3 + $0x300] sm:$0xff] %vm706_vm2, %v4720_v44  ;;  %v4746_v56 = vld [vmem:[#allocation2 + $0xfa] sm:$0xff]  ;;  %935 = vrot.lane.b32.xlu1 %v4735_v49, %s3990_s17  ;;  %v700_v27 = vmax.f32 %v646_v20, 0.0  ;;  %v661_v29 = vadd.f32 %v3738_v24, %v4459_v23 }
 0x116   : > { %1354 = vst.msk [vmem:[#allocation3 + $0x240] sm:$0xff] %vm706_vm2, %v1322_v31  ;;  %1357 = vst.msk [vmem:[#allocation3 + $0x2b8] sm:$0xff] %vm706_vm2, %v1325_v48  ;;  %v1327_v61 = vld [vmem:[#allocation2 + $0xf9] sm:$0xff]  ;;  %v655_v35 = vpop.f32.mrf.mxu0 }
 0x117   : > { %783 = vst.msk [vmem:[#allocation2 + $0x109] sm:$0xff] %vm706_vm2, %v694_v45  ;;  %846 = vst.msk [vmem:[#allocation3 + $0x2f8] sm:$0xff] %vm706_vm2, %v814_v53  ;;  %1194 = vrot.lane.b32.xlu0 %v4629_v46, %s3990_s17  ;;  %v703_v37 = vmax.f32 %v661_v29, 0.0  ;;  %v656_v38 = vadd.f32 %v4459_v23, %v655_v35  ;;  %v1835_v5 = vld [vmem:[#allocation2 + $0xda] sm:$0xff] }
 0x118   : > { %1611 = vst.msk [vmem:[#allocation3 + $0x248] sm:$0xff] %vm706_vm2, %v1579_v36  ;;  %845 = vst.msk [vmem:[#allocation3 + $0x2d0] sm:$0xff] %vm706_vm2, %v1579_v36  ;;  %v3741_v41 = vpop.f32.mrf.mxu0  ;;  %v1838_v24 = vld [vmem:[#allocation2 + $0xfa] sm:$0xff] }
 0x119   : > { %1102 = vst.msk [vmem:[#allocation3 + $0x2d8] sm:$0xff] %vm706_vm2, %v4742_v52  ;;  %1612 = vst.msk [vmem:[#allocation3 + $0x270] sm:$0xff] %vm706_vm2, %v814_v53  ;;  %v4761_v62 = vld [vmem:[#allocation2 + $0xf8] sm:$0xff]  ;;  %v815_v3 = vld [vmem:[#allocation2 + $0xf0] sm:$0xff]  ;;  %1444 = vrot.lane.b32.xlu1 %v4605_v33, %s3990_s17  ;;  %v702_v43 = vmax.f32 %v656_v38, 0.0  ;;  %v671_v31 = vadd.f32 %v3741_v41, %v4459_v23 }
 0x11a   : > { %786 = vst.msk [vmem:[#allocation2 + $0x129] sm:$0xff] %vm706_vm2, %v697_v17  ;;  %1105 = vst.msk [vmem:[#allocation3 + $0x350] sm:$0xff] %vm706_vm2, %v4746_v56  ;;  %v4769_v2 = vld [vmem:[#allocation2 + $0xf2] sm:$0xff]  ;;  %v665_v50 = vpop.f32.mrf.mxu0  ;;  %v4852_v53 = vld [vmem:[#allocation2 + $0x81] sm:$0xff] }
 0x11b   : > { %1356 = vst.msk [vmem:[#allocation3 + $0x290] sm:$0xff] %vm706_vm2, %v1324_v57  ;;  %1855 = vst.msk [vmem:[#allocation3 + $0x70] sm:$0xff] %vm706_vm2, %v1823_v60  ;;  %v1582_v4 = vld [vmem:[#allocation2 + $0xf8] sm:$0xff]  ;;  %1701 = vrot.lane.b32.xlu0 %v1633_v47, %s3990_s17  ;;  %v705_v33 = vmax.f32 %v671_v31, 0.0  ;;  %v666_v17 = vadd.f32 %v4459_v23, %v665_v50 }
 0x11c   : > { %1359 = vst.msk [vmem:[#allocation3 + $0x308] sm:$0xff] %vm706_vm2, %v1327_v61  ;;  %785 = vst.msk [vmem:[#allocation2 + $0x121] sm:$0xff] %vm706_vm2, %v696_v58  ;;  %v4773_v9 = vld [vmem:[#allocation2 + $0x112] sm:$0xff]  ;;  %v1833_v58 = vld [vmem:[#allocation2 + $0xc2] sm:$0xff] }
 0x11d   : > { %848 = vst.msk [vmem:[#allocation3 + $0x348] sm:$0xff] %vm706_vm2, %v4761_v62  ;;  %847 = vst.msk [vmem:[#allocation3 + $0x320] sm:$0xff] %vm706_vm2, %v815_v3  ;;  %v1326_v7 = vld [vmem:[#allocation2 + $0xf1] sm:$0xff]  ;;  %941 = vrot.lane.b32.xlu1 %v4744_v54, %s3990_s17  ;;  %v704_v23 = vmax.f32 %v666_v17, 0.0  ;;  %v1635_v35 = vld [vmem:[#allocation2 + $0x79] sm:$0xff] }
 0x11e   : > { %1104 = vst.msk [vmem:[#allocation3 + $0x328] sm:$0xff] %vm706_vm2, %v4769_v2  ;;  %1613 = vst.msk [vmem:[#allocation3 + $0x298] sm:$0xff] %vm706_vm2, %v815_v3  ;;  %v4786_v16 = vld [vmem:[#allocation2 + $0x110] sm:$0xff]  ;;  %v817_v22 = vld [vmem:[#allocation2 + $0x108] sm:$0xff] }
 0x11f   : > { %1614 = vst.msk [vmem:[#allocation3 + $0x2c0] sm:$0xff] %vm706_vm2, %v1582_v4  ;;  %788 = vst.msk [vmem:[#allocation2 + $0x141] sm:$0xff] %vm706_vm2, %v699_v63  ;;  %v4793_v21 = vld [vmem:[#allocation2 + $0x10a] sm:$0xff]  ;;  %1707 = vrot.lane.b32.xlu0 %v4852_v53, %s3990_s17  ;;  %v1837_v18 = vld [vmem:[#allocation2 + $0xf2] sm:$0xff] }
 0x120   : > { %1107 = vst.msk [vmem:[#allocation3 + $0x3a0] sm:$0xff] %vm706_vm2, %v4773_v9  ;;  %1358 = vst.msk [vmem:[#allocation3 + $0x2e0] sm:$0xff] %vm706_vm2, %v1326_v7  ;;  %v1584_v6 = vld [vmem:[#allocation2 + $0x110] sm:$0xff]  ;;  %v1124_v7 = vld [vmem:[#allocation2 + $0x78] sm:$0xff] }
 0x121   : > { %1857 = vst.msk [vmem:[#allocation3 + $0xc0] sm:$0xff] %vm706_vm2, %v1825_v12  ;;  %1858 = vst.msk [vmem:[#allocation3 + $0xe8] sm:$0xff] %vm706_vm2, %v1826_v13  ;;  %v4797_v25 = vld [vmem:[#allocation2 + $0x12a] sm:$0xff]  ;;  %v1638_v31 = vld [vmem:[#allocation2 + $0x99] sm:$0xff] }
 0x122   : > { %787 = vst.msk [vmem:[#allocation2 + $0x139] sm:$0xff] %vm706_vm2, %v698_v10  ;;  %850 = vst.msk [vmem:[#allocation3 + $0x398] sm:$0xff] %vm706_vm2, %v4786_v16  ;;  %v1328_v26 = vld [vmem:[#allocation2 + $0x109] sm:$0xff]  ;;  %v1329_v30 = vld [vmem:[#allocation2 + $0x111] sm:$0xff] }
 0x123   : > { %849 = vst.msk [vmem:[#allocation3 + $0x370] sm:$0xff] %vm706_vm2, %v817_v22  ;;  %1106 = vst.msk [vmem:[#allocation3 + $0x378] sm:$0xff] %vm706_vm2, %v4793_v21  ;;  %v4811_v32 = vld [vmem:[#allocation2 + $0x120] sm:$0xff]  ;;  %v4813_v34 = vld [vmem:[#allocation2 + $0x128] sm:$0xff]  ;;  %1196 = vrot.lane.b32.xlu0 %v1124_v7, %s3990_s17 }
 0x124   : > { %1615 = vst.msk [vmem:[#allocation3 + $0x2e8] sm:$0xff] %vm706_vm2, %v817_v22  ;;  %1616 = vst.msk [vmem:[#allocation3 + $0x310] sm:$0xff] %vm706_vm2, %v1584_v6  ;;  %v4820_v15 = vld [vmem:[#allocation2 + $0x122] sm:$0xff]  ;;  %v1379_v63 = vld [vmem:[#allocation2 + $0x6a] sm:$0xff] }
 0x125   : > { %790 = vst.msk [vmem:[#allocation2 + $0x159] sm:$0xff] %vm706_vm2, %v701_v19  ;;  %1109 = vst.msk [vmem:[#allocation3 + $0x3f0] sm:$0xff] %vm706_vm2, %v4797_v25  ;;  %v1585_v39 = vld [vmem:[#allocation2 + $0x120] sm:$0xff]  ;;  %v1586_v46 = vld [vmem:[#allocation2 + $0x128] sm:$0xff]  ;;  %1450 = vrot.lane.b32.xlu1 %v1379_v63, %s3990_s17 }
 0x126   : > { %1360 = vst.msk [vmem:[#allocation3 + $0x330] sm:$0xff] %vm706_vm2, %v1328_v26  ;;  %1361 = vst.msk [vmem:[#allocation3 + $0x358] sm:$0xff] %vm706_vm2, %v1329_v30  ;;  %v4826_v42 = vld [vmem:[#allocation2 + $0x142] sm:$0xff]  ;;  %v1834_v4 = vld [vmem:[#allocation2 + $0xca] sm:$0xff] }
 0x127   : > { %789 = vst.msk [vmem:[#allocation2 + $0x151] sm:$0xff] %vm706_vm2, %v700_v27  ;;  %852 = vst.msk [vmem:[#allocation3 + $0x3e8] sm:$0xff] %vm706_vm2, %v4813_v34  ;;  %v1330_v45 = vld [vmem:[#allocation2 + $0x121] sm:$0xff]  ;;  %v1331_v57 = vld [vmem:[#allocation2 + $0x129] sm:$0xff] }
 0x128   : > { %851 = vst.msk [vmem:[#allocation3 + $0x3c0] sm:$0xff] %vm706_vm2, %v4811_v32  ;;  %1108 = vst.msk [vmem:[#allocation3 + $0x3c8] sm:$0xff] %vm706_vm2, %v4820_v15  ;;  %v1333_v13 = vld [vmem:[#allocation2 + $0x141] sm:$0xff]  ;;  %v1839_v26 = vld [vmem:[#allocation2 + $0x10a] sm:$0xff] }
 0x129   : > { %1617 = vst.msk [vmem:[#allocation3 + $0x338] sm:$0xff] %vm706_vm2, %v1585_v39  ;;  %792 = vst.msk [vmem:[#allocation2 + $0x171] sm:$0xff] %vm706_vm2, %v703_v37  ;;  %v4838_v48 = vld [vmem:[#allocation2 + $0x138] sm:$0xff]  ;;  %v4840_v49 = vld [vmem:[#allocation2 + $0x140] sm:$0xff]  ;;  %939 = vrot.lane.b32.xlu1 %v1633_v47, %s3990_s17 }
 0x12a   : > { %1111 = vst.msk [vmem:[#allocation3 + $0x440] sm:$0xff] %vm706_vm2, %v4826_v42  ;;  %1618 = vst.msk [vmem:[#allocation3 + $0x360] sm:$0xff] %vm706_vm2, %v1586_v46  ;;  %v4846_v51 = vld [vmem:[#allocation2 + $0x13a] sm:$0xff]  ;;  %v1378_v6 = vld [vmem:[#allocation2 + $0x62] sm:$0xff] }
 0x12b   : > { %1362 = vst.msk [vmem:[#allocation3 + $0x380] sm:$0xff] %vm706_vm2, %v1330_v45  ;;  %791 = vst.msk [vmem:[#allocation2 + $0x169] sm:$0xff] %vm706_vm2, %v702_v43  ;;  %v1587_v55 = vld [vmem:[#allocation2 + $0x138] sm:$0xff]  ;;  %v1588_v61 = vld [vmem:[#allocation2 + $0x140] sm:$0xff] }
 0x12c   : > { %854 = vst.msk [vmem:[#allocation3 + $0x438] sm:$0xff] %vm706_vm2, %v4840_v49  ;;  %853 = vst.msk [vmem:[#allocation3 + $0x410] sm:$0xff] %vm706_vm2, %v4838_v48  ;;  %v4854_v36 = vld [vmem:[#allocation2 + $0x15a] sm:$0xff]  ;;  %v1840_v30 = vld [vmem:[#allocation2 + $0x112] sm:$0xff] }
 0x12d   : > { %1110 = vst.msk [vmem:[#allocation3 + $0x418] sm:$0xff] %vm706_vm2, %v4846_v51  ;;  %794 = vst.msk [vmem:[#allocation2 + $0x189] sm:$0xff] %vm706_vm2, %v705_v33  ;;  %v1332_v0 = vld [vmem:[#allocation2 + $0x139] sm:$0xff]  ;;  %1448 = vrot.lane.b32.xlu1 %v1378_v6, %s3990_s17  ;;  %v1841_v37 = vld [vmem:[#allocation2 + $0x122] sm:$0xff] }
 0x12e   : > { %1113 = vst.msk [vmem:[#allocation3 + $0x490] sm:$0xff] %vm706_vm2, %v4854_v36  ;;  %1619 = vst.msk [vmem:[#allocation3 + $0x388] sm:$0xff] %vm706_vm2, %v1587_v55  ;;  %v4864_v59 = vld [vmem:[#allocation2 + $0x150] sm:$0xff]  ;;  %v4866_v60 = vld [vmem:[#allocation2 + $0x158] sm:$0xff] }
 0x12f   : > { %1363 = vst.msk [vmem:[#allocation3 + $0x3a8] sm:$0xff] %vm706_vm2, %v1331_v57  ;;  %1865 = vst.msk [vmem:[#allocation3 + $0x200] sm:$0xff] %vm706_vm2, %v1833_v58  ;;  %v4873_v54 = vld [vmem:[#allocation2 + $0x152] sm:$0xff]  ;;  %v1125_v22 = vld [vmem:[#allocation2 + $0x80] sm:$0xff] }
 0x130   : > { %793 = vst.msk [vmem:[#allocation2 + $0x181] sm:$0xff] %vm706_vm2, %v704_v23  ;;  %856 = vst.msk [vmem:[#allocation3 + $0x488] sm:$0xff] %vm706_vm2, %v4866_v60  ;;  %v4884_v3 = vld [vmem:[#allocation2 + $0x172] sm:$0xff]  ;;  %1198 = vrot.lane.b32.xlu0 %v1125_v22, %s3990_s17  ;;  %v1842_v41 = vld [vmem:[#allocation2 + $0x12a] sm:$0xff] }
 0x131   : > { %855 = vst.msk [vmem:[#allocation3 + $0x460] sm:$0xff] %vm706_vm2, %v4864_v59  ;;  %1112 = vst.msk [vmem:[#allocation3 + $0x468] sm:$0xff] %vm706_vm2, %v4873_v54  ;;  %v1589_v8 = vld [vmem:[#allocation2 + $0x150] sm:$0xff]  ;;  %v1590_v19 = vld [vmem:[#allocation2 + $0x158] sm:$0xff]  ;;  %945 = vrot.lane.b32.xlu1 %v4852_v53, %s3990_s17 }
 0x132   : > { %1620 = vst.msk [vmem:[#allocation3 + $0x3b0] sm:$0xff] %vm706_vm2, %v1588_v61  ;;  %1364 = vst.msk [vmem:[#allocation3 + $0x3d0] sm:$0xff] %vm706_vm2, %v1332_v0  ;;  %v4894_v10 = vld [vmem:[#allocation2 + $0x168] sm:$0xff]  ;;  %v4896_v11 = vld [vmem:[#allocation2 + $0x170] sm:$0xff] }
 0x133   : > { %1115 = vst.msk [vmem:[#allocation3 + $0x4e0] sm:$0xff] %vm706_vm2, %v4884_v3  ;;  %1866 = vst.msk [vmem:[#allocation3 + $0x228] sm:$0xff] %vm706_vm2, %v1834_v4  ;;  %v4902_v12 = vld [vmem:[#allocation2 + $0x16a] sm:$0xff]  ;;  %v1335_v29 = vld [vmem:[#allocation2 + $0x159] sm:$0xff] }
 0x134   : > { %1867 = vst.msk [vmem:[#allocation3 + $0x250] sm:$0xff] %vm706_vm2, %v1835_v5  ;;  %1621 = vst.msk [vmem:[#allocation3 + $0x3d8] sm:$0xff] %vm706_vm2, %v1589_v8  ;;  %v1334_v20 = vld [vmem:[#allocation2 + $0x151] sm:$0xff]  ;;  %v1591_v27 = vld [vmem:[#allocation2 + $0x168] sm:$0xff]  ;;  %1705 = vrot.lane.b32.xlu0 %v1635_v35, %s3990_s17 }
 0x135   : > { %857 = vst.msk [vmem:[#allocation3 + $0x4b0] sm:$0xff] %vm706_vm2, %v4894_v10  ;;  %858 = vst.msk [vmem:[#allocation3 + $0x4d8] sm:$0xff] %vm706_vm2, %v4896_v11  ;;  %v1592_v38 = vld [vmem:[#allocation2 + $0x170] sm:$0xff]  ;;  %v1843_v46 = vld [vmem:[#allocation2 + $0x13a] sm:$0xff] }
 0x136   : > { %1114 = vst.msk [vmem:[#allocation3 + $0x4b8] sm:$0xff] %vm706_vm2, %v4902_v12  ;;  %1365 = vst.msk [vmem:[#allocation3 + $0x3f8] sm:$0xff] %vm706_vm2, %v1333_v13  ;;  %v1336_v39 = vld [vmem:[#allocation2 + $0x169] sm:$0xff]  ;;  %v1337_v45 = vld [vmem:[#allocation2 + $0x171] sm:$0xff] }
 0x137   : > { %1868 = vst.msk [vmem:[#allocation3 + $0x278] sm:$0xff] %vm706_vm2, %v1836_v14  ;;  %1869 = vst.msk [vmem:[#allocation3 + $0x2a0] sm:$0xff] %vm706_vm2, %v1837_v18  ;;  %v1593_v43 = vld [vmem:[#allocation2 + $0x180] sm:$0xff]  ;;  %v1845_v50 = vld [vmem:[#allocation2 + $0x152] sm:$0xff] }
 0x138   : > { %1622 = vst.msk [vmem:[#allocation3 + $0x400] sm:$0xff] %vm706_vm2, %v1590_v19  ;;  %1366 = vst.msk [vmem:[#allocation3 + $0x420] sm:$0xff] %vm706_vm2, %v1334_v20  ;;  %v1844_v47 = vld [vmem:[#allocation2 + $0x142] sm:$0xff]  ;;  %v1846_v55 = vld [vmem:[#allocation2 + $0x15a] sm:$0xff]  ;;  %1711 = vrot.lane.b32.xlu0 %v1638_v31, %s3990_s17 }
 0x139   : > { %1870 = vst.msk [vmem:[#allocation3 + $0x2c8] sm:$0xff] %vm706_vm2, %v1838_v24  ;;  %1871 = vst.msk [vmem:[#allocation3 + $0x2f0] sm:$0xff] %vm706_vm2, %v1839_v26  ;;  %v1594_v33 = vld [vmem:[#allocation2 + $0x188] sm:$0xff]  ;;  %v1848_v53 = vld [vmem:[#allocation2 + $0x172] sm:$0xff] }
 0x13a   : > { %1623 = vst.msk [vmem:[#allocation3 + $0x428] sm:$0xff] %vm706_vm2, %v1591_v27  ;;  %1367 = vst.msk [vmem:[#allocation3 + $0x448] sm:$0xff] %vm706_vm2, %v1335_v29  ;;  %v1338_v17 = vld [vmem:[#allocation2 + $0x181] sm:$0xff]  ;;  %v1847_v23 = vld [vmem:[#allocation2 + $0x16a] sm:$0xff] }
 0x13b   : > { %1872 = vst.msk [vmem:[#allocation3 + $0x318] sm:$0xff] %vm706_vm2, %v1840_v30  ;;  %1873 = vst.msk [vmem:[#allocation3 + $0x340] sm:$0xff] %vm706_vm2, %v1841_v37  ;;  %v1339_v57 = vld [vmem:[#allocation2 + $0x189] sm:$0xff]  ;;  %v1127_v4 = vld [vmem:[#allocation2 + $0x98] sm:$0xff] }
 0x13c   : > { %1624 = vst.msk [vmem:[#allocation3 + $0x450] sm:$0xff] %vm706_vm2, %v1592_v38  ;;  %1368 = vst.msk [vmem:[#allocation3 + $0x470] sm:$0xff] %vm706_vm2, %v1336_v39  ;;  %v1381_v58 = vld [vmem:[#allocation2 + $0x82] sm:$0xff]  ;;  %v1850_v0 = vld [vmem:[#allocation2 + $0x18a] sm:$0xff] }
 0x13d   : > { %1874 = vst.msk [vmem:[#allocation3 + $0x368] sm:$0xff] %vm706_vm2, %v1842_v41  ;;  %1875 = vst.msk [vmem:[#allocation3 + $0x390] sm:$0xff] %vm706_vm2, %v1843_v46  ;;  %v1849_v61 = vld [vmem:[#allocation2 + $0x182] sm:$0xff]  ;;  %1454 = vrot.lane.b32.xlu1 %v1381_v58, %s3990_s17  ;;  %v1126_v63 = vld [vmem:[#allocation2 + $0x90] sm:$0xff] }
 0x13e   : > { %1625 = vst.msk [vmem:[#allocation3 + $0x478] sm:$0xff] %vm706_vm2, %v1593_v43  ;;  %1369 = vst.msk [vmem:[#allocation3 + $0x498] sm:$0xff] %vm706_vm2, %v1337_v45  ;;  %1200 = vrot.lane.b32.xlu0 %v1126_v63, %s3990_s17  ;;  %v1380_v5 = vld [vmem:[#allocation2 + $0x7a] sm:$0xff]  ;;  %v1637_v8 = vld [vmem:[#allocation2 + $0x91] sm:$0xff] }
 0x13f   : > { %1876 = vst.msk [vmem:[#allocation3 + $0x3b8] sm:$0xff] %vm706_vm2, %v1844_v47  ;;  %1877 = vst.msk [vmem:[#allocation3 + $0x3e0] sm:$0xff] %vm706_vm2, %v1845_v50  ;;  %v1640_v7 = vld [vmem:[#allocation2 + $0xb1] sm:$0xff]  ;;  %v1383_v13 = vld [vmem:[#allocation2 + $0x9a] sm:$0xff] }
 0x140   : > { %1626 = vst.msk [vmem:[#allocation3 + $0x4a0] sm:$0xff] %vm706_vm2, %v1594_v33  ;;  %1370 = vst.msk [vmem:[#allocation3 + $0x4c0] sm:$0xff] %vm706_vm2, %v1338_v17  ;;  %v1128_v14 = vld [vmem:[#allocation2 + $0xa8] sm:$0xff]  ;;  %v1129_v18 = vld [vmem:[#allocation2 + $0xb0] sm:$0xff] }
 0x141   : > { %1878 = vst.msk [vmem:[#allocation3 + $0x408] sm:$0xff] %vm706_vm2, %v1846_v55  ;;  %1879 = vst.msk [vmem:[#allocation3 + $0x430] sm:$0xff] %vm706_vm2, %v1847_v23  ;;  %943 = vrot.lane.b32.xlu1 %v1635_v35, %s3990_s17  ;;  %v1382_v19 = vld [vmem:[#allocation2 + $0x92] sm:$0xff]  ;;  %v1639_v20 = vld [vmem:[#allocation2 + $0xa9] sm:$0xff] }
 0x142   : > { %1371 = vst.msk [vmem:[#allocation3 + $0x4e8] sm:$0xff] %vm706_vm2, %v1339_v57  ;;  %1880 = vst.msk [vmem:[#allocation3 + $0x458] sm:$0xff] %vm706_vm2, %v1848_v53  ;;  %1202 = vrot.lane.b32.xlu0 %v1127_v4, %s3990_s17  ;;  %v1642_v22 = vld [vmem:[#allocation2 + $0xc9] sm:$0xff]  ;;  %v1385_v6 = vld [vmem:[#allocation2 + $0xb2] sm:$0xff] }
 0x143   : > { %1881 = vst.msk [vmem:[#allocation3 + $0x480] sm:$0xff] %vm706_vm2, %v1849_v61  ;;  %1882 = vst.msk [vmem:[#allocation3 + $0x4a8] sm:$0xff] %vm706_vm2, %v1850_v0  ;;  %v1130_v24 = vld [vmem:[#allocation2 + $0xc0] sm:$0xff]  ;;  %v1131_v26 = vld [vmem:[#allocation2 + $0xc8] sm:$0xff] }
 0x144   : > { %v1384_v27 = vld [vmem:[#allocation2 + $0xaa] sm:$0xff]  ;;  %v1641_v29 = vld [vmem:[#allocation2 + $0xc1] sm:$0xff]  ;;  %v1132_v37 = vld [vmem:[#allocation2 + $0xd8] sm:$0xff] }
 0x145   : > { %1452 = vrot.lane.b32.xlu1 %v1380_v5, %s3990_s17  ;;  %v1133_v41 = vld [vmem:[#allocation2 + $0xe0] sm:$0xff]  ;;  %v1885_v50 = vld [vmem:[#allocation3] sm:$0xff]  ;;  %v2114_v55 = vld [vmem:[%s5701_s3 + $0x228] sm:$0xff] }
 0x146   : > { %1709 = vrot.lane.b32.xlu0 %v1637_v8, %s3990_s17  ;;  %v4975_v43 = vld [vmem:[#allocation2 + $0xe1] sm:$0xff]  ;;  %v1643_v47 = vld [vmem:[#allocation2 + $0xd9] sm:$0xff]  ;;  %v2115_v33 = vld [vmem:[%s5701_s3 + $0x230] sm:$0xff] }
 0x147   : > { %v1134_v57 = vld [vmem:[#allocation2 + $0xf0] sm:$0xff]  ;;  %v1890_v61 = vld [vmem:[#allocation3 + $0x28] sm:$0xff] }
 0x148   : > { %v4996_v0 = vld [vmem:[#allocation2 + $0xf9] sm:$0xff] }
 0x149   : > { %949 = vrot.lane.b32.xlu1 %v1638_v31, %s3990_s17  ;;  %v2112_v5 = vld [vmem:[%s5701_s3 + $0x218] sm:$0xff] }
 0x14a   : > { %1715 = vrot.lane.b32.xlu0 %v1640_v7, %s3990_s17 }
 0x14d   : > { %1458 = vrot.lane.b32.xlu1 %v1383_v13, %s3990_s17  ;;  %v5007_v13 = vld [vmem:[#allocation2 + $0xf1] sm:$0xff] }
 0x14e   : > { %1204 = vrot.lane.b32.xlu0 %v1128_v14, %s3990_s17  ;;  %v2111_v14 = vld [vmem:[%s5701_s3 + $0x210] sm:$0xff] }
 0x151   : > { %947 = vrot.lane.b32.xlu1 %v1637_v8, %s3990_s17 }
 0x152   : > { %1206 = vrot.lane.b32.xlu0 %v1129_v18, %s3990_s17 }
 0x155   : > { %1456 = vrot.lane.b32.xlu1 %v1382_v19, %s3990_s17 }
 0x156   : > { %1713 = vrot.lane.b32.xlu0 %v1639_v20, %s3990_s17 }
 0x159   : > { %953 = vrot.lane.b32.xlu1 %v1640_v7, %s3990_s17 }
 0x15a   : > { %1719 = vrot.lane.b32.xlu0 %v1642_v22, %s3990_s17 }
 0x15b   : > { %v930_v30 = vpop.permute.xlu1 %929 }
 0x15c   : > { %1023 = vst.msk [vmem:[#allocation3 + $0x78] sm:$0xff] %vm1019_vm4, %v930_v30 }
 0x15d   : > { %1462 = vrot.lane.b32.xlu1 %v1385_v6, %s3990_s17  ;;  %v1181_v35 = vpop.permute.xlu0 %1180 }
 0x15e   : > { %1208 = vrot.lane.b32.xlu0 %v1130_v24, %s3990_s17  ;;  %1276 = vst.msk [vmem:[#allocation3 + $0x8] sm:$0xff] %vm1019_vm4, %v1181_v35  ;;  %v5025_v35 = vld [vmem:[#allocation2 + $0x109] sm:$0xff] }
 0x15f   : > { %v1439_v38 = vpop.permute.xlu1 %1438 }
 0x160   : > { %1533 = vst.msk [vmem:[#allocation3 + $0x38] sm:$0xff] %vm1019_vm4, %v1439_v38 }
 0x161   : > { %951 = vrot.lane.b32.xlu1 %v1639_v20, %s3990_s17  ;;  %v1696_v39 = vpop.permute.xlu0 %1695 }
 0x162   : > { %1210 = vrot.lane.b32.xlu0 %v1131_v26, %s3990_s17  ;;  %1790 = vst.msk [vmem:[#allocation3 + $0x40] sm:$0xff] %vm1019_vm4, %v1696_v39  ;;  %v5033_v39 = vld [vmem:[#allocation2 + $0x129] sm:$0xff] }
 0x163   : > { %v1183_v46 = vpop.permute.xlu1 %1182  ;;  %v1900_v6 = vld [vmem:[#allocation3 + $0x78] sm:$0xff] }
 0x164   : > { %1277 = vst.msk [vmem:[#allocation3 + $0x30] sm:$0xff] %vm1019_vm4, %v1183_v46 }
 0x165   : > { %1460 = vrot.lane.b32.xlu1 %v1384_v27, %s3990_s17  ;;  %v1185_v31 = vpop.permute.xlu0 %1184  ;;  %v1886_v45 = vld [vmem:[#allocation3 + $0x8] sm:$0xff] }
 0x166   : > { %1717 = vrot.lane.b32.xlu0 %v1641_v29, %s3990_s17  ;;  %1278 = vst.msk [vmem:[#allocation3 + $0x58] sm:$0xff] %vm1019_vm4, %v1185_v31  ;;  %2284 = vmatprep.mubr.f32.mxu1 %v1886_v45 }
 0x167   : > { %2285 = vmatmul.mubr.f32.vlgmr.msra.gmra.mxu1 %v1885_v50  ;;  %v928_v17 = vpop.permute.xlu1 %927  ;;  %v1892_v38 = vld [vmem:[#allocation3 + $0x38] sm:$0xff] }
 0x168   : > { %1022 = vst.msk [vmem:[#allocation3 + $0x50] sm:$0xff] %vm1019_vm4, %v928_v17  ;;  %3743 = vmatpush3.msra.mxu1 %v4882_v1  ;;  %v2113_v1 = vld [vmem:[%s5701_s3 + $0x220] sm:$0xff] }
 0x169   : > { %957 = vrot.lane.b32.xlu1 %v1642_v22, %s3990_s17  ;;  %v1187_v23 = vpop.permute.xlu0 %1186  ;;  %3744 = vmatprep.subr.mxu1 %v2115_v33  ;;  %v5017_v22 = vld [vmem:[#allocation2 + $0x111] sm:$0xff] }
 0x16a   : > { %1212 = vrot.lane.b32.xlu0 %v1132_v37, %s3990_s17  ;;  %1279 = vst.msk [vmem:[#allocation3 + $0x80] sm:$0xff] %vm1019_vm4, %v1187_v23  ;;  %3745 = vmatpush3.msra.mxu1 %v2115_v33  ;;  %v1893_v30 = vld [vmem:[#allocation3 + $0x40] sm:$0xff] }
 0x16b   : > { %v1437_v53 = vpop.permute.xlu1 %1436  ;;  %v1891_v58 = vld [vmem:[#allocation3 + $0x30] sm:$0xff]  ;;  %3746 = vmatprep.subr.mxu1 %v2114_v55 }
 0x16c   : > { %1532 = vst.msk [vmem:[#allocation3 + $0x10] sm:$0xff] %vm1019_vm4, %v1437_v53  ;;  %2289 = vmatprep.mubr.f32.mxu1 %v1891_v58  ;;  %3747 = vmatpush3.msra.mxu1 %v2114_v55  ;;  %v5052_v55 = vld [vmem:[#allocation2 + $0x141] sm:$0xff] }
 0x16d   : > { %955 = vrot.lane.b32.xlu1 %v1641_v29, %s3990_s17  ;;  %2290 = vmatmul.mubr.f32.gmra.mxu1 %v1890_v61  ;;  %v1694_v63 = vpop.permute.xlu0 %1693  ;;  %v1896_v4 = vld [vmem:[#allocation3 + $0x58] sm:$0xff] }
 0x16e   : > { %1214 = vrot.lane.b32.xlu0 %v1133_v41, %s3990_s17  ;;  %1789 = vst.msk [vmem:[#allocation3 + $0x18] sm:$0xff] %vm1019_vm4, %v1694_v63  ;;  %2294 = vmatprep.mubr.f32.mxu1 %v1896_v4  ;;  %v5068_v4 = vld [vmem:[#allocation2 + $0x159] sm:$0xff] }
 0x16f   : > { %3748 = vmatprep.subr.mxu1 %v2113_v1  ;;  %v934_v8 = vpop.permute.xlu1 %933  ;;  %v1895_v7 = vld [vmem:[#allocation3 + $0x50] sm:$0xff] }
 0x170   : > { %3749 = vmatpush3.msra.mxu1 %v2113_v1  ;;  %1025 = vst.msk [vmem:[#allocation3 + $0xc8] sm:$0xff] %vm1019_vm4, %v934_v8  ;;  %v5060_v1 = vld [vmem:[#allocation2 + $0x139] sm:$0xff] }
 0x171   : > { %961 = vrot.lane.b32.xlu1 %v4975_v43, %s3990_s17  ;;  %3750 = vmatprep.subr.mxu1 %v2112_v5  ;;  %v1700_v18 = vpop.permute.xlu0 %1699  ;;  %v1901_v19 = vld [vmem:[#allocation3 + $0x80] sm:$0xff] }
 0x172   : > { %1721 = vrot.lane.b32.xlu0 %v1643_v47, %s3990_s17  ;;  %2295 = vmatmul.mubr.f32.gmra.mxu1 %v1895_v7  ;;  %1792 = vst.msk [vmem:[#allocation3 + $0x90] sm:$0xff] %vm1019_vm4, %v1700_v18  ;;  %v2109_v18 = vld [vmem:[%s5701_s3 + $0x200] sm:$0xff] }
 0x173   : > { %2299 = vmatprep.mubr.f32.mxu1 %v1901_v19  ;;  %3751 = vmatpush3.msra.mxu1 %v2112_v5  ;;  %v1443_v20 = vpop.permute.xlu1 %1442  ;;  %v1887_v27 = vld [vmem:[#allocation3 + $0x10] sm:$0xff] }
 0x174   : > { %3752 = vmatprep.subr.mxu1 %v2111_v14  ;;  %1535 = vst.msk [vmem:[#allocation3 + $0x88] sm:$0xff] %vm1019_vm4, %v1443_v20 }
 0x175   : > { %959 = vrot.lane.b32.xlu1 %v1643_v47, %s3990_s17  ;;  %3753 = vmatpush3.msra.mxu1 %v2111_v14  ;;  %v1189_v24 = vpop.permute.xlu0 %1188  ;;  %v1888_v26 = vld [vmem:[#allocation3 + $0x18] sm:$0xff] }
 0x176   : > { %1216 = vrot.lane.b32.xlu0 %v1134_v57, %s3990_s17  ;;  %2300 = vmatmul.mubr.f32.gmra.mxu1 %v1900_v6  ;;  %1280 = vst.msk [vmem:[#allocation3 + $0xa8] sm:$0xff] %vm1019_vm4, %v1189_v24  ;;  %v2110_v47 = vld [vmem:[%s5701_s3 + $0x208] sm:$0xff] }
 0x177   : > { %2509 = vmatprep.mubr.f32.mxu0 %v1888_v26  ;;  %v932_v29 = vpop.permute.xlu1 %931  ;;  %3754 = vmatprep.subr.mxu1 %v2110_v47  ;;  %v1910_v17 = vld [vmem:[#allocation3 + $0xc8] sm:$0xff] }
 0x178   : > { %2510 = vmatmul.mubr.f32.vlgmr.msra.gmra.mxu0 %v1887_v27  ;;  %1024 = vst.msk [vmem:[#allocation3 + $0xa0] sm:$0xff] %vm1019_vm4, %v932_v29  ;;  %3755 = vmatpush3.msra.mxu1 %v2110_v47  ;;  %v5093_v29 = vld [vmem:[#allocation2 + $0x169] sm:$0xff] }
 0x179   : > { %965 = vrot.lane.b32.xlu1 %v4996_v0, %s3990_s17  ;;  %2514 = vmatprep.mubr.f32.mxu0 %v1893_v30  ;;  %v1191_v37 = vpop.permute.xlu0 %1190  ;;  %v1903_v58 = vld [vmem:[#allocation3 + $0x90] sm:$0xff] }
 0x17a   : > { %1218 = vrot.lane.b32.xlu0 %v4761_v62, %s3990_s17  ;;  %v1136_v62 = vld [vmem:[#allocation2 + $0x108] sm:$0xff]  ;;  %1281 = vst.msk [vmem:[#allocation3 + $0xd0] sm:$0xff] %vm1019_vm4, %v1191_v37  ;;  %3756 = vmatprep.subr.mxu1 %v2109_v18 }
 0x17b   : > { %v1902_v63 = vld [vmem:[#allocation3 + $0x88] sm:$0xff]  ;;  %3757 = vmatpush3.msra.mxu1 %v2109_v18 }
 0x17c   : > { %2515 = vmatmul.mubr.f32.gmra.mxu0 %v1892_v38  ;;  %v5100_v38 = vld [vmem:[#allocation2 + $0x171] sm:$0xff] }
 0x17d   : > { %963 = vrot.lane.b32.xlu1 %v5007_v13, %s3990_s17  ;;  %v1698_v41 = vpop.permute.xlu0 %1697  ;;  %v1906_v46 = vld [vmem:[#allocation3 + $0xa8] sm:$0xff] }
 0x17e   : > { %1220 = vrot.lane.b32.xlu0 %v1136_v62, %s3990_s17  ;;  %1791 = vst.msk [vmem:[#allocation3 + $0x68] sm:$0xff] %vm1019_vm4, %v1698_v41  ;;  %2304 = vmatprep.mubr.f32.mxu1 %v1906_v46  ;;  %v1147_v46 = vld [vmem:[#allocation2 + $0x188] sm:$0xff] }
 0x17f   : > { %v1905_v45 = vld [vmem:[#allocation3 + $0xa0] sm:$0xff] }
 0x180   : > { %2305 = vmatmul.mubr.f32.gmra.mxu1 %v1905_v45 }
 0x181   : > { %969 = vrot.lane.b32.xlu1 %v5017_v22, %s3990_s17  ;;  %v1704_v50 = vpop.permute.xlu0 %1703  ;;  %v1911_v33 = vld [vmem:[#allocation3 + $0xd0] sm:$0xff] }
 0x182   : > { %1222 = vrot.lane.b32.xlu0 %v4786_v16, %s3990_s17  ;;  %v1441_v16 = vpop.permute.xlu1 %1440  ;;  %1794 = vst.msk [vmem:[#allocation3 + $0xe0] sm:$0xff] %vm1019_vm4, %v1704_v50  ;;  %2309 = vmatprep.mubr.f32.mxu1 %v1911_v33 }
 0x183   : > { %1534 = vst.msk [vmem:[#allocation3 + $0x60] sm:$0xff] %vm1019_vm4, %v1441_v16 }
 0x184   : > { %2310 = vmatmul.mubr.f32.gmra.mxu1 %v1910_v17 }
 0x185   : > { %967 = vrot.lane.b32.xlu1 %v5025_v35, %s3990_s17  ;;  %v1193_v23 = vpop.permute.xlu0 %1192  ;;  %v1898_v57 = vld [vmem:[#allocation3 + $0x68] sm:$0xff] }
 0x186   : > { %1224 = vrot.lane.b32.xlu0 %v4811_v32, %s3990_s17  ;;  %v938_v31 = vpop.permute.xlu1 %937  ;;  %v5041_v32 = vld [vmem:[#allocation2 + $0x121] sm:$0xff]  ;;  %1282 = vst.msk [vmem:[#allocation3 + $0xf8] sm:$0xff] %vm1019_vm4, %v1193_v23  ;;  %2519 = vmatprep.mubr.f32.mxu0 %v1898_v57 }
 0x187   : > { %1027 = vst.msk [vmem:[#allocation3 + $0x118] sm:$0xff] %vm1019_vm4, %v938_v31 }
 0x189   : > { %973 = vrot.lane.b32.xlu1 %v5033_v39, %s3990_s17  ;;  %v1195_v61 = vpop.permute.xlu0 %1194 }
 0x18a   : > { %1226 = vrot.lane.b32.xlu0 %v4813_v34, %s3990_s17  ;;  %v1447_v34 = vpop.permute.xlu1 %1446  ;;  %v1897_v53 = vld [vmem:[#allocation3 + $0x60] sm:$0xff]  ;;  %1283 = vst.msk [vmem:[#allocation3 + $0x120] sm:$0xff] %vm1019_vm4, %v1195_v61 }
 0x18b   : > { %1537 = vst.msk [vmem:[#allocation3 + $0xd8] sm:$0xff] %vm1019_vm4, %v1447_v34  ;;  %2520 = vmatmul.mubr.f32.gmra.mxu0 %v1897_v53 }
 0x18c   : > { %2524 = vmatprep.mubr.f32.mxu0 %v1903_v58 }
 0x18d   : > { %971 = vrot.lane.b32.xlu1 %v5041_v32, %s3990_s17  ;;  %v1702_v5 = vpop.permute.xlu0 %1701  ;;  %v1916_v8 = vld [vmem:[#allocation3 + $0xf8] sm:$0xff] }
 0x18e   : > { %1228 = vrot.lane.b32.xlu0 %v4838_v48, %s3990_s17  ;;  %v936_v48 = vpop.permute.xlu1 %935  ;;  %1793 = vst.msk [vmem:[#allocation3 + $0xb8] sm:$0xff] %vm1019_vm4, %v1702_v5  ;;  %2314 = vmatprep.mubr.f32.mxu1 %v1916_v8  ;;  %v1920_v20 = vld [vmem:[#allocation3 + $0x118] sm:$0xff] }
 0x18f   : > { %1026 = vst.msk [vmem:[#allocation3 + $0xf0] sm:$0xff] %vm1019_vm4, %v936_v48  ;;  %2525 = vmatmul.mubr.f32.gmra.mxu0 %v1902_v63 }
 0x191   : > { %977 = vrot.lane.b32.xlu1 %v5052_v55, %s3990_s17  ;;  %v1708_v19 = vpop.permute.xlu0 %1707  ;;  %v1921_v62 = vld [vmem:[#allocation3 + $0x120] sm:$0xff] }
 0x192   : > { %1230 = vrot.lane.b32.xlu0 %v4840_v49, %s3990_s17  ;;  %v1445_v49 = vpop.permute.xlu1 %1444  ;;  %1796 = vst.msk [vmem:[#allocation3 + $0x130] sm:$0xff] %vm1019_vm4, %v1708_v19  ;;  %v1912_v37 = vld [vmem:[#allocation3 + $0xd8] sm:$0xff] }
 0x193   : > { %1536 = vst.msk [vmem:[#allocation3 + $0xb0] sm:$0xff] %vm1019_vm4, %v1445_v49 }
 0x195   : > { %975 = vrot.lane.b32.xlu1 %v5060_v1, %s3990_s17  ;;  %v1197_v6 = vpop.permute.xlu0 %1196  ;;  %v1908_v24 = vld [vmem:[#allocation3 + $0xb8] sm:$0xff] }
 0x196   : > { %1232 = vrot.lane.b32.xlu0 %v4864_v59, %s3990_s17  ;;  %v942_v7 = vpop.permute.xlu1 %941  ;;  %v1915_v14 = vld [vmem:[#allocation3 + $0xf0] sm:$0xff]  ;;  %v5076_v59 = vld [vmem:[#allocation2 + $0x151] sm:$0xff]  ;;  %1284 = vst.msk [vmem:[#allocation3 + $0x148] sm:$0xff] %vm1019_vm4, %v1197_v6  ;;  %2529 = vmatprep.mubr.f32.mxu0 %v1908_v24 }
 0x197   : > { %1029 = vst.msk [vmem:[#allocation3 + $0x168] sm:$0xff] %vm1019_vm4, %v942_v7  ;;  %2315 = vmatmul.mubr.f32.gmra.mxu1 %v1915_v14 }
 0x198   : > { %2319 = vmatprep.mubr.f32.mxu1 %v1921_v62 }
 0x199   : > { %981 = vrot.lane.b32.xlu1 %v5068_v4, %s3990_s17 }
 0x19a   : > { %1234 = vrot.lane.b32.xlu0 %v4866_v60, %s3990_s17  ;;  %v1451_v60 = vpop.permute.xlu1 %1450  ;;  %v1907_v26 = vld [vmem:[#allocation3 + $0xb0] sm:$0xff] }
 0x19b   : > { %1539 = vst.msk [vmem:[#allocation3 + $0x128] sm:$0xff] %vm1019_vm4, %v1451_v60  ;;  %2320 = vmatmul.mubr.f32.gmra.mxu1 %v1920_v20  ;;  %2530 = vmatmul.mubr.f32.gmra.mxu0 %v1907_v26 }
 0x19d   : > { %979 = vrot.lane.b32.xlu1 %v5076_v59, %s3990_s17  ;;  %v1926_v41 = vld [vmem:[#allocation3 + $0x148] sm:$0xff] }
 0x19e   : > { %1236 = vrot.lane.b32.xlu0 %v4894_v10, %s3990_s17  ;;  %v940_v27 = vpop.permute.xlu1 %939  ;;  %v1913_v10 = vld [vmem:[#allocation3 + $0xe0] sm:$0xff]  ;;  %2324 = vmatprep.mubr.f32.mxu1 %v1926_v41  ;;  %v1930_v34 = vld [vmem:[#allocation3 + $0x168] sm:$0xff] }
 0x19f   : > { %1028 = vst.msk [vmem:[#allocation3 + $0x140] sm:$0xff] %vm1019_vm4, %v940_v27  ;;  %2534 = vmatprep.mubr.f32.mxu0 %v1913_v10 }
 0x1a0   : > { %2535 = vmatmul.mubr.f32.gmra.mxu0 %v1912_v37 }
 0x1a1   : > { %1464 = vrot.lane.b32.xlu1 %v4718_v40, %s3990_s17  ;;  %v1146_v40 = vld [vmem:[#allocation2 + $0x180] sm:$0xff] }
 0x1a2   : > { %1238 = vrot.lane.b32.xlu0 %v4896_v11, %s3990_s17  ;;  %v1199_v30 = vpop.permute.xlu0 %1198  ;;  %v1449_v11 = vpop.permute.xlu1 %1448 }
 0x1a3   : > { %1285 = vst.msk [vmem:[#allocation3 + $0x170] sm:$0xff] %vm1019_vm4, %v1199_v30  ;;  %1538 = vst.msk [vmem:[#allocation3 + $0x100] sm:$0xff] %vm1019_vm4, %v1449_v11  ;;  %v1596_v11 = vld [vmem:[#allocation2 + $0x1a0] sm:$0xff] }
 0x1a4   : > { %1628 = vst.msk [vmem:[#allocation3 + $0x4f0] sm:$0xff] %vm706_vm2, %v1596_v11  ;;  %v5243_v11 = vld [vmem:[%s5703_s5 + $0x28] sm:$0xff] }
 0x1a5   : > { %983 = vrot.lane.b32.xlu1 %v5093_v29, %s3990_s17 }
 0x1a6   : > { %1240 = vrot.lane.b32.xlu0 %v1146_v40, %s3990_s17  ;;  %v1706_v16 = vpop.permute.xlu0 %1705  ;;  %v946_v31 = vpop.permute.xlu1 %945  ;;  %v1925_v45 = vld [vmem:[#allocation3 + $0x140] sm:$0xff]  ;;  %v1595_v40 = vld [vmem:[#allocation2 + $0x198] sm:$0xff] }
 0x1a7   : > { %1795 = vst.msk [vmem:[#allocation3 + $0x108] sm:$0xff] %vm1019_vm4, %v1706_v16  ;;  %1031 = vst.msk [vmem:[#allocation3 + $0x1b8] sm:$0xff] %vm1019_vm4, %v946_v31  ;;  %2325 = vmatmul.mubr.f32.gmra.mxu1 %v1925_v45  ;;  %v1657_v16 = vld [vmem:[#allocation2 + $0x181] sm:$0xff]  ;;  %v1658_v45 = vld [vmem:[#allocation2 + $0x189] sm:$0xff] }
 0x1a8   : > { %1627 = vst.msk [vmem:[#allocation3 + $0x4c8] sm:$0xff] %vm706_vm2, %v1595_v40 }
 0x1a9   : > { %985 = vrot.lane.b32.xlu1 %v5100_v38, %s3990_s17 }
 0x1aa   : > { %1242 = vrot.lane.b32.xlu0 %v1147_v46, %s3990_s17  ;;  %v1712_v47 = vpop.permute.xlu0 %1711  ;;  %v1931_v50 = vld [vmem:[#allocation3 + $0x170] sm:$0xff] }
 0x1ab   : > { %1798 = vst.msk [vmem:[#allocation3 + $0x180] sm:$0xff] %vm1019_vm4, %v1712_v47  ;;  %2329 = vmatprep.mubr.f32.mxu1 %v1931_v50  ;;  %v1851_v50 = vld [vmem:[#allocation2 + $0x19a] sm:$0xff] }
 0x1ac   : > { %2330 = vmatmul.mubr.f32.gmra.mxu1 %v1930_v34  ;;  %1883 = vst.msk [vmem:[#allocation3 + $0x4d0] sm:$0xff] %vm706_vm2, %v1851_v50 }
 0x1ad   : > { %1466 = vrot.lane.b32.xlu1 %v4696_v28, %s3990_s17  ;;  %v1917_v28 = vld [vmem:[#allocation3 + $0x100] sm:$0xff] }
 0x1ae   : > { %1723 = vrot.lane.b32.xlu0 %v4975_v43, %s3990_s17  ;;  %v1918_v23 = vld [vmem:[#allocation3 + $0x108] sm:$0xff]  ;;  %v1923_v43 = vld [vmem:[#allocation3 + $0x130] sm:$0xff]  ;;  %v1940_v49 = vld [vmem:[#allocation3 + $0x1b8] sm:$0xff] }
 0x1af   : > { %v1455_v33 = vpop.permute.xlu1 %1454  ;;  %2539 = vmatprep.mubr.f32.mxu0 %v1918_v23  ;;  %v1659_v23 = vld [vmem:[#allocation2 + $0x199] sm:$0xff] }
 0x1b0   : > { %1541 = vst.msk [vmem:[#allocation3 + $0x178] sm:$0xff] %vm1019_vm4, %v1455_v33  ;;  %v1201_v17 = vpop.permute.xlu0 %1200  ;;  %2540 = vmatmul.mubr.f32.gmra.mxu0 %v1917_v28 }
 0x1b1   : > { %1468 = vrot.lane.b32.xlu1 %v4742_v52, %s3990_s17  ;;  %1286 = vst.msk [vmem:[#allocation3 + $0x198] sm:$0xff] %vm1019_vm4, %v1201_v17  ;;  %2544 = vmatprep.mubr.f32.mxu0 %v1923_v43  ;;  %v1922_v52 = vld [vmem:[#allocation3 + $0x128] sm:$0xff]  ;;  %v1402_v17 = vld [vmem:[#allocation2 + $0x182] sm:$0xff] }
 0x1b2   : > { %1725 = vrot.lane.b32.xlu0 %v5007_v13, %s3990_s17 }
 0x1b3   : > { %v944_v57 = vpop.permute.xlu1 %943 }
 0x1b4   : > { %1030 = vst.msk [vmem:[#allocation3 + $0x190] sm:$0xff] %vm1019_vm4, %v944_v57  ;;  %v1203_v53 = vpop.permute.xlu0 %1202  ;;  %2545 = vmatmul.mubr.f32.gmra.mxu0 %v1922_v52  ;;  %v1403_v52 = vld [vmem:[#allocation2 + $0x18a] sm:$0xff] }
 0x1b5   : > { %1470 = vrot.lane.b32.xlu1 %v4720_v44, %s3990_s17  ;;  %1287 = vst.msk [vmem:[#allocation3 + $0x1c0] sm:$0xff] %vm1019_vm4, %v1203_v53 }
 0x1b6   : > { %1727 = vrot.lane.b32.xlu0 %v4996_v0, %s3990_s17 }
 0x1b7   : > { %v1453_v48 = vpop.permute.xlu1 %1452 }
 0x1b8   : > { %1540 = vst.msk [vmem:[#allocation3 + $0x150] sm:$0xff] %vm1019_vm4, %v1453_v48  ;;  %v1710_v13 = vpop.permute.xlu0 %1709  ;;  %v1936_v58 = vld [vmem:[#allocation3 + $0x198] sm:$0xff] }
 0x1b9   : > { %1472 = vrot.lane.b32.xlu1 %v4769_v2, %s3990_s17  ;;  %1797 = vst.msk [vmem:[#allocation3 + $0x158] sm:$0xff] %vm1019_vm4, %v1710_v13  ;;  %2334 = vmatprep.mubr.f32.mxu1 %v1936_v58  ;;  %v1660_v48 = vld [vmem:[#allocation2 + $0x1a1] sm:$0xff] }
 0x1ba   : > { %1729 = vrot.lane.b32.xlu0 %v5025_v35, %s3990_s17 }
 0x1bb   : > { %v950_v44 = vpop.permute.xlu1 %949  ;;  %v1935_v61 = vld [vmem:[#allocation3 + $0x190] sm:$0xff] }
 0x1bc   : > { %1033 = vst.msk [vmem:[#allocation3 + $0x208] sm:$0xff] %vm1019_vm4, %v950_v44  ;;  %2335 = vmatmul.mubr.f32.gmra.mxu1 %v1935_v61  ;;  %v1716_v0 = vpop.permute.xlu0 %1715  ;;  %v1941_v63 = vld [vmem:[#allocation3 + $0x1c0] sm:$0xff] }
 0x1bd   : > { %1474 = vrot.lane.b32.xlu1 %v4746_v56, %s3990_s17  ;;  %1800 = vst.msk [vmem:[#allocation3 + $0x1d0] sm:$0xff] %vm1019_vm4, %v1716_v0  ;;  %2339 = vmatprep.mubr.f32.mxu1 %v1941_v63 }
 0x1be   : > { %1731 = vrot.lane.b32.xlu0 %v5017_v22, %s3990_s17  ;;  %v1933_v22 = vld [vmem:[#allocation3 + $0x180] sm:$0xff] }
 0x1bf   : > { %v1459_v2 = vpop.permute.xlu1 %1458  ;;  %v1927_v56 = vld [vmem:[#allocation3 + $0x150] sm:$0xff] }
 0x1c0   : > { %1543 = vst.msk [vmem:[#allocation3 + $0x1c8] sm:$0xff] %vm1019_vm4, %v1459_v2  ;;  %2340 = vmatmul.mubr.f32.gmra.mxu1 %v1940_v49  ;;  %v1205_v35 = vpop.permute.xlu0 %1204  ;;  %v1928_v5 = vld [vmem:[#allocation3 + $0x158] sm:$0xff] }
 0x1c1   : > { %1476 = vrot.lane.b32.xlu1 %v4793_v21, %s3990_s17  ;;  %1288 = vst.msk [vmem:[#allocation3 + $0x1e8] sm:$0xff] %vm1019_vm4, %v1205_v35  ;;  %2549 = vmatprep.mubr.f32.mxu0 %v1928_v5  ;;  %v1932_v21 = vld [vmem:[#allocation3 + $0x178] sm:$0xff]  ;;  %v5212_v5 = vld [vmem:[%s5703_s5 + $0x38] sm:$0xff] }
 0x1c2   : > { %1733 = vrot.lane.b32.xlu0 %v5041_v32, %s3990_s17  ;;  %2550 = vmatmul.mubr.f32.gmra.mxu0 %v1927_v56 }
 0x1c3   : > { %v948_v8 = vpop.permute.xlu1 %947  ;;  %2554 = vmatprep.mubr.f32.mxu0 %v1933_v22  ;;  %v1950_v60 = vld [vmem:[#allocation3 + $0x208] sm:$0xff]  ;;  %3806 = vmatprep.subr.mxu0 %v5212_v5 }
 0x1c4   : > { %1032 = vst.msk [vmem:[#allocation3 + $0x1e0] sm:$0xff] %vm1019_vm4, %v948_v8  ;;  %v1207_v7 = vpop.permute.xlu0 %1206  ;;  %3807 = vmatpush3.msra.mxu0 %v5212_v5  ;;  %3870 = vmatprep.subr.mxu1 %v5212_v5 }
 0x1c5   : > { %1478 = vrot.lane.b32.xlu1 %v4773_v9, %s3990_s17  ;;  %1289 = vst.msk [vmem:[#allocation3 + $0x210] sm:$0xff] %vm1019_vm4, %v1207_v7 }
 0x1c6   : > { %1735 = vrot.lane.b32.xlu0 %v5033_v39, %s3990_s17  ;;  %2555 = vmatmul.mubr.f32.gmra.mxu0 %v1932_v21 }
 0x1c7   : > { %v1457_v14 = vpop.permute.xlu1 %1456 }
 0x1c8   : > { %1542 = vst.msk [vmem:[#allocation3 + $0x1a0] sm:$0xff] %vm1019_vm4, %v1457_v14  ;;  %v1714_v32 = vpop.permute.xlu0 %1713  ;;  %v1946_v18 = vld [vmem:[#allocation3 + $0x1e8] sm:$0xff] }
 0x1c9   : > { %1480 = vrot.lane.b32.xlu1 %v4820_v15, %s3990_s17  ;;  %1799 = vst.msk [vmem:[#allocation3 + $0x1a8] sm:$0xff] %vm1019_vm4, %v1714_v32  ;;  %2344 = vmatprep.mubr.f32.mxu1 %v1946_v18 }
 0x1ca   : > { %1737 = vrot.lane.b32.xlu0 %v5060_v1, %s3990_s17 }
 0x1cb   : > { %v954_v9 = vpop.permute.xlu1 %953  ;;  %v1945_v19 = vld [vmem:[#allocation3 + $0x1e0] sm:$0xff] }
 0x1cc   : > { %1035 = vst.msk [vmem:[#allocation3 + $0x258] sm:$0xff] %vm1019_vm4, %v954_v9  ;;  %2345 = vmatmul.mubr.f32.gmra.mxu1 %v1945_v19  ;;  %v1720_v39 = vpop.permute.xlu0 %1719  ;;  %v1951_v62 = vld [vmem:[#allocation3 + $0x210] sm:$0xff] }
 0x1cd   : > { %1482 = vrot.lane.b32.xlu1 %v4797_v25, %s3990_s17  ;;  %1802 = vst.msk [vmem:[#allocation3 + $0x220] sm:$0xff] %vm1019_vm4, %v1720_v39  ;;  %2349 = vmatprep.mubr.f32.mxu1 %v1951_v62 }
 0x1ce   : > { %1739 = vrot.lane.b32.xlu0 %v5052_v55, %s3990_s17  ;;  %v1943_v55 = vld [vmem:[#allocation3 + $0x1d0] sm:$0xff] }
 0x1cf   : > { %v1463_v15 = vpop.permute.xlu1 %1462  ;;  %v1937_v25 = vld [vmem:[#allocation3 + $0x1a0] sm:$0xff] }
 0x1d0   : > { %1545 = vst.msk [vmem:[#allocation3 + $0x218] sm:$0xff] %vm1019_vm4, %v1463_v15  ;;  %2350 = vmatmul.mubr.f32.gmra.mxu1 %v1950_v60  ;;  %v1209_v1 = vpop.permute.xlu0 %1208  ;;  %v1938_v20 = vld [vmem:[#allocation3 + $0x1a8] sm:$0xff] }
 0x1d1   : > { %1484 = vrot.lane.b32.xlu1 %v4846_v51, %s3990_s17  ;;  %1290 = vst.msk [vmem:[#allocation3 + $0x238] sm:$0xff] %vm1019_vm4, %v1209_v1  ;;  %2559 = vmatprep.mubr.f32.mxu0 %v1938_v20  ;;  %v1942_v51 = vld [vmem:[#allocation3 + $0x1c8] sm:$0xff] }
 0x1d2   : > { %1741 = vrot.lane.b32.xlu0 %v5076_v59, %s3990_s17  ;;  %2560 = vmatmul.mubr.f32.gmra.mxu0 %v1937_v25  ;;  %v5228_v25 = vld [vmem:[%s5703_s5 + $0x30] sm:$0xff] }
 0x1d3   : > { %v952_v6 = vpop.permute.xlu1 %951  ;;  %2564 = vmatprep.mubr.f32.mxu0 %v1943_v55  ;;  %3808 = vmatprep.subr.mxu0 %v5228_v25 }
 0x1d4   : > { %1034 = vst.msk [vmem:[#allocation3 + $0x230] sm:$0xff] %vm1019_vm4, %v952_v6  ;;  %v1211_v24 = vpop.permute.xlu0 %1210  ;;  %v1953_v46 = vld [vmem:[#allocation3 + $0x220] sm:$0xff]  ;;  %3809 = vmatpush3.msra.mxu0 %v5228_v25 }
 0x1d5   : > { %1486 = vrot.lane.b32.xlu1 %v4826_v42, %s3990_s17  ;;  %1291 = vst.msk [vmem:[#allocation3 + $0x260] sm:$0xff] %vm1019_vm4, %v1211_v24  ;;  %3810 = vmatprep.subr.mxu0 %v5243_v11 }
 0x1d6   : > { %1743 = vrot.lane.b32.xlu0 %v5068_v4, %s3990_s17  ;;  %2565 = vmatmul.mubr.f32.gmra.mxu0 %v1942_v51 }
 0x1d7   : > { %v1461_v26 = vpop.permute.xlu1 %1460  ;;  %v1952_v47 = vld [vmem:[#allocation3 + $0x218] sm:$0xff]  ;;  %3811 = vmatpush3.msra.mxu0 %v5243_v11 }
 0x1d8   : > { %1544 = vst.msk [vmem:[#allocation3 + $0x1f0] sm:$0xff] %vm1019_vm4, %v1461_v26  ;;  %v1718_v59 = vpop.permute.xlu0 %1717  ;;  %v1956_v27 = vld [vmem:[#allocation3 + $0x238] sm:$0xff] }
 0x1d9   : > { %1488 = vrot.lane.b32.xlu1 %v4873_v54, %s3990_s17  ;;  %1801 = vst.msk [vmem:[#allocation3 + $0x1f8] sm:$0xff] %vm1019_vm4, %v1718_v59  ;;  %2354 = vmatprep.mubr.f32.mxu1 %v1956_v27 }
 0x1da   : > { %1745 = vrot.lane.b32.xlu0 %v5093_v29, %s3990_s17  ;;  %v1960_v29 = vld [vmem:[#allocation3 + $0x258] sm:$0xff] }
 0x1db   : > { %v958_v42 = vpop.permute.xlu1 %957  ;;  %v1955_v10 = vld [vmem:[#allocation3 + $0x230] sm:$0xff] }
 0x1dc   : > { %1037 = vst.msk [vmem:[#allocation3 + $0x2a8] sm:$0xff] %vm1019_vm4, %v958_v42  ;;  %2355 = vmatmul.mubr.f32.gmra.mxu1 %v1955_v10  ;;  %v1213_v4 = vpop.permute.xlu0 %1212  ;;  %v1961_v30 = vld [vmem:[#allocation3 + $0x260] sm:$0xff] }
 0x1dd   : > { %1490 = vrot.lane.b32.xlu1 %v4854_v36, %s3990_s17  ;;  %1292 = vst.msk [vmem:[#allocation3 + $0x288] sm:$0xff] %vm1019_vm4, %v1213_v4  ;;  %2359 = vmatprep.mubr.f32.mxu1 %v1961_v30 }
 0x1de   : > { %1747 = vrot.lane.b32.xlu0 %v5100_v38, %s3990_s17 }
 0x1df   : > { %v956_v54 = vpop.permute.xlu1 %955  ;;  %v1947_v41 = vld [vmem:[#allocation3 + $0x1f0] sm:$0xff] }
 0x1e0   : > { %1036 = vst.msk [vmem:[#allocation3 + $0x280] sm:$0xff] %vm1019_vm4, %v956_v54  ;;  %2360 = vmatmul.mubr.f32.gmra.mxu1 %v1960_v29  ;;  %v1215_v37 = vpop.permute.xlu0 %1214  ;;  %v1948_v36 = vld [vmem:[#allocation3 + $0x1f8] sm:$0xff] }
 0x1e1   : > { %1492 = vrot.lane.b32.xlu1 %v4902_v12, %s3990_s17  ;;  %1293 = vst.msk [vmem:[#allocation3 + $0x2b0] sm:$0xff] %vm1019_vm4, %v1215_v37  ;;  %2569 = vmatprep.mubr.f32.mxu0 %v1948_v36 }
 0x1e2   : > { %1749 = vrot.lane.b32.xlu0 %v1657_v16, %s3990_s17  ;;  %2570 = vmatmul.mubr.f32.gmra.mxu0 %v1947_v41 }
 0x1e3   : > { %v962_v38 = vpop.permute.xlu1 %961  ;;  %2574 = vmatprep.mubr.f32.mxu0 %v1953_v46  ;;  %v1970_v53 = vld [vmem:[#allocation3 + $0x2a8] sm:$0xff] }
 0x1e4   : > { %1039 = vst.msk [vmem:[#allocation3 + $0x2f8] sm:$0xff] %vm1019_vm4, %v962_v38  ;;  %v1722_v31 = vpop.permute.xlu0 %1721  ;;  %v1966_v12 = vld [vmem:[#allocation3 + $0x288] sm:$0xff] }
 0x1e5   : > { %1494 = vrot.lane.b32.xlu1 %v4884_v3, %s3990_s17  ;;  %1803 = vst.msk [vmem:[#allocation3 + $0x248] sm:$0xff] %vm1019_vm4, %v1722_v31  ;;  %2364 = vmatprep.mubr.f32.mxu1 %v1966_v12  ;;  %v1852_v3 = vld [vmem:[#allocation2 + $0x1a2] sm:$0xff] }
 0x1e6   : > { %1751 = vrot.lane.b32.xlu0 %v1658_v45, %s3990_s17  ;;  %2575 = vmatmul.mubr.f32.gmra.mxu0 %v1952_v47  ;;  %1884 = vst.msk [vmem:[#allocation3 + $0x4f8] sm:$0xff] %vm706_vm2, %v1852_v3 }
 0x1e7   : > { %v960_v33 = vpop.permute.xlu1 %959  ;;  %v1965_v34 = vld [vmem:[#allocation3 + $0x280] sm:$0xff] }
 0x1e8   : > { %1038 = vst.msk [vmem:[#allocation3 + $0x2d0] sm:$0xff] %vm1019_vm4, %v960_v33  ;;  %2365 = vmatmul.mubr.f32.gmra.mxu1 %v1965_v34  ;;  %v1217_v28 = vpop.permute.xlu0 %1216  ;;  %v1971_v57 = vld [vmem:[#allocation3 + $0x2b0] sm:$0xff] }
 0x1e9   : > { %1496 = vrot.lane.b32.xlu1 %v1402_v17, %s3990_s17  ;;  %1294 = vst.msk [vmem:[#allocation3 + $0x2d8] sm:$0xff] %vm1019_vm4, %v1217_v28  ;;  %2369 = vmatprep.mubr.f32.mxu1 %v1971_v57 }
 0x1ea   : > { %1753 = vrot.lane.b32.xlu0 %v1659_v23, %s3990_s17 }
 0x1eb   : > { %v966_v43 = vpop.permute.xlu1 %965  ;;  %v1980_v56 = vld [vmem:[#allocation3 + $0x2f8] sm:$0xff] }
 0x1ec   : > { %1041 = vst.msk [vmem:[#allocation3 + $0x348] sm:$0xff] %vm1019_vm4, %v966_v43  ;;  %2370 = vmatmul.mubr.f32.gmra.mxu1 %v1970_v53  ;;  %v1219_v13 = vpop.permute.xlu0 %1218  ;;  %v1958_v58 = vld [vmem:[#allocation3 + $0x248] sm:$0xff]  ;;  %v2931_v53 = vld [vmem:[%s5703_s5 + $0x20] sm:$0xff] }
 0x1ed   : > { %1498 = vrot.lane.b32.xlu1 %v1403_v52, %s3990_s17  ;;  %1295 = vst.msk [vmem:[#allocation3 + $0x300] sm:$0xff] %vm1019_vm4, %v1219_v13  ;;  %2579 = vmatprep.mubr.f32.mxu0 %v1958_v58  ;;  %v1889_v13 = vld [vmem:[#allocation3 + $0x20] sm:$0xff] }
 0x1ee   : > { %1755 = vrot.lane.b32.xlu0 %v1660_v48, %s3990_s17  ;;  %3812 = vmatprep.subr.mxu0 %v2931_v53  ;;  %s3991_s17 = smov [#allocation4]  }
 0x1ef   : > { %v964_v44 = vpop.permute.xlu1 %963  ;;  %v1975_v63 = vld [vmem:[#allocation3 + $0x2d0] sm:$0xff]  ;;  %3813 = vmatpush3.msra.mxu0 %v2931_v53  ;;  %s3931_s22 = sshll.u32 %s3991_s17, 4  ;;  %s3932_s22 = int_to_ptr.vmem [resolvable:$false] %s3931_s22 }
 0x1f0   : > { %1040 = vst.msk [vmem:[#allocation3 + $0x320] sm:$0xff] %vm1019_vm4, %v964_v44  ;;  %v1221_v61 = vpop.permute.xlu0 %1220  ;;  %v1976_v0 = vld [vmem:[#allocation3 + $0x2d8] sm:$0xff]  ;;  %s3933_s9 = scalar_lea.vmem %s3932_s22, 32  ;;  %p3934_p0 = scmp.lt.s32.totalorder %s3408_s12, %s3932_s22 }
 0x1f1   : > { %1296 = vst.msk [vmem:[#allocation3 + $0x328] sm:$0xff] %vm1019_vm4, %v1221_v61  ;;  %2374 = vmatprep.mubr.f32.mxu1 %v1976_v0  ;;  %v1894_v0 = vld [vmem:[#allocation3 + $0x48] sm:$0xff]  ;;  %p3935_p1 = scmp.lt.s32.totalorder %s3933_s9, %s3927_s21 }
 0x1f2   : > { %2375 = vmatmul.mubr.f32.gmra.mxu1 %v1975_v63 }
 0x1f3   : > { %v970_v2 = vpop.permute.xlu1 %969  ;;  %v1990_v9 = vld [vmem:[#allocation3 + $0x348] sm:$0xff]  ;;  %p3936_p2 = por %p3935_p1, %p3934_p0 }
 0x1f4   : > { %1043 = vst.msk [vmem:[#allocation3 + $0x398] sm:$0xff] %vm1019_vm4, %v970_v2  ;;  %v1223_v49 = vpop.permute.xlu0 %1222  ;;  %v1981_v35 = vld [vmem:[#allocation3 + $0x300] sm:$0xff]  ;;  %v1899_v2 = vld [vmem:[#allocation3 + $0x70] sm:$0xff] }
 0x1f5   : > { %1297 = vst.msk [vmem:[#allocation3 + $0x350] sm:$0xff] %vm1019_vm4, %v1223_v49  ;;  %2379 = vmatprep.mubr.f32.mxu1 %v1981_v35  ;;  %p3937_p3 = pnand %p3936_p2, %p3930_p13 }
 0x1f6   : > { %2380 = vmatmul.mubr.f32.gmra.mxu1 %v1980_v56 }
 0x1f7   : > { %v968_v8 = vpop.permute.xlu1 %967  ;;  %v1985_v21 = vld [vmem:[#allocation3 + $0x320] sm:$0xff] }
 0x1f8   : > { %1042 = vst.msk [vmem:[#allocation3 + $0x370] sm:$0xff] %vm1019_vm4, %v968_v8  ;;  %v1225_v22 = vpop.permute.xlu0 %1224  ;;  %v1986_v7 = vld [vmem:[#allocation3 + $0x328] sm:$0xff]  ;;  %v1904_v8 = vld [vmem:[#allocation3 + $0x98] sm:$0xff] }
 0x1f9   : > { %1298 = vst.msk [vmem:[#allocation3 + $0x378] sm:$0xff] %vm1019_vm4, %v1225_v22  ;;  %2384 = vmatprep.mubr.f32.mxu1 %v1986_v7  ;;  %v1909_v7 = vld [vmem:[#allocation3 + $0xc0] sm:$0xff] }
 0x1fa   : > { %2385 = vmatmul.mubr.f32.gmra.mxu1 %v1985_v21 }
 0x1fb   : > { %v974_v14 = vpop.permute.xlu1 %973  ;;  %v2000_v6 = vld [vmem:[#allocation3 + $0x398] sm:$0xff] }
 0x1fc   : > { %1045 = vst.msk [vmem:[#allocation3 + $0x3e8] sm:$0xff] %vm1019_vm4, %v974_v14  ;;  %v1227_v32 = vpop.permute.xlu0 %1226  ;;  %v1991_v18 = vld [vmem:[#allocation3 + $0x350] sm:$0xff] }
 0x1fd   : > { %1299 = vst.msk [vmem:[#allocation3 + $0x3a0] sm:$0xff] %vm1019_vm4, %v1227_v32  ;;  %2389 = vmatprep.mubr.f32.mxu1 %v1991_v18  ;;  %v1914_v32 = vld [vmem:[#allocation3 + $0xe8] sm:$0xff] }
 0x1fe   : > { %2390 = vmatmul.mubr.f32.gmra.mxu1 %v1990_v9 }
 0x1ff   : > { %v972_v19 = vpop.permute.xlu1 %971  ;;  %v1995_v15 = vld [vmem:[#allocation3 + $0x370] sm:$0xff] }
 0x200   : > { %1044 = vst.msk [vmem:[#allocation3 + $0x3c0] sm:$0xff] %vm1019_vm4, %v972_v19  ;;  %v1229_v39 = vpop.permute.xlu0 %1228  ;;  %v1996_v62 = vld [vmem:[#allocation3 + $0x378] sm:$0xff]  ;;  %v1919_v19 = vld [vmem:[#allocation3 + $0x110] sm:$0xff] }
 0x201   : > { %1300 = vst.msk [vmem:[#allocation3 + $0x3c8] sm:$0xff] %vm1019_vm4, %v1229_v39  ;;  %2394 = vmatprep.mubr.f32.mxu1 %v1996_v62 }
 0x202   : > { %2395 = vmatmul.mubr.f32.gmra.mxu1 %v1995_v15 }
 0x203   : > { %v978_v60 = vpop.permute.xlu1 %977  ;;  %v2010_v10 = vld [vmem:[#allocation3 + $0x3e8] sm:$0xff] }
 0x204   : > { %1047 = vst.msk [vmem:[#allocation3 + $0x438] sm:$0xff] %vm1019_vm4, %v978_v60  ;;  %v1231_v1 = vpop.permute.xlu0 %1230  ;;  %v2001_v20 = vld [vmem:[#allocation3 + $0x3a0] sm:$0xff]  ;;  %v2930_v60 = vld [vmem:[%s5703_s5 + $0x18] sm:$0xff] }
 0x205   : > { %1301 = vst.msk [vmem:[#allocation3 + $0x3f0] sm:$0xff] %vm1019_vm4, %v1231_v1  ;;  %2399 = vmatprep.mubr.f32.mxu1 %v2001_v20  ;;  %v1924_v20 = vld [vmem:[#allocation3 + $0x138] sm:$0xff]  ;;  %3814 = vmatprep.subr.mxu0 %v2930_v60 }
 0x206   : > { %2400 = vmatmul.mubr.f32.gmra.mxu1 %v2000_v6  ;;  %v1929_v6 = vld [vmem:[#allocation3 + $0x160] sm:$0xff]  ;;  %3815 = vmatpush3.msra.mxu0 %v2930_v60 }
 0x207   : > { %v976_v55 = vpop.permute.xlu1 %975  ;;  %v2005_v26 = vld [vmem:[#allocation3 + $0x3c0] sm:$0xff] }
 0x208   : > { %1046 = vst.msk [vmem:[#allocation3 + $0x410] sm:$0xff] %vm1019_vm4, %v976_v55  ;;  %v1233_v24 = vpop.permute.xlu0 %1232  ;;  %v2006_v51 = vld [vmem:[#allocation3 + $0x3c8] sm:$0xff] }
 0x209   : > { %1302 = vst.msk [vmem:[#allocation3 + $0x418] sm:$0xff] %vm1019_vm4, %v1233_v24  ;;  %2404 = vmatprep.mubr.f32.mxu1 %v2006_v51 }
 0x20a   : > { %2405 = vmatmul.mubr.f32.gmra.mxu1 %v2005_v26 }
 0x20b   : > { %v982_v59 = vpop.permute.xlu1 %981  ;;  %v2020_v16 = vld [vmem:[#allocation3 + $0x438] sm:$0xff] }
 0x20c   : > { %1049 = vst.msk [vmem:[#allocation3 + $0x488] sm:$0xff] %vm1019_vm4, %v982_v59  ;;  %v1235_v27 = vpop.permute.xlu0 %1234  ;;  %v2011_v42 = vld [vmem:[#allocation3 + $0x3f0] sm:$0xff]  ;;  %v1934_v59 = vld [vmem:[#allocation3 + $0x188] sm:$0xff] }
 0x20d   : > { %1303 = vst.msk [vmem:[#allocation3 + $0x440] sm:$0xff] %vm1019_vm4, %v1235_v27  ;;  %2409 = vmatprep.mubr.f32.mxu1 %v2011_v42 }
 0x20e   : > { %2410 = vmatmul.mubr.f32.gmra.mxu1 %v2010_v10  ;;  %v1939_v10 = vld [vmem:[#allocation3 + $0x1b0] sm:$0xff] }
 0x20f   : > { %v980_v4 = vpop.permute.xlu1 %979  ;;  %v2015_v54 = vld [vmem:[#allocation3 + $0x410] sm:$0xff] }
 0x210   : > { %1048 = vst.msk [vmem:[#allocation3 + $0x460] sm:$0xff] %vm1019_vm4, %v980_v4  ;;  %v1237_v30 = vpop.permute.xlu0 %1236  ;;  %v2016_v40 = vld [vmem:[#allocation3 + $0x418] sm:$0xff] }
 0x211   : > { %1304 = vst.msk [vmem:[#allocation3 + $0x468] sm:$0xff] %vm1019_vm4, %v1237_v30  ;;  %2414 = vmatprep.mubr.f32.mxu1 %v2016_v40 }
 0x212   : > { %2415 = vmatmul.mubr.f32.gmra.mxu1 %v2015_v54 }
 0x213   : > { %v1465_v29 = vpop.permute.xlu1 %1464  ;;  %v2030_v33 = vld [vmem:[#allocation3 + $0x488] sm:$0xff] }
 0x214   : > { %1546 = vst.msk [vmem:[#allocation3 + $0x240] sm:$0xff] %vm1019_vm4, %v1465_v29  ;;  %v1239_v37 = vpop.permute.xlu0 %1238  ;;  %v2021_v36 = vld [vmem:[#allocation3 + $0x440] sm:$0xff]  ;;  %v1944_v29 = vld [vmem:[#allocation3 + $0x1d8] sm:$0xff] }
 0x215   : > { %1305 = vst.msk [vmem:[#allocation3 + $0x490] sm:$0xff] %vm1019_vm4, %v1239_v37  ;;  %2419 = vmatprep.mubr.f32.mxu1 %v2021_v36  ;;  %v5295_v37 = vld [vmem:[%s5702_s4] ss:$0 sm:$0xff] }
 0x216   : > { %2420 = vmatmul.mubr.f32.gmra.mxu1 %v2020_v16  ;;  %v1949_v16 = vld [vmem:[#allocation3 + $0x200] sm:$0xff] }
 0x217   : > { %v984_v41 = vpop.permute.xlu1 %983  ;;  %v2025_v31 = vld [vmem:[#allocation3 + $0x460] sm:$0xff] }
 0x218   : > { %1050 = vst.msk [vmem:[#allocation3 + $0x4b0] sm:$0xff] %vm1019_vm4, %v984_v41  ;;  %v1241_v38 = vpop.permute.xlu0 %1240  ;;  %v2026_v46 = vld [vmem:[#allocation3 + $0x468] sm:$0xff] }
 0x219   : > { %1306 = vst.msk [vmem:[#allocation3 + $0x4b8] sm:$0xff] %vm1019_vm4, %v1241_v38  ;;  %2424 = vmatprep.mubr.f32.mxu1 %v2026_v46 }
 0x21a   : > { %2425 = vmatmul.mubr.f32.gmra.mxu1 %v2025_v31 }
 0x21b   : > { %v986_v12 = vpop.permute.xlu1 %985  ;;  %v1957_v45 = vld [vmem:[#allocation3 + $0x240] sm:$0xff] }
 0x21c   : > { %1051 = vst.msk [vmem:[#allocation3 + $0x4d8] sm:$0xff] %vm1019_vm4, %v986_v12  ;;  %2580 = vmatmul.mubr.f32.gmra.mxu0 %v1957_v45  ;;  %v1243_v47 = vpop.permute.xlu0 %1242  ;;  %v2031_v50 = vld [vmem:[#allocation3 + $0x490] sm:$0xff]  ;;  %v1954_v45 = vld [vmem:[#allocation3 + $0x228] sm:$0xff] }
 0x21d   : > { %1307 = vst.msk [vmem:[#allocation3 + $0x4e0] sm:$0xff] %vm1019_vm4, %v1243_v47  ;;  %2429 = vmatprep.mubr.f32.mxu1 %v2031_v50 }
 0x21e   : > { %2430 = vmatmul.mubr.f32.gmra.mxu1 %v2030_v33  ;;  %v1959_v33 = vld [vmem:[#allocation3 + $0x250] sm:$0xff] }
 0x21f   : > { %v1467_v34 = vpop.permute.xlu1 %1466  ;;  %v2035_v3 = vld [vmem:[#allocation3 + $0x4b0] sm:$0xff] }
 0x220   : > { %1547 = vst.msk [vmem:[#allocation3 + $0x268] sm:$0xff] %vm1019_vm4, %v1467_v34  ;;  %v1724_v17 = vpop.permute.xlu0 %1723  ;;  %v2036_v23 = vld [vmem:[#allocation3 + $0x4b8] sm:$0xff] }
 0x221   : > { %1804 = vst.msk [vmem:[#allocation3 + $0x270] sm:$0xff] %vm1019_vm4, %v1724_v17  ;;  %2434 = vmatprep.mubr.f32.mxu1 %v2036_v23 }
 0x222   : > { %2435 = vmatmul.mubr.f32.gmra.mxu1 %v2035_v3 }
 0x223   : > { %v1469_v28 = vpop.permute.xlu1 %1468  ;;  %v2040_v52 = vld [vmem:[#allocation3 + $0x4d8] sm:$0xff] }
 0x224   : > { %1548 = vst.msk [vmem:[#allocation3 + $0x290] sm:$0xff] %vm1019_vm4, %v1469_v28  ;;  %v1726_v57 = vpop.permute.xlu0 %1725  ;;  %v2041_v43 = vld [vmem:[#allocation3 + $0x4e0] sm:$0xff] }
 0x225   : > { %1805 = vst.msk [vmem:[#allocation3 + $0x298] sm:$0xff] %vm1019_vm4, %v1726_v57  ;;  %2439 = vmatprep.mubr.f32.mxu1 %v2041_v43  ;;  %v2929_v57 = vld [vmem:[%s5703_s5 + $0x10] sm:$0xff] }
 0x226   : > { %2440 = vmatmul.mubr.f32.gmra.mxu1 %v2040_v52  ;;  %v1964_v52 = vld [vmem:[#allocation3 + $0x278] sm:$0xff]  ;;  %3816 = vmatprep.subr.mxu0 %v2929_v57 }
 0x227   : > { %v1471_v48 = vpop.permute.xlu1 %1470  ;;  %3758 = vmatprep.mubr.msk.f32.mxu1 %vm706_vm2, %v1889_v13  ;;  %v1962_v61 = vld [vmem:[#allocation3 + $0x268] sm:$0xff]  ;;  %v2286_v18 = vpop.f32.mrf.mxu1  ;;  %3817 = vmatpush3.msra.mxu0 %v2929_v57 }
 0x228   : > { %1549 = vst.msk [vmem:[#allocation3 + $0x2b8] sm:$0xff] %vm1019_vm4, %v1471_v48  ;;  %v1728_v58 = vpop.permute.xlu0 %1727  ;;  %v1963_v44 = vld [vmem:[#allocation3 + $0x270] sm:$0xff]  ;;  %v2287_v31 = vadd.f32 %v5295_v37, %v2286_v18  ;;  %v1989_v18 = vld [vmem:[#allocation3 + $0x340] sm:$0xff] }
 0x229   : > { %1806 = vst.msk [vmem:[#allocation3 + $0x2c0] sm:$0xff] %vm1019_vm4, %v1728_v58  ;;  %2584 = vmatprep.mubr.f32.mxu0 %v1963_v44  ;;  %v2288_v39 = vpop.f32.mrf.mxu1  ;;  %v1969_v58 = vld [vmem:[#allocation3 + $0x2a0] sm:$0xff] }
 0x22a   : > { %2585 = vmatmul.mubr.f32.gmra.mxu0 %v1962_v61  ;;  %3759 = vmatmul.mubr.msk.f32.vlgmr.msra.gmra.mxu1 %vm706_vm2, %v1894_v0 }
 0x22b   : > { %v1473_v63 = vpop.permute.xlu1 %1472  ;;  %3761 = vmatprep.mubr.msk.f32.mxu1 %vm706_vm2, %v1899_v2  ;;  %3878 = vmatpush3.msra.mxu1 %v5212_v5  ;;  %v1967_v56 = vld [vmem:[#allocation3 + $0x290] sm:$0xff] }
 0x22c   : > { %1550 = vst.msk [vmem:[#allocation3 + $0x2e0] sm:$0xff] %vm1019_vm4, %v1473_v63  ;;  %v1730_v49 = vpop.permute.xlu0 %1729  ;;  %v1968_v35 = vld [vmem:[#allocation3 + $0x298] sm:$0xff]  ;;  %3871 = vmatprep.subr.mxu1 %v5228_v25 }
 0x22d   : > { %1807 = vst.msk [vmem:[#allocation3 + $0x2e8] sm:$0xff] %vm1019_vm4, %v1730_v49  ;;  %2589 = vmatprep.mubr.f32.mxu0 %v1968_v35  ;;  %3879 = vmatpush3.msra.mxu1 %v5228_v25  ;;  %v2291_v55 = vpop.f32.mrf.mxu1  ;;  %v1974_v49 = vld [vmem:[#allocation3 + $0x2c8] sm:$0xff] }
 0x22e   : > { %2590 = vmatmul.mubr.f32.gmra.mxu0 %v1967_v56  ;;  %3762 = vmatmul.mubr.msk.f32.gmra.mxu1 %vm706_vm2, %v1904_v8  ;;  %v2292_v43 = vadd.f32 %v5295_v37, %v2291_v55  ;;  %v1979_v56 = vld [vmem:[#allocation3 + $0x2f0] sm:$0xff] }
 0x22f   : > { %v1475_v22 = vpop.permute.xlu1 %1474  ;;  %3764 = vmatprep.mubr.msk.f32.mxu1 %vm706_vm2, %v1909_v7  ;;  %3872 = vmatprep.subr.mxu1 %v5243_v11  ;;  %v1972_v14 = vld [vmem:[#allocation3 + $0x2b8] sm:$0xff]  ;;  %v2293_v27 = vpop.f32.mrf.mxu1 }
 0x230   : > { %1551 = vst.msk [vmem:[#allocation3 + $0x308] sm:$0xff] %vm1019_vm4, %v1475_v22  ;;  %v1732_v5 = vpop.permute.xlu0 %1731  ;;  %v1973_v21 = vld [vmem:[#allocation3 + $0x2c0] sm:$0xff]  ;;  %3880 = vmatpush3.msra.mxu1 %v5243_v11 }
 0x231   : > { %1808 = vst.msk [vmem:[#allocation3 + $0x310] sm:$0xff] %vm1019_vm4, %v1732_v5  ;;  %2594 = vmatprep.mubr.f32.mxu0 %v1973_v21  ;;  %3873 = vmatprep.subr.mxu1 %v2931_v53 }
 0x232   : > { %2595 = vmatmul.mubr.f32.gmra.mxu0 %v1972_v14  ;;  %3765 = vmatmul.mubr.msk.f32.gmra.mxu1 %vm706_vm2, %v1914_v32  ;;  %v5289_v30 = vpop.f32.mrf.mxu1  ;;  %v1984_v14 = vld [vmem:[#allocation3 + $0x318] sm:$0xff] }
 0x233   : > { %v1477_v9 = vpop.permute.xlu1 %1476  ;;  %3767 = vmatprep.mubr.msk.f32.mxu1 %vm706_vm2, %v1919_v19  ;;  %3881 = vmatpush3.msra.mxu1 %v2931_v53  ;;  %v1977_v1 = vld [vmem:[#allocation3 + $0x2e0] sm:$0xff] }
 0x234   : > { %1552 = vst.msk [vmem:[#allocation3 + $0x330] sm:$0xff] %vm1019_vm4, %v1477_v9  ;;  %v1734_v62 = vpop.permute.xlu0 %1733  ;;  %v1978_v15 = vld [vmem:[#allocation3 + $0x2e8] sm:$0xff]  ;;  %3874 = vmatprep.subr.mxu1 %v2930_v60  ;;  %v2298_v11 = vpop.f32.mrf.mxu1 }
 0x235   : > { %1809 = vst.msk [vmem:[#allocation3 + $0x338] sm:$0xff] %vm1019_vm4, %v1734_v62  ;;  %2599 = vmatprep.mubr.f32.mxu0 %v1978_v15  ;;  %3882 = vmatpush3.msra.mxu1 %v2930_v60  ;;  %v2297_v62 = vadd.f32 %v5295_v37, %v5289_v30 }
 0x236   : > { %2600 = vmatmul.mubr.f32.gmra.mxu0 %v1977_v1  ;;  %3768 = vmatmul.mubr.msk.f32.gmra.mxu1 %vm706_vm2, %v1924_v20  ;;  %v5300_v38 = vpop.f32.mrf.mxu1  ;;  %v1994_v1 = vld [vmem:[#allocation3 + $0x368] sm:$0xff] }
 0x237   : > { %v1479_v25 = vpop.permute.xlu1 %1478  ;;  %3770 = vmatprep.mubr.msk.f32.mxu1 %vm706_vm2, %v1929_v6  ;;  %v1982_v26 = vld [vmem:[#allocation3 + $0x308] sm:$0xff]  ;;  %3875 = vmatprep.subr.mxu1 %v2929_v57  ;;  %v1999_v6 = vld [vmem:[#allocation3 + $0x390] sm:$0xff]  ;;  %v2302_v27 = vadd.f32 %v5295_v37, %v5300_v38 }
 0x238   : > { %1553 = vst.msk [vmem:[#allocation3 + $0x358] sm:$0xff] %vm1019_vm4, %v1479_v25  ;;  %v1736_v24 = vpop.permute.xlu0 %1735  ;;  %v1983_v51 = vld [vmem:[#allocation3 + $0x310] sm:$0xff]  ;;  %v2511_v47 = vpop.f32.mrf.mxu0  ;;  %3883 = vmatpush3.msra.mxu1 %v2929_v57 }
 0x239   : > { %1810 = vst.msk [vmem:[#allocation3 + $0x360] sm:$0xff] %vm1019_vm4, %v1736_v24  ;;  %2604 = vmatprep.mubr.f32.mxu0 %v1983_v51  ;;  %v5305_v34 = vadd.f32 %v2511_v47, %v2287_v31  ;;  %v2303_v17 = vpop.f32.mrf.mxu1 }
 0x23a   : > { %2605 = vmatmul.mubr.f32.gmra.mxu0 %v1982_v26  ;;  %3771 = vmatmul.mubr.msk.f32.gmra.mxu1 %vm706_vm2, %v1934_v59  ;;  %v2513_v3 = vpop.f32.mrf.mxu0  ;;  %v2928_v59 = vld [vmem:[%s5703_s5 + $0x8] sm:$0xff] }
 0x23b   : > { %v1481_v42 = vpop.permute.xlu1 %1480  ;;  %3773 = vmatprep.mubr.msk.f32.mxu1 %vm706_vm2, %v1939_v10  ;;  %v1987_v54 = vld [vmem:[#allocation3 + $0x330] sm:$0xff]  ;;  %v2004_v10 = vld [vmem:[#allocation3 + $0x3b8] sm:$0xff]  ;;  %3818 = vmatprep.subr.mxu0 %v2928_v59 }
 0x23c   : > { %1554 = vst.msk [vmem:[#allocation3 + $0x380] sm:$0xff] %vm1019_vm4, %v1481_v42  ;;  %v1738_v4 = vpop.permute.xlu0 %1737  ;;  %v1988_v40 = vld [vmem:[#allocation3 + $0x338] sm:$0xff]  ;;  %v2516_v48 = vpop.f32.mrf.mxu0  ;;  %3819 = vmatpush3.msra.mxu0 %v2928_v59  ;;  %3876 = vmatprep.subr.mxu1 %v2928_v59 }
 0x23d   : > { %1811 = vst.msk [vmem:[#allocation3 + $0x388] sm:$0xff] %vm1019_vm4, %v1738_v4  ;;  %2609 = vmatprep.mubr.f32.mxu0 %v1988_v40  ;;  %v5315_v44 = vadd.f32 %v2516_v48, %v2292_v43  ;;  %v2009_v40 = vld [vmem:[#allocation3 + $0x3e0] sm:$0xff]  ;;  %3884 = vmatpush3.msra.mxu1 %v2928_v59  ;;  %v2039_v43 = vld [vmem:[#allocation3 + $0x4d0] sm:$0xff] }
 0x23e   : > { %2610 = vmatmul.mubr.f32.gmra.mxu0 %v1987_v54  ;;  %3774 = vmatmul.mubr.msk.f32.gmra.mxu1 %vm706_vm2, %v1944_v29  ;;  %v2518_v0 = vpop.f32.mrf.mxu0 }
 0x23f   : > { %v1483_v36 = vpop.permute.xlu1 %1482  ;;  %3776 = vmatprep.mubr.msk.f32.mxu1 %vm706_vm2, %v1949_v16  ;;  %v1992_v12 = vld [vmem:[#allocation3 + $0x358] sm:$0xff] }
 0x240   : > { %1555 = vst.msk [vmem:[#allocation3 + $0x3a8] sm:$0xff] %vm1019_vm4, %v1483_v36  ;;  %v1740_v41 = vpop.permute.xlu0 %1739  ;;  %v1993_v46 = vld [vmem:[#allocation3 + $0x360] sm:$0xff]  ;;  %v5322_v8 = vpop.f32.mrf.mxu1  ;;  %v2044_v0 = vld [vmem:[#allocation3 + $0x4f8] sm:$0xff] }
 0x241   : > { %1812 = vst.msk [vmem:[#allocation3 + $0x3b0] sm:$0xff] %vm1019_vm4, %v1740_v41  ;;  %2614 = vmatprep.mubr.f32.mxu0 %v1993_v46  ;;  %v2014_v41 = vld [vmem:[#allocation3 + $0x408] sm:$0xff]  ;;  %v2019_v46 = vld [vmem:[#allocation3 + $0x430] sm:$0xff] }
 0x242   : > { %2615 = vmatmul.mubr.f32.gmra.mxu0 %v1992_v12  ;;  %3777 = vmatmul.mubr.msk.f32.gmra.mxu1 %vm706_vm2, %v1954_v45  ;;  %v2308_v5 = vpop.f32.mrf.mxu1 }
 0x243   : > { %v1485_v50 = vpop.permute.xlu1 %1484  ;;  %3779 = vmatprep.mubr.msk.f32.mxu1 %vm706_vm2, %v1959_v33  ;;  %v1997_v53 = vld [vmem:[#allocation3 + $0x380] sm:$0xff]  ;;  %v2024_v33 = vld [vmem:[#allocation3 + $0x458] sm:$0xff] }
 0x244   : > { %1556 = vst.msk [vmem:[#allocation3 + $0x3d0] sm:$0xff] %vm1019_vm4, %v1485_v50  ;;  %v1742_v23 = vpop.permute.xlu0 %1741  ;;  %v1998_v28 = vld [vmem:[#allocation3 + $0x388] sm:$0xff]  ;;  %v5328_v9 = vpop.f32.mrf.mxu1 }
 0x245   : > { %1813 = vst.msk [vmem:[#allocation3 + $0x3d8] sm:$0xff] %vm1019_vm4, %v1742_v23  ;;  %2619 = vmatprep.mubr.f32.mxu0 %v1998_v28  ;;  %v2029_v23 = vld [vmem:[#allocation3 + $0x480] sm:$0xff] }
 0x246   : > { %2620 = vmatmul.mubr.f32.gmra.mxu0 %v1997_v53  ;;  %3780 = vmatmul.mubr.msk.f32.gmra.mxu1 %vm706_vm2, %v1964_v52  ;;  %v2313_v15 = vpop.f32.mrf.mxu1  ;;  %v2307_v53 = vadd.f32 %v5295_v37, %v5322_v8 }
 0x247   : > { %v1487_v13 = vpop.permute.xlu1 %1486  ;;  %3782 = vmatprep.mubr.msk.f32.mxu1 %vm706_vm2, %v1969_v58  ;;  %v2002_v2 = vld [vmem:[#allocation3 + $0x3a8] sm:$0xff] }
 0x248   : > { %1557 = vst.msk [vmem:[#allocation3 + $0x3f8] sm:$0xff] %vm1019_vm4, %v1487_v13  ;;  %v1744_v61 = vpop.permute.xlu0 %1743  ;;  %v2003_v63 = vld [vmem:[#allocation3 + $0x3b0] sm:$0xff]  ;;  %v2034_v13 = vld [vmem:[#allocation3 + $0x4a8] sm:$0xff] }
 0x249   : > { %1814 = vst.msk [vmem:[#allocation3 + $0x400] sm:$0xff] %vm1019_vm4, %v1744_v61  ;;  %2624 = vmatprep.mubr.f32.mxu0 %v2003_v63 }
 0x24a   : > { %2625 = vmatmul.mubr.f32.gmra.mxu0 %v2002_v2  ;;  %3783 = vmatmul.mubr.msk.f32.gmra.mxu1 %vm706_vm2, %v1974_v49  ;;  %v2927_v49 = vld [vmem:[%s5703_s5] sm:$0xff] }
 0x24b   : > { %v1489_v35 = vpop.permute.xlu1 %1488  ;;  %3785 = vmatprep.mubr.msk.f32.mxu1 %vm706_vm2, %v1979_v56  ;;  %v2007_v21 = vld [vmem:[#allocation3 + $0x3d0] sm:$0xff]  ;;  %v2521_v20 = vpop.f32.mrf.mxu0  ;;  %3820 = vmatprep.subr.mxu0 %v2927_v49 }
 0x24c   : > { %1558 = vst.msk [vmem:[#allocation3 + $0x420] sm:$0xff] %vm1019_vm4, %v1489_v35  ;;  %v1746_v22 = vpop.permute.xlu0 %1745  ;;  %v2008_v7 = vld [vmem:[#allocation3 + $0x3d8] sm:$0xff]  ;;  %v5335_v55 = vadd.f32 %v2521_v20, %v2297_v62  ;;  %v2312_v35 = vadd.f32 %v5295_v37, %v5328_v9  ;;  %3821 = vmatpush3.msra.mxu0 %v2927_v49  ;;  %3877 = vmatprep.subr.mxu1 %v2927_v49 }
 0x24d   : > { %1815 = vst.msk [vmem:[#allocation3 + $0x428] sm:$0xff] %vm1019_vm4, %v1746_v22  ;;  %2629 = vmatprep.mubr.f32.mxu0 %v2008_v7  ;;  %v2523_v51 = vpop.f32.mrf.mxu0  ;;  %3885 = vmatpush3.msra.mxu1 %v2927_v49 }
 0x24e   : > { %2630 = vmatmul.mubr.f32.gmra.mxu0 %v2007_v21  ;;  %3786 = vmatmul.mubr.msk.f32.gmra.mxu1 %vm706_vm2, %v1984_v14 }
 0x24f   : > { %v1491_v32 = vpop.permute.xlu1 %1490  ;;  %3788 = vmatprep.mubr.msk.f32.mxu1 %vm706_vm2, %v1989_v18  ;;  %v2012_v60 = vld [vmem:[#allocation3 + $0x3f8] sm:$0xff]  ;;  %v2526_v4 = vpop.f32.mrf.mxu0 }
 0x250   : > { %1559 = vst.msk [vmem:[#allocation3 + $0x448] sm:$0xff] %vm1019_vm4, %v1491_v32  ;;  %v1748_v19 = vpop.permute.xlu0 %1747  ;;  %v2013_v39 = vld [vmem:[#allocation3 + $0x400] sm:$0xff]  ;;  %v5346_v54 = vadd.f32 %v2526_v4, %v2302_v27 }
 0x251   : > { %1816 = vst.msk [vmem:[#allocation3 + $0x450] sm:$0xff] %vm1019_vm4, %v1748_v19  ;;  %2634 = vmatprep.mubr.f32.mxu0 %v2013_v39  ;;  %v2528_v36 = vpop.f32.mrf.mxu0 }
 0x252   : > { %2635 = vmatmul.mubr.f32.gmra.mxu0 %v2012_v60  ;;  %3789 = vmatmul.mubr.msk.f32.gmra.mxu1 %vm706_vm2, %v1994_v1 }
 0x253   : > { %v1493_v25 = vpop.permute.xlu1 %1492  ;;  %3791 = vmatprep.mubr.msk.f32.mxu1 %vm706_vm2, %v1999_v6  ;;  %v2017_v42 = vld [vmem:[#allocation3 + $0x420] sm:$0xff] }
 0x254   : > { %1560 = vst.msk [vmem:[#allocation3 + $0x470] sm:$0xff] %vm1019_vm4, %v1493_v25  ;;  %v1750_v24 = vpop.permute.xlu0 %1749  ;;  %v2018_v26 = vld [vmem:[#allocation3 + $0x428] sm:$0xff] }
 0x255   : > { %1817 = vst.msk [vmem:[#allocation3 + $0x478] sm:$0xff] %vm1019_vm4, %v1750_v24  ;;  %2639 = vmatprep.mubr.f32.mxu0 %v2018_v26 }
 0x256   : > { %2640 = vmatmul.mubr.f32.gmra.mxu0 %v2017_v42  ;;  %3792 = vmatmul.mubr.msk.f32.gmra.mxu1 %vm706_vm2, %v2004_v10 }
 0x257   : > { %v1495_v30 = vpop.permute.xlu1 %1494  ;;  %3794 = vmatprep.mubr.msk.f32.mxu1 %vm706_vm2, %v2009_v40  ;;  %v2022_v16 = vld [vmem:[#allocation3 + $0x448] sm:$0xff]  ;;  %v2316_v31 = vpop.f32.mrf.mxu1 }
 0x258   : > { %1561 = vst.msk [vmem:[#allocation3 + $0x498] sm:$0xff] %vm1019_vm4, %v1495_v30  ;;  %v1752_v29 = vpop.permute.xlu0 %1751  ;;  %v2023_v11 = vld [vmem:[#allocation3 + $0x450] sm:$0xff]  ;;  %v2317_v9 = vadd.f32 %v5295_v37, %v2316_v31 }
 0x259   : > { %1818 = vst.msk [vmem:[#allocation3 + $0x4a0] sm:$0xff] %vm1019_vm4, %v1752_v29  ;;  %2644 = vmatprep.mubr.f32.mxu0 %v2023_v11  ;;  %v2318_v47 = vpop.f32.mrf.mxu1 }
 0x25a   : > { %2645 = vmatmul.mubr.f32.gmra.mxu0 %v2022_v16  ;;  %3795 = vmatmul.mubr.msk.f32.gmra.mxu1 %vm706_vm2, %v2014_v41 }
 0x25b   : > { %v1497_v38 = vpop.permute.xlu1 %1496  ;;  %3797 = vmatprep.mubr.msk.f32.mxu1 %vm706_vm2, %v2019_v46  ;;  %v2027_v50 = vld [vmem:[#allocation3 + $0x470] sm:$0xff]  ;;  %v2321_v3 = vpop.f32.mrf.mxu1 }
 0x25c   : > { %1562 = vst.msk [vmem:[#allocation3 + $0x4c0] sm:$0xff] %vm1019_vm4, %v1497_v38  ;;  %v1754_v12 = vpop.permute.xlu0 %1753  ;;  %v2028_v45 = vld [vmem:[#allocation3 + $0x478] sm:$0xff]  ;;  %v2531_v58 = vpop.f32.mrf.mxu0  ;;  %v2322_v60 = vadd.f32 %v5295_v37, %v2321_v3 }
 0x25d   : > { %1819 = vst.msk [vmem:[#allocation3 + $0x4c8] sm:$0xff] %vm1019_vm4, %v1754_v12  ;;  %2649 = vmatprep.mubr.f32.mxu0 %v2028_v45  ;;  %v2323_v52 = vpop.f32.mrf.mxu1  ;;  %v5362_v61 = vadd.f32 %v2531_v58, %v2307_v53 }
 0x25e   : > { %2650 = vmatmul.mubr.f32.gmra.mxu0 %v2027_v50  ;;  %3798 = vmatmul.mubr.msk.f32.gmra.mxu1 %vm706_vm2, %v2024_v33  ;;  %v2533_v63 = vpop.f32.mrf.mxu0 }
 0x25f   : > { %v1499_v17 = vpop.permute.xlu1 %1498  ;;  %3800 = vmatprep.mubr.msk.f32.mxu1 %vm706_vm2, %v2029_v23  ;;  %v2032_v48 = vld [vmem:[#allocation3 + $0x498] sm:$0xff] }
 0x260   : > { %1563 = vst.msk [vmem:[#allocation3 + $0x4e8] sm:$0xff] %vm1019_vm4, %v1499_v17  ;;  %v1756_v28 = vpop.permute.xlu0 %1755  ;;  %v2033_v57 = vld [vmem:[#allocation3 + $0x4a0] sm:$0xff]  ;;  %v2536_v8 = vpop.f32.mrf.mxu0 }
 0x261   : > { %1820 = vst.msk [vmem:[#allocation3 + $0x4f0] sm:$0xff] %vm1019_vm4, %v1756_v28  ;;  %2654 = vmatprep.mubr.f32.mxu0 %v2033_v57  ;;  %v5371_v22 = vadd.f32 %v2536_v8, %v2312_v35 }
 0x262   : > { %2655 = vmatmul.mubr.f32.gmra.mxu0 %v2032_v48  ;;  %3801 = vmatmul.mubr.msk.f32.gmra.mxu1 %vm706_vm2, %v2034_v13  ;;  %v2538_v7 = vpop.f32.mrf.mxu0 }
 0x263   : > { %3803 = vmatprep.mubr.msk.f32.mxu1 %vm706_vm2, %v2039_v43  ;;  %v2037_v56 = vld [vmem:[#allocation3 + $0x4c0] sm:$0xff] }
 0x264   : > { %v2038_v2 = vld [vmem:[#allocation3 + $0x4c8] sm:$0xff] }
 0x265   : > { %2659 = vmatprep.mubr.f32.mxu0 %v2038_v2 }
 0x266   : > { %2660 = vmatmul.mubr.f32.gmra.mxu0 %v2037_v56  ;;  %3804 = vmatmul.mubr.msk.f32.gmra.mxu1 %vm706_vm2, %v2044_v0 }
 0x267   : > { %v2042_v21 = vld [vmem:[#allocation3 + $0x4e8] sm:$0xff]  ;;  %v2326_v14 = vpop.f32.mrf.mxu1 }
 0x268   : > { %v2043_v5 = vld [vmem:[#allocation3 + $0x4f0] sm:$0xff]  ;;  %v2327_v26 = vadd.f32 %v5295_v37, %v2326_v14 }
 0x269   : > { %2664 = vmatprep.mubr.f32.mxu0 %v2043_v5  ;;  %v2328_v32 = vpop.f32.mrf.mxu1 }
 0x26a   : > { %2665 = vmatmul.mubr.f32.gmra.mxu0 %v2042_v21 }
 0x26c   : > { %v2331_v18 = vpop.f32.mrf.mxu1 }
 0x26d   : > { %v2332_v4 = vadd.f32 %v5295_v37, %v2331_v18 }
 0x26e   : > { %v2333_v19 = vpop.f32.mrf.mxu1 }
 0x270   : > { %v2541_v39 = vpop.f32.mrf.mxu0 }
 0x271   : > { %v5374_v62 = vadd.f32 %v2541_v39, %v2317_v9 }
 0x272   : > { %v2543_v15 = vpop.f32.mrf.mxu0 }
 0x274   : > { %v2546_v1 = vpop.f32.mrf.mxu0 }
 0x275   : > { %v5377_v20 = vadd.f32 %v2546_v1, %v2322_v60 }
 0x276   : > { %v2548_v25 = vpop.f32.mrf.mxu0 }
 0x27c   : > { %v2336_v6 = vpop.f32.mrf.mxu1 }
 0x27d   : > { %v2337_v41 = vadd.f32 %v5295_v37, %v2336_v6 }
 0x27e   : > { %v2338_v24 = vpop.f32.mrf.mxu1 }
 0x280   : > { %v2341_v51 = vpop.f32.mrf.mxu1 }
 0x281   : > { %v2342_v45 = vadd.f32 %v5295_v37, %v2341_v51 }
 0x282   : > { %v2343_v59 = vpop.f32.mrf.mxu1  ;;  %v2551_v27 = vpop.f32.mrf.mxu0 }
 0x283   : > { %v5380_v42 = vadd.f32 %v2551_v27, %v2327_v26 }
 0x284   : > { %v2553_v10 = vpop.f32.mrf.mxu0 }
 0x286   : > { %v2556_v30 = vpop.f32.mrf.mxu0 }
 0x287   : > { %v5383_v40 = vadd.f32 %v2556_v30, %v2332_v4 }
 0x288   : > { %v2558_v29 = vpop.f32.mrf.mxu0 }
 0x28c   : > { %v2346_v36 = vpop.f32.mrf.mxu1 }
 0x28d   : > { %v2347_v28 = vadd.f32 %v5295_v37, %v2346_v36 }
 0x28e   : > { %v2348_v11 = vpop.f32.mrf.mxu1 }
 0x290   : > { %v2351_v16 = vpop.f32.mrf.mxu1 }
 0x291   : > { %v2352_v48 = vadd.f32 %v5295_v37, %v2351_v16 }
 0x292   : > { %v2353_v38 = vpop.f32.mrf.mxu1  ;;  %v2561_v46 = vpop.f32.mrf.mxu0 }
 0x293   : > { %v5386_v31 = vadd.f32 %v2561_v46, %v2337_v41 }
 0x294   : > { %v2563_v12 = vpop.f32.mrf.mxu0 }
 0x296   : > { %v2566_v47 = vpop.f32.mrf.mxu0 }
 0x297   : > { %v5389_v50 = vadd.f32 %v2566_v47, %v2342_v45 }
 0x298   : > { %v2568_v33 = vpop.f32.mrf.mxu0 }
 0x29c   : > { %v5391_v17 = vpop.f32.mrf.mxu1 }
 0x29e   : > { %v2358_v23 = vpop.f32.mrf.mxu1 }
 0x2a0   : > { %v5393_v3 = vpop.f32.mrf.mxu1 }
 0x2a2   : > { %v2363_v57 = vpop.f32.mrf.mxu1  ;;  %v2571_v43 = vpop.f32.mrf.mxu0 }
 0x2a3   : > { %v5396_v53 = vadd.f32 %v2571_v43, %v2347_v28 }
 0x2a4   : > { %v2573_v52 = vpop.f32.mrf.mxu0 }
 0x2a6   : > { %v2576_v13 = vpop.f32.mrf.mxu0 }
 0x2a7   : > { %v5399_v58 = vadd.f32 %v2576_v13, %v2352_v48 }
 0x2a8   : > { %v5401_v0 = vpop.f32.mrf.mxu1  ;;  %v2578_v63 = vpop.f32.mrf.mxu0 }
 0x2aa   : > { %v2368_v2 = vpop.f32.mrf.mxu1 }
 0x2ac   : > { %v5403_v49 = vpop.f32.mrf.mxu1 }
 0x2ae   : > { %v2373_v35 = vpop.f32.mrf.mxu1 }
 0x2b2   : > { %v5405_v56 = vpop.f32.mrf.mxu1 }
 0x2b4   : > { %v2378_v8 = vpop.f32.mrf.mxu1 }
 0x2b6   : > { %v5407_v7 = vpop.f32.mrf.mxu1 }
 0x2b8   : > { %v2383_v5 = vpop.f32.mrf.mxu1 }
 0x2ba   : > { %v5409_v21 = vpop.f32.mrf.mxu1 }
 0x2bc   : > { %v2388_v14 = vpop.f32.mrf.mxu1 }
 0x2be   : > { %v5411_v32 = vpop.f32.mrf.mxu1 }
 0x2c0   : > { %v2393_v18 = vpop.f32.mrf.mxu1 }
 0x2c2   : > { %v5413_v9 = vpop.f32.mrf.mxu1 }
 0x2c4   : > { %v2398_v19 = vpop.f32.mrf.mxu1 }
 0x2c6   : > { %v5415_v39 = vpop.f32.mrf.mxu1 }
 0x2c8   : > { %v2403_v15 = vpop.f32.mrf.mxu1 }
 0x2ca   : > { %v5417_v60 = vpop.f32.mrf.mxu1 }
 0x2cc   : > { %v2408_v1 = vpop.f32.mrf.mxu1 }
 0x2ce   : > { %v5419_v25 = vpop.f32.mrf.mxu1 }
 0x2d0   : > { %v2413_v6 = vpop.f32.mrf.mxu1 }
 0x2d2   : > { %v5421_v24 = vpop.f32.mrf.mxu1 }
 0x2d4   : > { %v2418_v51 = vpop.f32.mrf.mxu1 }
 0x2d6   : > { %v5423_v26 = vpop.f32.mrf.mxu1 }
 0x2d8   : > { %v2423_v59 = vpop.f32.mrf.mxu1 }
 0x2da   : > { %v5425_v27 = vpop.f32.mrf.mxu1 }
 0x2dc   : > { %v5427_v10 = vpop.f32.mrf.mxu0  ;;  %v2428_v4 = vpop.f32.mrf.mxu1 }
 0x2de   : > { %v2583_v30 = vpop.f32.mrf.mxu0  ;;  %v5429_v29 = vpop.f32.mrf.mxu1 }
 0x2e0   : > { %v2433_v36 = vpop.f32.mrf.mxu1 }
 0x2e2   : > { %v5431_v11 = vpop.f32.mrf.mxu1 }
 0x2e4   : > { %v2438_v16 = vpop.f32.mrf.mxu1 }
 0x2e6   : > { %v2441_v41 = vpop.f32.mrf.mxu1 }
 0x2e7   : > { %v5434_v38 = vadd.f32 %v5295_v37, %v2441_v41 }
 0x2e8   : > { %v2443_v46 = vpop.f32.mrf.mxu1 }
 0x2ea   : > { %v5436_v12 = vpop.f32.mrf.mxu0  ;;  %v3760_v45 = vpop.f32.mrf.mxu1 }
 0x2eb   : > { %v2742_v47 = vadd.f32 %v3760_v45, %v5315_v44 }
 0x2ec   : > { %v2588_v33 = vpop.f32.mrf.mxu0  ;;  %v2736_v23 = vpop.f32.mrf.mxu1 }
 0x2ed   : > { %v2737_v28 = vadd.f32 %v2736_v23, %v5305_v34  ;;  %v2896_v48 = vmax.f32 %v2742_v47, 0.0 }
 0x2ee   : > { %v5440_v57 = vpop.f32.mrf.mxu0  ;;  %v3763_v43 = vpop.f32.mrf.mxu1 }
 0x2ef   : > { %v2895_v52 = vmax.f32 %v2737_v28, 0.0  ;;  %v2752_v13 = vadd.f32 %v3763_v43, %v5346_v54 }
 0x2f0   : > { %v2593_v63 = vpop.f32.mrf.mxu0  ;;  %v2746_v2 = vpop.f32.mrf.mxu1 }
 0x2f1   : > { %v2747_v35 = vadd.f32 %v2746_v2, %v5335_v55  ;;  %3822 = vmatprep.mubr.msk.f32.mxu0 %vm706_vm2, %v2895_v52  ;;  %v2898_v34 = vmax.f32 %v2752_v13, 0.0  ;;  %v2362_v63 = vadd.f32 %v5295_v37, %v5393_v3 }
 0x2f2   : > { %v5445_v8 = vpop.f32.mrf.mxu0  ;;  %v3766_v44 = vpop.f32.mrf.mxu1  ;;  %3823 = vmatmul.mubr.msk.f32.vlgmr.msra.gmra.mxu0 %vm706_vm2, %v2896_v48 }
 0x2f3   : > { %v2897_v5 = vmax.f32 %v2747_v35, 0.0  ;;  %v2762_v14 = vadd.f32 %v3766_v44, %v5371_v22 }
 0x2f4   : > { %v2598_v18 = vpop.f32.mrf.mxu0  ;;  %v2756_v19 = vpop.f32.mrf.mxu1 }
 0x2f5   : > { %v2757_v15 = vadd.f32 %v2756_v19, %v5362_v61  ;;  %3825 = vmatprep.mubr.msk.f32.mxu0 %vm706_vm2, %v2897_v5  ;;  %v2900_v6 = vmax.f32 %v2762_v14, 0.0 }
 0x2f6   : > { %v5451_v54 = vpop.f32.mrf.mxu0  ;;  %v3769_v55 = vpop.f32.mrf.mxu1  ;;  %3826 = vmatmul.mubr.msk.f32.gmra.mxu0 %vm706_vm2, %v2898_v34  ;;  %v2587_v34 = vadd.f32 %v5436_v12, %v2362_v63 }
 0x2f7   : > { %v2899_v1 = vmax.f32 %v2757_v15, 0.0  ;;  %v2772_v51 = vadd.f32 %v3769_v55, %v5377_v20 }
 0x2f8   : > { %v2603_v59 = vpop.f32.mrf.mxu0  ;;  %v2766_v4 = vpop.f32.mrf.mxu1 }
 0x2f9   : > { %v2767_v30 = vadd.f32 %v2766_v4, %v5374_v62  ;;  %3828 = vmatprep.mubr.msk.f32.mxu0 %vm706_vm2, %v2899_v1  ;;  %v2902_v16 = vmax.f32 %v2772_v51, 0.0 }
 0x2fa   : > { %v2606_v22 = vpop.f32.mrf.mxu0  ;;  %v3772_v36 = vpop.f32.mrf.mxu1  ;;  %3829 = vmatmul.mubr.msk.f32.gmra.mxu0 %vm706_vm2, %v2900_v6 }
 0x2fb   : > { %v2901_v61 = vmax.f32 %v2767_v30, 0.0  ;;  %v2782_v41 = vadd.f32 %v3772_v36, %v5383_v40 }
 0x2fc   : > { %v2608_v46 = vpop.f32.mrf.mxu0  ;;  %v2776_v45 = vpop.f32.mrf.mxu1 }
 0x2fd   : > { %v2777_v47 = vadd.f32 %v2776_v45, %v5380_v42  ;;  %3831 = vmatprep.mubr.msk.f32.mxu0 %vm706_vm2, %v2901_v61  ;;  %v2904_v23 = vmax.f32 %v2782_v41, 0.0 }
 0x2fe   : > { %v5461_v20 = vpop.f32.mrf.mxu0  ;;  %v3775_v33 = vpop.f32.mrf.mxu1  ;;  %3832 = vmatmul.mubr.msk.f32.gmra.mxu0 %vm706_vm2, %v2902_v16 }
 0x2ff   : > { %v2903_v62 = vmax.f32 %v2777_v47, 0.0  ;;  %v2792_v28 = vadd.f32 %v3775_v33, %v5389_v50  ;;  %v2357_v50 = vadd.f32 %v5295_v37, %v5391_v17 }
 0x300   : > { %v2613_v43 = vpop.f32.mrf.mxu0  ;;  %v2786_v52 = vpop.f32.mrf.mxu1 }
 0x301   : > { %v2787_v48 = vadd.f32 %v2786_v52, %v5386_v31  ;;  %3834 = vmatprep.mubr.msk.f32.mxu0 %vm706_vm2, %v2903_v62  ;;  %v2906_v2 = vmax.f32 %v2792_v28, 0.0  ;;  %v2582_v3 = vadd.f32 %v5427_v10, %v2357_v50 }
 0x302   : > { %v2616_v40 = vpop.f32.mrf.mxu0  ;;  %v3778_v13 = vpop.f32.mrf.mxu1  ;;  %3835 = vmatmul.mubr.msk.f32.gmra.mxu0 %vm706_vm2, %v2904_v23 }
 0x303   : > { %v2905_v42 = vmax.f32 %v2787_v48, 0.0  ;;  %v2802_v35 = vadd.f32 %v3778_v13, %v5399_v58  ;;  %v2372_v58 = vadd.f32 %v5295_v37, %v5403_v49  ;;  %v2382_v49 = vadd.f32 %v5295_v37, %v5407_v7 }
 0x304   : > { %v2618_v44 = vpop.f32.mrf.mxu0  ;;  %v2796_v5 = vpop.f32.mrf.mxu1  ;;  %v2392_v7 = vadd.f32 %v5295_v37, %v5411_v32  ;;  %v2402_v32 = vadd.f32 %v5295_v37, %v5415_v39  ;;  %v2412_v39 = vadd.f32 %v5295_v37, %v5419_v25  ;;  %v2422_v25 = vadd.f32 %v5295_v37, %v5423_v26 }
 0x305   : > { %v2797_v31 = vadd.f32 %v2796_v5, %v5396_v53  ;;  %3837 = vmatprep.mubr.msk.f32.mxu0 %vm706_vm2, %v2905_v42  ;;  %v2908_v15 = vmax.f32 %v2802_v35, 0.0  ;;  %v2367_v53 = vadd.f32 %v5295_v37, %v5401_v0  ;;  %v2597_v12 = vadd.f32 %v5445_v8, %v2372_v58 }
 0x306   : > { %v2621_v14 = vpop.f32.mrf.mxu0  ;;  %v3781_v18 = vpop.f32.mrf.mxu1  ;;  %3838 = vmatmul.mubr.msk.f32.gmra.mxu0 %vm706_vm2, %v2906_v2  ;;  %v2377_v0 = vadd.f32 %v5295_v37, %v5405_v56  ;;  %v2607_v8 = vadd.f32 %v2606_v22, %v2382_v49  ;;  %v2387_v56 = vadd.f32 %v5295_v37, %v5409_v21  ;;  %v2617_v22 = vadd.f32 %v2616_v40, %v2392_v7 }
 0x307   : > { %v2907_v19 = vmax.f32 %v2797_v31, 0.0  ;;  %v2812_v55 = vadd.f32 %v3781_v18, %v2587_v34  ;;  %v2592_v10 = vadd.f32 %v5440_v57, %v2367_v53  ;;  %v2397_v21 = vadd.f32 %v5295_v37, %v5413_v9 }
 0x308   : > { %v2623_v1 = vpop.f32.mrf.mxu0  ;;  %v2806_v17 = vpop.f32.mrf.mxu1  ;;  %v2602_v57 = vadd.f32 %v5451_v54, %v2377_v0  ;;  %v2612_v54 = vadd.f32 %v5461_v20, %v2387_v56  ;;  %v2407_v9 = vadd.f32 %v5295_v37, %v5417_v60  ;;  %v2417_v60 = vadd.f32 %v5295_v37, %v5421_v24 }
 0x309   : > { %v2807_v6 = vadd.f32 %v2806_v17, %v2582_v3  ;;  %3840 = vmatprep.mubr.msk.f32.mxu0 %vm706_vm2, %v2907_v19  ;;  %v2910_v30 = vmax.f32 %v2812_v55, 0.0  ;;  %v2622_v20 = vadd.f32 %v2621_v14, %v2397_v21  ;;  %v2432_v24 = vadd.f32 %v5295_v37, %v5429_v29 }
 0x30a   : > { %v2626_v51 = vpop.f32.mrf.mxu0  ;;  %v3784_v59 = vpop.f32.mrf.mxu1  ;;  %3841 = vmatmul.mubr.msk.f32.gmra.mxu0 %vm706_vm2, %v2908_v15 }
 0x30b   : > { %v2909_v4 = vmax.f32 %v2807_v6, 0.0  ;;  %v2822_v36 = vadd.f32 %v3784_v59, %v2597_v12  ;;  %v2627_v40 = vadd.f32 %v2626_v51, %v2402_v32 }
 0x30c   : > { %v2628_v61 = vpop.f32.mrf.mxu0  ;;  %v2816_v16 = vpop.f32.mrf.mxu1 }
 0x30d   : > { %v2817_v41 = vadd.f32 %v2816_v16, %v2592_v10  ;;  %3843 = vmatprep.mubr.msk.f32.mxu0 %vm706_vm2, %v2909_v4  ;;  %v2912_v33 = vmax.f32 %v2822_v36, 0.0 }
 0x30e   : > { %v2631_v46 = vpop.f32.mrf.mxu0  ;;  %v3787_v45 = vpop.f32.mrf.mxu1  ;;  %3844 = vmatmul.mubr.msk.f32.gmra.mxu0 %vm706_vm2, %v2910_v30 }
 0x30f   : > { %v2911_v47 = vmax.f32 %v2817_v41, 0.0  ;;  %v2832_v62 = vadd.f32 %v3787_v45, %v2607_v8  ;;  %v2632_v14 = vadd.f32 %v2631_v46, %v2407_v9  ;;  %v2427_v41 = vadd.f32 %v5295_v37, %v5425_v27 }
 0x310   : > { %v2633_v23 = vpop.f32.mrf.mxu0  ;;  %v2826_v28 = vpop.f32.mrf.mxu1 }
 0x311   : > { %v2827_v43 = vadd.f32 %v2826_v28, %v2602_v57  ;;  %3846 = vmatprep.mubr.msk.f32.mxu0 %vm706_vm2, %v2911_v47  ;;  %v2914_v42 = vmax.f32 %v2832_v62, 0.0  ;;  %v2437_v28 = vadd.f32 %v5295_v37, %v5431_v11 }
 0x312   : > { %v2636_v52 = vpop.f32.mrf.mxu0  ;;  %v3790_v48 = vpop.f32.mrf.mxu1  ;;  %3847 = vmatmul.mubr.msk.f32.gmra.mxu0 %vm706_vm2, %v2912_v33 }
 0x313   : > { %v2913_v13 = vmax.f32 %v2827_v43, 0.0  ;;  %v2842_v63 = vadd.f32 %v3790_v48, %v2617_v22  ;;  %v2637_v15 = vadd.f32 %v2636_v52, %v2412_v39  ;;  %v3258_v39 = vld [vmem:[%s5705_s7 + $0x10] sm:$0xff] }
 0x314   : > { %v2638_v2 = vpop.f32.mrf.mxu0  ;;  %v2836_v35 = vpop.f32.mrf.mxu1 }
 0x315   : > { %v2837_v44 = vadd.f32 %v2836_v35, %v2612_v54  ;;  %3849 = vmatprep.mubr.msk.f32.mxu0 %vm706_vm2, %v2913_v13  ;;  %v2916_v34 = vmax.f32 %v2842_v63, 0.0 }
 0x316   : > { %v2641_v5 = vpop.f32.mrf.mxu0  ;;  %v3793_v50 = vpop.f32.mrf.mxu1  ;;  %3850 = vmatmul.mubr.msk.f32.gmra.mxu0 %vm706_vm2, %v2914_v42 }
 0x317   : > { %v2915_v31 = vmax.f32 %v2837_v44, 0.0  ;;  %v2852_v18 = vadd.f32 %v3793_v50, %v2627_v40  ;;  %v2642_v30 = vadd.f32 %v2641_v5, %v2417_v60  ;;  %v3257_v44 = vld [vmem:[%s5705_s7 + $0x8] sm:$0xff]  ;;  %v3256_v40 = vld [vmem:[%s5705_s7] sm:$0xff] }
 0x318   : > { %v2643_v3 = vpop.f32.mrf.mxu0  ;;  %v2846_v19 = vpop.f32.mrf.mxu1 }
 0x319   : > { %v2847_v58 = vadd.f32 %v2846_v19, %v2622_v20  ;;  %3852 = vmatprep.mubr.msk.f32.mxu0 %vm706_vm2, %v2915_v31  ;;  %v2918_v53 = vmax.f32 %v2852_v18, 0.0  ;;  %v3259_v31 = vld [vmem:[%s5705_s7 + $0x18] sm:$0xff] }
 0x31a   : > { %v2646_v55 = vpop.f32.mrf.mxu0  ;;  %v3796_v1 = vpop.f32.mrf.mxu1  ;;  %3853 = vmatmul.mubr.msk.f32.gmra.mxu0 %vm706_vm2, %v2916_v34 }
 0x31b   : > { %v2917_v17 = vmax.f32 %v2847_v58, 0.0  ;;  %v2862_v6 = vadd.f32 %v3796_v1, %v2637_v15  ;;  %v2647_v10 = vadd.f32 %v2646_v55, %v2422_v25  ;;  %v3261_v55 = vld [vmem:[%s5705_s7 + $0x28] sm:$0xff]  ;;  %v3260_v1 = vld [vmem:[%s5705_s7 + $0x20] sm:$0xff] }
 0x31c   : > { %v2648_v12 = vpop.f32.mrf.mxu0  ;;  %v2856_v51 = vpop.f32.mrf.mxu1 }
 0x31d   : > { %v2857_v59 = vadd.f32 %v2856_v51, %v2632_v14  ;;  %3855 = vmatprep.mubr.msk.f32.mxu0 %vm706_vm2, %v2917_v17  ;;  %v2920_v61 = vmax.f32 %v2862_v6, 0.0 }
 0x31e   : > { %v2651_v4 = vpop.f32.mrf.mxu0  ;;  %v3799_v49 = vpop.f32.mrf.mxu1  ;;  %3856 = vmatmul.mubr.msk.f32.gmra.mxu0 %vm706_vm2, %v2918_v53 }
 0x31f   : > { %v2919_v36 = vmax.f32 %v2857_v59, 0.0  ;;  %v2872_v16 = vadd.f32 %v3799_v49, %v2647_v10  ;;  %v2652_v57 = vadd.f32 %v2651_v4, %v2427_v41  ;;  %v3263_v59 = vld [vmem:[%s5705_s7 + $0x38] sm:$0xff]  ;;  %v3262_v10 = vld [vmem:[%s5705_s7 + $0x30] sm:$0xff]  ;;  %v3265_v41 = vld [vmem:[%s5705_s7 + $0x48] sm:$0xff] }
 0x320   : > { %v2653_v26 = vpop.f32.mrf.mxu0  ;;  %v2866_v0 = vpop.f32.mrf.mxu1 }
 0x321   : > { %v2867_v8 = vadd.f32 %v2866_v0, %v2642_v30  ;;  %3858 = vmatprep.mubr.msk.f32.mxu0 %vm706_vm2, %v2919_v36  ;;  %v2922_v33 = vmax.f32 %v2872_v16, 0.0 }
 0x322   : > { %v2656_v46 = vpop.f32.mrf.mxu0  ;;  %v3802_v45 = vpop.f32.mrf.mxu1  ;;  %3859 = vmatmul.mubr.msk.f32.gmra.mxu0 %vm706_vm2, %v2920_v61 }
 0x323   : > { %v2921_v47 = vmax.f32 %v2867_v8, 0.0  ;;  %v2657_v7 = vadd.f32 %v2656_v46, %v2432_v24  ;;  %v3264_v24 = vld [vmem:[%s5705_s7 + $0x40] sm:$0xff] }
 0x324   : > { %v2658_v62 = vpop.f32.mrf.mxu0  ;;  %v2876_v23 = vpop.f32.mrf.mxu1 }
 0x325   : > { %v2882_v27 = vadd.f32 %v3802_v45, %v2657_v7  ;;  %v2877_v56 = vadd.f32 %v2876_v23, %v2652_v57  ;;  %3861 = vmatprep.mubr.msk.f32.mxu0 %vm706_vm2, %v2921_v47  ;;  %v3267_v23 = vld [vmem:[%s5705_s7 + $0x58] sm:$0xff] }
 0x326   : > { %v2661_v29 = vpop.f32.mrf.mxu0  ;;  %v3805_v43 = vpop.f32.mrf.mxu1  ;;  %3862 = vmatmul.mubr.msk.f32.gmra.mxu0 %vm706_vm2, %v2922_v33 }
 0x327   : > { %v2924_v22 = vmax.f32 %v2882_v27, 0.0  ;;  %v2923_v52 = vmax.f32 %v2877_v56, 0.0  ;;  %v2662_v48 = vadd.f32 %v2661_v29, %v2437_v28  ;;  %v3266_v28 = vld [vmem:[%s5705_s7 + $0x50] sm:$0xff] }
 0x328   : > { %v2663_v54 = vpop.f32.mrf.mxu0  ;;  %v2886_v13 = vpop.f32.mrf.mxu1 }
 0x329   : > { %v2887_v32 = vadd.f32 %v2886_v13, %v2662_v48  ;;  %3864 = vmatprep.mubr.msk.f32.mxu0 %vm706_vm2, %v2923_v52  ;;  %v3269_v13 = vld [vmem:[%s5705_s7 + $0x68] sm:$0xff] }
 0x32a   : > { %v2666_v42 = vpop.f32.mrf.mxu0  ;;  %3865 = vmatmul.mubr.msk.f32.gmra.mxu0 %vm706_vm2, %v2924_v22 }
 0x32b   : > { %v2925_v37 = vmax.f32 %v2887_v32, 0.0  ;;  %v2667_v11 = vadd.f32 %v2666_v42, %v5434_v38  ;;  %v3268_v32 = vld [vmem:[%s5705_s7 + $0x60] sm:$0xff] }
 0x32c   : > { %v2668_v63 = vpop.f32.mrf.mxu0 }
 0x32d   : > { %v2892_v2 = vadd.f32 %v3805_v43, %v2667_v11  ;;  %3867 = vmatprep.mubr.msk.f32.mxu1 %vm706_vm2, %v2925_v37 }
 0x32f   : > { %v2926_v35 = vmax.f32 %v2892_v2, 0.0 }
 0x331   : > { %3868 = vmatmul.mubr.msk.f32.vlgmr.msra.gmra.mxu1 %vm706_vm2, %v2926_v35 }
 0x3b2   : > { %v3824_v21 = vpop.f32.mrf.mxu0 }
 0x3b3   : > { %v3289_v50 = vmul.f32 %v3824_v21, %v3257_v44 }
 0x3b4   : > { %v3097_v5 = vpop.f32.mrf.mxu0 }
 0x3b5   : > { %v3288_v20 = vmul.f32 %v3256_v40, %v3097_v5  ;;  %v3322_v3 = vsel %vm3320_vm5, %v3289_v50, 0.0  ;;  %v3271_v40 = vld [vmem:[%s5705_s7 + $0x78] sm:$0xff]  ;;  %v3270_v5 = vld [vmem:[%s5705_s7 + $0x70] sm:$0xff] }
 0x3b6   : > { %v3827_v38 = vpop.f32.mrf.mxu0 }
 0x3b7   : > { %v3321_v34 = vsel %vm3320_vm5, %v3288_v20, 0.0  ;;  %v3291_v19 = vmul.f32 %v3827_v38, %v3259_v31 }
 0x3b8   : > { %v3107_v18 = vpop.f32.mrf.mxu0  ;;  %v3323_v58 = vadd.f32 %v3322_v3, %v3321_v34 }
 0x3b9   : > { %v3290_v9 = vmul.f32 %v3258_v39, %v3107_v18  ;;  %v3326_v53 = vsel %vm3320_vm5, %v3291_v19, 0.0  ;;  %v3273_v19 = vld [vmem:[%s5705_s7 + $0x88] sm:$0xff] }
 0x3ba   : > { %v3830_v15 = vpop.f32.mrf.mxu0 }
 0x3bb   : > { %v3324_v14 = vsel %vm3320_vm5, %v3290_v9, 0.0  ;;  %v3293_v6 = vmul.f32 %v3830_v15, %v3261_v55  ;;  %v3272_v9 = vld [vmem:[%s5705_s7 + $0x80] sm:$0xff] }
 0x3bc   : > { %v3325_v17 = vadd.f32 %v3324_v14, %v3323_v58  ;;  %v3117_v25 = vpop.f32.mrf.mxu0 }
 0x3bd   : > { %v3292_v12 = vmul.f32 %v3260_v1, %v3117_v25  ;;  %v3330_v36 = vsel %vm3320_vm5, %v3293_v6, 0.0  ;;  %v3275_v6 = vld [vmem:[%s5705_s7 + $0x98] sm:$0xff] }
 0x3be   : > { %v3327_v51 = vadd.f32 %v3326_v53, %v3325_v17  ;;  %v3833_v60 = vpop.f32.mrf.mxu0 }
 0x3bf   : > { %v3328_v4 = vsel %vm3320_vm5, %v3292_v12, 0.0  ;;  %v3295_v61 = vmul.f32 %v3833_v60, %v3263_v59  ;;  %v3274_v12 = vld [vmem:[%s5705_s7 + $0x90] sm:$0xff] }
 0x3c0   : > { %v3329_v49 = vadd.f32 %v3328_v4, %v3327_v51  ;;  %v3127_v30 = vpop.f32.mrf.mxu0 }
 0x3c1   : > { %v3294_v16 = vmul.f32 %v3262_v10, %v3127_v30  ;;  %v3334_v57 = vsel %vm3320_vm5, %v3295_v61, 0.0  ;;  %v3277_v61 = vld [vmem:[%s5705_s7 + $0xa8] sm:$0xff] }
 0x3c2   : > { %v3331_v26 = vadd.f32 %v3330_v36, %v3329_v49  ;;  %v3836_v0 = vpop.f32.mrf.mxu0 }
 0x3c3   : > { %v3332_v8 = vsel %vm3320_vm5, %v3294_v16, 0.0  ;;  %v3297_v47 = vmul.f32 %v3836_v0, %v3265_v41  ;;  %v3276_v16 = vld [vmem:[%s5705_s7 + $0xa0] sm:$0xff] }
 0x3c4   : > { %v3333_v46 = vadd.f32 %v3332_v8, %v3331_v26  ;;  %v3137_v45 = vpop.f32.mrf.mxu0 }
 0x3c5   : > { %v3296_v7 = vmul.f32 %v3264_v24, %v3137_v45  ;;  %v3338_v43 = vsel %vm3320_vm5, %v3297_v47, 0.0  ;;  %v3279_v47 = vld [vmem:[%s5705_s7 + $0xb8] sm:$0xff] }
 0x3c6   : > { %v3335_v33 = vadd.f32 %v3334_v57, %v3333_v46  ;;  %v3839_v62 = vpop.f32.mrf.mxu0 }
 0x3c7   : > { %v3336_v27 = vsel %vm3320_vm5, %v3296_v7, 0.0  ;;  %v3299_v22 = vmul.f32 %v3839_v62, %v3267_v23  ;;  %v3278_v7 = vld [vmem:[%s5705_s7 + $0xb0] sm:$0xff] }
 0x3c8   : > { %v3337_v56 = vadd.f32 %v3336_v27, %v3335_v33  ;;  %v3147_v29 = vpop.f32.mrf.mxu0 }
 0x3c9   : > { %v3298_v52 = vmul.f32 %v3266_v28, %v3147_v29  ;;  %v3342_v63 = vsel %vm3320_vm5, %v3299_v22, 0.0  ;;  %v3281_v22 = vld [vmem:[%s5705_s7 + $0xc8] sm:$0xff] }
 0x3ca   : > { %v3339_v48 = vadd.f32 %v3338_v43, %v3337_v56  ;;  %v3842_v54 = vpop.f32.mrf.mxu0 }
 0x3cb   : > { %v3340_v42 = vsel %vm3320_vm5, %v3298_v52, 0.0  ;;  %v3301_v2 = vmul.f32 %v3842_v54, %v3269_v13  ;;  %v3280_v52 = vld [vmem:[%s5705_s7 + $0xc0] sm:$0xff] }
 0x3cc   : > { %v3341_v37 = vadd.f32 %v3340_v42, %v3339_v48  ;;  %v3157_v11 = vpop.f32.mrf.mxu0 }
 0x3cd   : > { %v3300_v35 = vmul.f32 %v3268_v32, %v3157_v11  ;;  %v3346_v31 = vsel %vm3320_vm5, %v3301_v2, 0.0  ;;  %v3283_v2 = vld [vmem:[%s5705_s7 + $0xd8] sm:$0xff] }
 0x3ce   : > { %v3343_v21 = vadd.f32 %v3342_v63, %v3341_v37  ;;  %v3845_v44 = vpop.f32.mrf.mxu0 }
 0x3cf   : > { %v3344_v50 = vsel %vm3320_vm5, %v3300_v35, 0.0  ;;  %v3303_v39 = vmul.f32 %v3845_v44, %v3271_v40  ;;  %v3282_v35 = vld [vmem:[%s5705_s7 + $0xd0] sm:$0xff] }
 0x3d0   : > { %v3345_v20 = vadd.f32 %v3344_v50, %v3343_v21  ;;  %v3167_v38 = vpop.f32.mrf.mxu0 }
 0x3d1   : > { %v3302_v34 = vmul.f32 %v3270_v5, %v3167_v38  ;;  %v3350_v1 = vsel %vm3320_vm5, %v3303_v39, 0.0  ;;  %v3284_v39 = vld [vmem:[%s5705_s7 + $0xe0] sm:$0xff] }
 0x3d2   : > { %v3347_v18 = vadd.f32 %v3346_v31, %v3345_v20  ;;  %v3848_v3 = vpop.f32.mrf.mxu0 }
 0x3d3   : > { %v3348_v58 = vsel %vm3320_vm5, %v3302_v34, 0.0  ;;  %v3305_v14 = vmul.f32 %v3848_v3, %v3273_v19 }
 0x3d4   : > { %v3349_v15 = vadd.f32 %v3348_v58, %v3347_v18  ;;  %v3177_v55 = vpop.f32.mrf.mxu0 }
 0x3d5   : > { %v3304_v17 = vmul.f32 %v3272_v9, %v3177_v55  ;;  %v3354_v10 = vsel %vm3320_vm5, %v3305_v14, 0.0  ;;  %v3285_v9 = vld [vmem:[%s5705_s7 + $0xe8] sm:$0xff] }
 0x3d6   : > { %v3351_v25 = vadd.f32 %v3350_v1, %v3349_v15  ;;  %v3851_v53 = vpop.f32.mrf.mxu0 }
 0x3d7   : > { %v3352_v51 = vsel %vm3320_vm5, %v3304_v17, 0.0  ;;  %v3307_v4 = vmul.f32 %v3851_v53, %v3275_v6  ;;  %v3286_v53 = vld [vmem:[%s5705_s7 + $0xf0] sm:$0xff] }
 0x3d8   : > { %v3353_v60 = vadd.f32 %v3352_v51, %v3351_v25  ;;  %v3187_v59 = vpop.f32.mrf.mxu0  ;;  %v3287_v25 = vld [vmem:[%s5705_s7 + $0xf8] sm:$0xff] }
 0x3d9   : > { %v3306_v49 = vmul.f32 %v3274_v12, %v3187_v59  ;;  %v3358_v24 = vsel %vm3320_vm5, %v3307_v4, 0.0 }
 0x3da   : > { %v3355_v30 = vadd.f32 %v3354_v10, %v3353_v60  ;;  %v3854_v36 = vpop.f32.mrf.mxu0 }
 0x3db   : > { %v3356_v26 = vsel %vm3320_vm5, %v3306_v49, 0.0  ;;  %v3309_v8 = vmul.f32 %v3854_v36, %v3277_v61 }
 0x3dc   : > { %v3357_v0 = vadd.f32 %v3356_v26, %v3355_v30  ;;  %v3197_v41 = vpop.f32.mrf.mxu0 }
 0x3dd   : > { %v3308_v46 = vmul.f32 %v3276_v16, %v3197_v41  ;;  %v3362_v28 = vsel %vm3320_vm5, %v3309_v8, 0.0  ;;  %v3390_v41 = vld [vmem:[%s5704_s6] sm:$0x1] }
 0x3de   : > { %v3359_v45 = vadd.f32 %v3358_v24, %v3357_v0  ;;  %v3857_v57 = vpop.f32.mrf.mxu0 }
 0x3df   : > { %v3360_v33 = vsel %vm3320_vm5, %v3308_v46, 0.0  ;;  %v3311_v27 = vmul.f32 %v3857_v57, %v3279_v47 }
 0x3e0   : > { %v3361_v62 = vadd.f32 %v3360_v33, %v3359_v45  ;;  %v3207_v23 = vpop.f32.mrf.mxu0 }
 0x3e1   : > { %v3310_v56 = vmul.f32 %v3278_v7, %v3207_v23  ;;  %v3366_v32 = vsel %vm3320_vm5, %v3311_v27, 0.0 }
 0x3e2   : > { %v3363_v29 = vadd.f32 %v3362_v28, %v3361_v62  ;;  %v3860_v43 = vpop.f32.mrf.mxu0 }
 0x3e3   : > { %v3364_v48 = vsel %vm3320_vm5, %v3310_v56, 0.0  ;;  %v3313_v42 = vmul.f32 %v3860_v43, %v3281_v22 }
 0x3e4   : > { %v3365_v54 = vadd.f32 %v3364_v48, %v3363_v29  ;;  %v3217_v13 = vpop.f32.mrf.mxu0 }
 0x3e5   : > { %v3312_v37 = vmul.f32 %v3280_v52, %v3217_v13  ;;  %v3370_v5 = vsel %vm3320_vm5, %v3313_v42, 0.0 }
 0x3e6   : > { %v3367_v11 = vadd.f32 %v3366_v32, %v3365_v54  ;;  %v3863_v63 = vpop.f32.mrf.mxu0 }
 0x3e7   : > { %v3368_v21 = vsel %vm3320_vm5, %v3312_v37, 0.0  ;;  %v3315_v50 = vmul.f32 %v3863_v63, %v3283_v2 }
 0x3e8   : > { %v3369_v44 = vadd.f32 %v3368_v21, %v3367_v11  ;;  %v3227_v40 = vpop.f32.mrf.mxu0 }
 0x3e9   : > { %v3314_v20 = vmul.f32 %v3282_v35, %v3227_v40  ;;  %v3374_v19 = vsel %vm3320_vm5, %v3315_v50, 0.0 }
 0x3ea   : > { %v3371_v38 = vadd.f32 %v3370_v5, %v3369_v44  ;;  %v3866_v31 = vpop.f32.mrf.mxu0 }
 0x3eb   : > { %v3372_v34 = vsel %vm3320_vm5, %v3314_v20, 0.0  ;;  %v3317_v1 = vmul.f32 %v3866_v31, %v3285_v9 }
 0x3ec   : > { %v3373_v18 = vadd.f32 %v3372_v34, %v3371_v38  ;;  %v3237_v3 = vpop.f32.mrf.mxu0 }
 0x3ed   : > { %v3316_v58 = vmul.f32 %v3284_v39, %v3237_v3  ;;  %v3378_v12 = vsel %vm3320_vm5, %v3317_v1, 0.0 }
 0x3ee   : > { %v3375_v15 = vadd.f32 %v3374_v19, %v3373_v18 }
 0x3ef   : > { %v3376_v55 = vsel %vm3320_vm5, %v3316_v58, 0.0 }
 0x3f0   : > { %v3377_v14 = vadd.f32 %v3376_v55, %v3375_v15 }
 0x3f1   : > { %v3869_v17 = vpop.f32.mrf.mxu1 }
 0x3f2   : > { %v3319_v51 = vmul.f32 %v3869_v17, %v3287_v25  ;;  %v3379_v59 = vadd.f32 %v3378_v12, %v3377_v14 }
 0x3f3   : > { %v3247_v6 = vpop.f32.mrf.mxu1 }
 0x3f4   : > { %v3318_v60 = vmul.f32 %v3286_v53, %v3247_v6  ;;  %v3382_v49 = vsel %vm3320_vm5, %v3319_v51, 0.0 }
 0x3f6   : > { %v3380_v10 = vsel %vm3320_vm5, %v3318_v60, 0.0 }
 0x3f7   : > { %v3381_v4 = vadd.f32 %v3380_v10, %v3379_v59 }
 0x3f9   : > { %v3383_v30 = vadd.f32 %v3382_v49, %v3381_v4 }
 0x3fb   : > { %v3384_v36 = vrot.slane %v3383_v30, 4 }
 0x3fd   : > { %v3385_v61 = vadd.f32 %v3384_v36, %v3383_v30 }
 0x3ff   : > { %v3386_v16 = vrot.slane %v3385_v61, 2 }
 0x401   : > { %v3387_v26 = vadd.f32 %v3386_v16, %v3385_v61 }
 0x403   : > { %v3388_v0 = vrot.slane %v3387_v26, 1 }
 0x405   : > { %v3389_v24 = vadd.f32 %v3388_v0, %v3387_v26 }
 0x407   : > { %v3391_v8 = vadd.f32 %v3390_v41, %v3389_v24 }
 0x409   : > { %3393 = vst.msk [vmem:[%s298_s10] sm:$0x1] %vm3392_vm6, %v3391_v8 }
 0x40a   : > { %3940 = shalt.err (!%p3937_p3)
}
 0x40b   : > { %s3941_s24 = scalar_lea.hbm %s3405_s19, 16  ;;  %s3945_s26 = scalar_lea.hbm %s5706_s8, 32 }
 0x40c   : > { %p3942_p4 = scmp.ne.s32.totalorder %s3405_s19, %s3941_s24  ;;  %p3946_p9 = scmp.lt.s32.totalorder %s3405_s19, %s5706_s8 }
 0x40d   : > { %p3947_p10 = scmp.lt.s32.totalorder %s3945_s26, %s3941_s24 }
 0x40e   : > { %p3943_p7 = pnand %p3942_p4, %p4075_p5 }
 0x40f   : > { %p3948_p11 = por %p3947_p10, %p3946_p9 }
 0x410   : > { %p3944_p8 = pneg %p3943_p7 }
 0x412   : > { %p3949_p12 = pnand %p3948_p11, %p3944_p8 }
 0x414   : > { %3952 = shalt.err (!%p3949_p12)
}
 0x415   : > { %3886 = dma.vmem_to_hbm [thread:$0]  (%p4075_p5), %s3408_s12, 16, %s3405_s19, %s3395_s20  }
 0x416 PF: > { %p3892_p13 = scmp.ge.s32.totalorder %s3987_s30, 2  ;;  %s3419_s18 = sand.u32 1, %s3975_s27  }
 0x417   : > { %s3420_s21 = scalar_lea.sflag [#allocation5], %s3419_s18 }
 0x418   : > { %p3889_p0 = pnand %p3892_p13, %p4079_p6 }
 0x41a   : > { %p3890_p1 = pneg %p3889_p0 }
 0x41c   : > { %3970 = dma.done.wait (%p3890_p1), %s3420_s21, 16  }
 0x41d   : > { %3972 = vsyncadd (%p3890_p1), %s3420_s21, 4294967280  ;;  %p18_p2 = scmp.ge.s32.totalorder %s4062_s11, 4   ;;  %s5709_s27 = smov %s3979_s28 }
 0x41e   : > { %s5710_s28 = smov %s3983_s29  ;;  %s5711_s29 = smov %s4073_s14 }
 0x41f   : > { %s5712_s30 = smov %s4062_s11  ;;  %20 = sbr.rel (!%p18_p2) target bundleno = 3 (0x3), region = 89 }
 0x424   :  { %3424 = vsyncpa [#allocation5], 1 }
 0x425   :  { %3426 = vsyncpa [#allocation5 + $0x1], 1 }

</bundles_post_ra>
